<compile_context>
chip_gen: v7x
topology: tpu7x:2x2x1
jax: 0.10.0
libtpu: 0.0.40
codegen_flags: <defaults>
</compile_context>

<pallas_src>
import functools

import jax
import jax.numpy as jnp
from jax import lax
from jax.experimental import pallas as pl
from jax.experimental.pallas import tpu as pltpu


# ----------------------------------------------------------------------------
# Pallas kernel: one LSTM layer, BOTH directions, whole sequence.
#   x_ref:            (S*B, D)   time-major input, rows = (t, b) flattened
#   wih_{f,b}_ref:    (D, 4H)    input->gates weights (transposed, gate-permuted)
#   whh_{f,b}_ref:    (H, 4H)    hidden->gates weights (transposed, gate-permuted)
#   b_{f,b}_ref:      (1, 4H)    combined bias (b_ih + b_hh, gate-permuted)
#   out_ref:          (S, B, 2H) [:, :, :H] forward, [:, :, H:] backward
#   gxf_scr/gxb_scr:  (S*B, 4H)  VMEM scratch for hoisted input projections
# Gate column order inside the kernel is [i, f, o | g].
# ----------------------------------------------------------------------------
def bilstm_layer_kernel(x_ref, wih_f_ref, whh_f_ref, b_f_ref,
                        wih_b_ref, whh_b_ref, b_b_ref,
                        out_ref, gxf_scr, gxb_scr,
                        *, seq_len, batch, unroll):
    S = seq_len
    B = batch
    H = whh_f_ref.shape[0]
    H3 = 3 * H

    x2d = x_ref[...]                                    # (S*B, D)

    # Hoisted input projections: one MXU-friendly matmul per direction instead
    # of S tiny (B, D) x (D, 4H) matmuls inside the serial loop. Bias folded in.
    gxf_scr[...] = (
        jnp.dot(x2d, wih_f_ref[...], preferred_element_type=jnp.float32)
        + b_f_ref[...])
    gxb_scr[...] = (
        jnp.dot(x2d, wih_b_ref[...], preferred_element_type=jnp.float32)
        + b_b_ref[...])

    whh_f = whh_f_ref[...]
    whh_b = whh_b_ref[...]

    def cell(gates_x, h, c, whh):
        # Only the truly serial work: h @ whh_t plus the precomputed gates.
        gates = gates_x + jnp.dot(h, whh, preferred_element_type=jnp.float32)
        # One contiguous sigmoid slab (B, 3H) + one tanh slab (B, H).
        ifo = jax.nn.sigmoid(gates[:, :H3])
        g_g = jnp.tanh(gates[:, H3:])
        i_g = ifo[:, :H]
        f_g = ifo[:, H:2 * H]
        o_g = ifo[:, 2 * H:]
        c_new = f_g * c + i_g * g_g
        h_new = o_g * jnp.tanh(c_new)
        return h_new, c_new

    def fwd_step(t, carry):
        h, c = carry
        row = pl.multiple_of(t * B, B)
        h, c = cell(gxf_scr[pl.ds(row, B), :], h, c, whh_f)
        out_ref[t, :, :H] = h
        return (h, c)

    def bwd_step(t, carry):
        h, c = carry
        s = S - 1 - t
        row = pl.multiple_of(s * B, B)
        h, c = cell(gxb_scr[pl.ds(row, B), :], h, c, whh_b)
        out_ref[s, :, H:] = h
        return (h, c)

    zeros = jnp.zeros((B, H), jnp.float32)
    # h/c live in vregs as loop carries (no per-step VMEM scratch round trip).
    lax.fori_loop(0, S, fwd_step, (zeros, zeros), unroll=unroll)
    lax.fori_loop(0, S, bwd_step, (zeros, zeros), unroll=unroll)


# ----------------------------------------------------------------------------
# Weight prep: transpose + permute gate columns [i,f,g,o] -> [i,f,o,g].
# ----------------------------------------------------------------------------
def _prep_direction(wih, whh, b_ih, b_hh):
    H = whh.shape[1]
    perm = jnp.concatenate([jnp.arange(2 * H),
                            jnp.arange(3 * H, 4 * H),
                            jnp.arange(2 * H, 3 * H)])
    wih_t = wih.T[:, perm].astype(jnp.float32)          # (D, 4H)
    whh_t = whh.T[:, perm].astype(jnp.float32)          # (H, 4H)
    b = (b_ih + b_hh)[perm].reshape(1, 4 * H).astype(jnp.float32)
    return wih_t, whh_t, b


def bilstm_layer_pallas(x2d, seq_len, batch_pad, params_f, params_b):
    """Run one bidirectional LSTM layer (both directions fused) in one kernel."""
    S, Bp = seq_len, batch_pad
    H = params_f["whh"].shape[1]
    wf, rf, bf = _prep_direction(**params_f)
    wb, rb, bb = _prep_direction(**params_b)

    unroll = S if S <= 16 else 4
    kernel = functools.partial(bilstm_layer_kernel,
                               seq_len=S, batch=Bp, unroll=unroll)
    vspec = pl.BlockSpec(memory_space=pltpu.MemorySpace.VMEM)
    return pl.pallas_call(
        kernel,
        out_shape=jax.ShapeDtypeStruct((S, Bp, 2 * H), jnp.float32),
        in_specs=[vspec] * 7,
        out_specs=vspec,
        scratch_shapes=[
            pltpu.VMEM((S * Bp, 4 * H), jnp.float32),
            pltpu.VMEM((S * Bp, 4 * H), jnp.float32),
        ],
    )(x2d.astype(jnp.float32), wf, rf, bf, wb, rb, bb)


# ----------------------------------------------------------------------------
# Parameter construction (deterministic, PyTorch-style uniform(-1/sqrt(H), 1/sqrt(H)))
# ----------------------------------------------------------------------------
def init_bilstm_params(key, input_dim, hidden_dim, num_layers):
    params = {}
    k = 1.0 / jnp.sqrt(hidden_dim)
    for layer in range(num_layers):
        in_dim = input_dim if layer == 0 else 2 * hidden_dim
        for direction in range(2):  # 0 = forward, 1 = backward
            key, k1, k2, k3, k4 = jax.random.split(key, 5)
            params[(layer, direction)] = dict(
                wih=jax.random.uniform(k1, (4 * hidden_dim, in_dim), jnp.float32, -k, k),
                whh=jax.random.uniform(k2, (4 * hidden_dim, hidden_dim), jnp.float32, -k, k),
                b_ih=jax.random.uniform(k3, (4 * hidden_dim,), jnp.float32, -k, k),
                b_hh=jax.random.uniform(k4, (4 * hidden_dim,), jnp.float32, -k, k),
            )
    return params


# ----------------------------------------------------------------------------
# Full BiLSTMEncoder forward (one fused Pallas kernel per layer).
# ----------------------------------------------------------------------------
@functools.partial(jax.jit, static_argnames=("num_layers",))
def bilstm_encoder_forward(x, params, num_layers=2):
    # x: (batch, seq, input_dim), batch-first like the PyTorch module.
    B, S, D = x.shape
    Bp = ((B + 7) // 8) * 8                              # pad batch to sublane multiple
    x_tm = jnp.transpose(x, (1, 0, 2)).astype(jnp.float32)   # (S, B, D) time-major
    x_tm = jnp.pad(x_tm, ((0, 0), (0, Bp - B), (0, 0)))
    layer_in = x_tm.reshape(S * Bp, D)

    out3d = None
    for layer in range(num_layers):
        out3d = bilstm_layer_pallas(layer_in, S, Bp,
                                    params[(layer, 0)], params[(layer, 1)])
        layer_in = out3d.reshape(S * Bp, out3d.shape[-1])

    out = out3d[:, :B, :]                                # drop batch padding
    return jnp.transpose(out, (1, 0, 2))                 # (B, S, 2H)


# ----------------------------------------------------------------------------
# Pure-JAX reference (mirrors nn.LSTM eval-mode math) for a sanity check.
# ----------------------------------------------------------------------------
def _ref_direction(x_tm, wih, whh, b_ih, b_hh):
    S, B, _ = x_tm.shape
    H = whh.shape[1]
    h = jnp.zeros((B, H), jnp.float32)
    c = jnp.zeros((B, H), jnp.float32)
    outs = []
    for t in range(S):
        gates = x_tm[t] @ wih.T + h @ whh.T + b_ih + b_hh
        i_g = jax.nn.sigmoid(gates[:, :H])
        f_g = jax.nn.sigmoid(gates[:, H:2 * H])
        g_g = jnp.tanh(gates[:, 2 * H:3 * H])
        o_g = jax.nn.sigmoid(gates[:, 3 * H:])
        c = f_g * c + i_g * g_g
        h = o_g * jnp.tanh(c)
        outs.append(h)
    return jnp.stack(outs, axis=0)


def bilstm_encoder_reference(x, params, num_layers=2):
    layer_in = jnp.transpose(x, (1, 0, 2)).astype(jnp.float32)
    for layer in range(num_layers):
        pf = params[(layer, 0)]
        pb = params[(layer, 1)]
        out_f = _ref_direction(layer_in, pf["wih"], pf["whh"], pf["b_ih"], pf["b_hh"])
        out_b = jnp.flip(
            _ref_direction(jnp.flip(layer_in, axis=0),
                           pb["wih"], pb["whh"], pb["b_ih"], pb["b_hh"]),
            axis=0,
        )
        layer_in = jnp.concatenate([out_f, out_b], axis=-1)
    return jnp.transpose(layer_in, (1, 0, 2))


if __name__ == "__main__":
    batch, seq_len, input_dim, hidden_dim, num_layers = 2, 8, 16, 32, 2

    key = jax.random.PRNGKey(0)
    key_x, key_p = jax.random.split(key)
    x = jax.random.normal(key_x, (batch, seq_len, input_dim), jnp.float32)
    params = init_bilstm_params(key_p, input_dim, hidden_dim, num_layers)

    out = bilstm_encoder_forward(x, params, num_layers=num_layers)
    out = jax.block_until_ready(out)

    assert out.shape == (batch, seq_len, 2 * hidden_dim), out.shape

    ref = bilstm_encoder_reference(x, params, num_layers=num_layers)
    max_err = float(jnp.max(jnp.abs(out - ref)))
    assert max_err < 1e-4, f"mismatch vs reference: {max_err}"

    print("KERNEL_OK")
</pallas_src>

<mosaic_0001>
module attributes {stable_mosaic.version = 11 : i64} {
  func.func @bilstm_layer_kernel(%arg0: memref<64x16xf32, #tpu.memory_space<vmem>>, %arg1: memref<16x128xf32, #tpu.memory_space<vmem>>, %arg2: memref<32x128xf32, #tpu.memory_space<vmem>>, %arg3: memref<1x128xf32, #tpu.memory_space<vmem>>, %arg4: memref<16x128xf32, #tpu.memory_space<vmem>>, %arg5: memref<32x128xf32, #tpu.memory_space<vmem>>, %arg6: memref<1x128xf32, #tpu.memory_space<vmem>>, %arg7: memref<8x8x64xf32, #tpu.memory_space<vmem>>, %arg8: memref<64x128xf32, #tpu.memory_space<vmem>>, %arg9: memref<64x128xf32, #tpu.memory_space<vmem>>) attributes {dimension_semantics = [], scalar_prefetch = 0 : i64, scratch_operands = 2 : i64, tpu.core_type = #tpu.core_type<tc>} {
    %c0 = arith.constant 0 : index
    %c0_0 = arith.constant 0 : index
    %0 = vector.load %arg0[%c0, %c0_0] : memref<64x16xf32, #tpu.memory_space<vmem>>, vector<64x16xf32>
    %c0_1 = arith.constant 0 : index
    %c0_2 = arith.constant 0 : index
    %1 = vector.load %arg1[%c0_1, %c0_2] : memref<16x128xf32, #tpu.memory_space<vmem>>, vector<16x128xf32>
    %cst = arith.constant dense<0.000000e+00> : vector<64x128xf32>
    %2 = tpu.matmul %0, %1, %cst {dimension_numbers = #tpu.dot_dimension_numbers<[1], [0], [0], [1], [0, 0, 1, 1], [], []>} : vector<64x16xf32>, vector<16x128xf32>, vector<64x128xf32> -> vector<64x128xf32>
    %c0_3 = arith.constant 0 : index
    %c0_4 = arith.constant 0 : index
    %3 = vector.load %arg3[%c0_3, %c0_4] : memref<1x128xf32, #tpu.memory_space<vmem>>, vector<1x128xf32>
    %4 = vector.broadcast %3 : vector<1x128xf32> to vector<64x128xf32>
    %5 = arith.addf %2, %4 : vector<64x128xf32>
    %c0_5 = arith.constant 0 : index
    %c0_6 = arith.constant 0 : index
    %6 = vector.load %arg8[%c0_5, %c0_6] : memref<64x128xf32, #tpu.memory_space<vmem>>, vector<64x128xf32>
    tpu.vector_store %arg8[%c0_5, %c0_6], %5 {strides = array<i32>} : memref<64x128xf32, #tpu.memory_space<vmem>>, vector<64x128xf32>,
    %c0_7 = arith.constant 0 : index
    %c0_8 = arith.constant 0 : index
    %7 = vector.load %arg4[%c0_7, %c0_8] : memref<16x128xf32, #tpu.memory_space<vmem>>, vector<16x128xf32>
    %cst_9 = arith.constant dense<0.000000e+00> : vector<64x128xf32>
    %8 = tpu.matmul %0, %7, %cst_9 {dimension_numbers = #tpu.dot_dimension_numbers<[1], [0], [0], [1], [0, 0, 1, 1], [], []>} : vector<64x16xf32>, vector<16x128xf32>, vector<64x128xf32> -> vector<64x128xf32>
    %c0_10 = arith.constant 0 : index
    %c0_11 = arith.constant 0 : index
    %9 = vector.load %arg6[%c0_10, %c0_11] : memref<1x128xf32, #tpu.memory_space<vmem>>, vector<1x128xf32>
    %10 = vector.broadcast %9 : vector<1x128xf32> to vector<64x128xf32>
    %11 = arith.addf %8, %10 : vector<64x128xf32>
    %c0_12 = arith.constant 0 : index
    %c0_13 = arith.constant 0 : index
    %12 = vector.load %arg9[%c0_12, %c0_13] : memref<64x128xf32, #tpu.memory_space<vmem>>, vector<64x128xf32>
    tpu.vector_store %arg9[%c0_12, %c0_13], %11 {strides = array<i32>} : memref<64x128xf32, #tpu.memory_space<vmem>>, vector<64x128xf32>,
    %c0_14 = arith.constant 0 : index
    %c0_15 = arith.constant 0 : index
    %13 = vector.load %arg2[%c0_14, %c0_15] : memref<32x128xf32, #tpu.memory_space<vmem>>, vector<32x128xf32>
    %c0_16 = arith.constant 0 : index
    %c0_17 = arith.constant 0 : index
    %14 = vector.load %arg5[%c0_16, %c0_17] : memref<32x128xf32, #tpu.memory_space<vmem>>, vector<32x128xf32>
    %cst_18 = arith.constant 0.000000e+00 : f32
    %15 = vector.broadcast %cst_18 : f32 to vector<8x32xf32>
    %c0_i32 = arith.constant 0 : i32
    %c8_i32 = arith.constant 8 : i32
    %16 = arith.muli %c0_i32, %c8_i32 : i32
    %17 = tpu.assume_multiple %16, 8 : i32
    %18 = arith.index_cast %17 : i32 to index
    %c0_19 = arith.constant 0 : index
    %19 = vector.load %arg8[%18, %c0_19] : memref<64x128xf32, #tpu.memory_space<vmem>>, vector<8x128xf32>
    %cst_20 = arith.constant dense<0.000000e+00> : vector<8x128xf32>
    %20 = tpu.matmul %15, %13, %cst_20 {dimension_numbers = #tpu.dot_dimension_numbers<[1], [0], [0], [1], [0, 0, 1, 1], [], []>} : vector<8x32xf32>, vector<32x128xf32>, vector<8x128xf32> -> vector<8x128xf32>
    %21 = arith.addf %19, %20 : vector<8x128xf32>
    %22 = vector.extract_strided_slice %21 {offsets = [0, 0], sizes = [8, 96], strides = [1, 1]} : vector<8x128xf32> to vector<8x96xf32>
    %23 = arith.negf %22 : vector<8x96xf32>
    %24 = math.exp %23 : vector<8x96xf32>
    %cst_21 = arith.constant 1.000000e+00 : f32
    %25 = vector.broadcast %cst_21 : f32 to vector<8x96xf32>
    %26 = arith.addf %25, %24 : vector<8x96xf32>
    %27 = arith.divf %25, %26 : vector<8x96xf32>
    %28 = vector.extract_strided_slice %21 {offsets = [0, 96], sizes = [8, 32], strides = [1, 1]} : vector<8x128xf32> to vector<8x32xf32>
    %29 = math.tanh %28 : vector<8x32xf32>
    %30 = vector.extract_strided_slice %27 {offsets = [0, 0], sizes = [8, 32], strides = [1, 1]} : vector<8x96xf32> to vector<8x32xf32>
    %31 = vector.extract_strided_slice %27 {offsets = [0, 32], sizes = [8, 32], strides = [1, 1]} : vector<8x96xf32> to vector<8x32xf32>
    %32 = vector.extract_strided_slice %27 {offsets = [0, 64], sizes = [8, 32], strides = [1, 1]} : vector<8x96xf32> to vector<8x32xf32>
    %33 = arith.mulf %31, %15 : vector<8x32xf32>
    %34 = arith.mulf %30, %29 : vector<8x32xf32>
    %35 = arith.addf %33, %34 : vector<8x32xf32>
    %36 = math.tanh %35 : vector<8x32xf32>
    %37 = arith.mulf %32, %36 : vector<8x32xf32>
    %38 = arith.index_cast %c0_i32 : i32 to index
    %c0_22 = arith.constant 0 : index
    %c0_23 = arith.constant 0 : index
    %39 = vector.load %arg7[%38, %c0_22, %c0_23] : memref<8x8x64xf32, #tpu.memory_space<vmem>>, vector<1x8x32xf32>
    %40 = vector.shape_cast %39 : vector<1x8x32xf32> to vector<8x32xf32>
    %41 = vector.shape_cast %37 : vector<8x32xf32> to vector<1x8x32xf32>
    tpu.vector_store %arg7[%38, %c0_22, %c0_23], %41 {strides = array<i32>} : memref<8x8x64xf32, #tpu.memory_space<vmem>>, vector<1x8x32xf32>,
    %c1_i32 = arith.constant 1 : i32
    %c8_i32_24 = arith.constant 8 : i32
    %42 = arith.muli %c1_i32, %c8_i32_24 : i32
    %43 = tpu.assume_multiple %42, 8 : i32
    %44 = arith.index_cast %43 : i32 to index
    %c0_25 = arith.constant 0 : index
    %45 = vector.load %arg8[%44, %c0_25] : memref<64x128xf32, #tpu.memory_space<vmem>>, vector<8x128xf32>
    %cst_26 = arith.constant dense<0.000000e+00> : vector<8x128xf32>
    %46 = tpu.matmul %37, %13, %cst_26 {dimension_numbers = #tpu.dot_dimension_numbers<[1], [0], [0], [1], [0, 0, 1, 1], [], []>} : vector<8x32xf32>, vector<32x128xf32>, vector<8x128xf32> -> vector<8x128xf32>
    %47 = arith.addf %45, %46 : vector<8x128xf32>
    %48 = vector.extract_strided_slice %47 {offsets = [0, 0], sizes = [8, 96], strides = [1, 1]} : vector<8x128xf32> to vector<8x96xf32>
    %49 = arith.negf %48 : vector<8x96xf32>
    %50 = math.exp %49 : vector<8x96xf32>
    %cst_27 = arith.constant 1.000000e+00 : f32
    %51 = vector.broadcast %cst_27 : f32 to vector<8x96xf32>
    %52 = arith.addf %51, %50 : vector<8x96xf32>
    %53 = arith.divf %51, %52 : vector<8x96xf32>
    %54 = vector.extract_strided_slice %47 {offsets = [0, 96], sizes = [8, 32], strides = [1, 1]} : vector<8x128xf32> to vector<8x32xf32>
    %55 = math.tanh %54 : vector<8x32xf32>
    %56 = vector.extract_strided_slice %53 {offsets = [0, 0], sizes = [8, 32], strides = [1, 1]} : vector<8x96xf32> to vector<8x32xf32>
    %57 = vector.extract_strided_slice %53 {offsets = [0, 32], sizes = [8, 32], strides = [1, 1]} : vector<8x96xf32> to vector<8x32xf32>
    %58 = vector.extract_strided_slice %53 {offsets = [0, 64], sizes = [8, 32], strides = [1, 1]} : vector<8x96xf32> to vector<8x32xf32>
    %59 = arith.mulf %57, %35 : vector<8x32xf32>
    %60 = arith.mulf %56, %55 : vector<8x32xf32>
    %61 = arith.addf %59, %60 : vector<8x32xf32>
    %62 = math.tanh %61 : vector<8x32xf32>
    %63 = arith.mulf %58, %62 : vector<8x32xf32>
    %64 = arith.index_cast %c1_i32 : i32 to index
    %c0_28 = arith.constant 0 : index
    %c0_29 = arith.constant 0 : index
    %65 = vector.load %arg7[%64, %c0_28, %c0_29] : memref<8x8x64xf32, #tpu.memory_space<vmem>>, vector<1x8x32xf32>
    %66 = vector.shape_cast %65 : vector<1x8x32xf32> to vector<8x32xf32>
    %67 = vector.shape_cast %63 : vector<8x32xf32> to vector<1x8x32xf32>
    tpu.vector_store %arg7[%64, %c0_28, %c0_29], %67 {strides = array<i32>} : memref<8x8x64xf32, #tpu.memory_space<vmem>>, vector<1x8x32xf32>,
    %c2_i32 = arith.constant 2 : i32
    %c8_i32_30 = arith.constant 8 : i32
    %68 = arith.muli %c2_i32, %c8_i32_30 : i32
    %69 = tpu.assume_multiple %68, 8 : i32
    %70 = arith.index_cast %69 : i32 to index
    %c0_31 = arith.constant 0 : index
    %71 = vector.load %arg8[%70, %c0_31] : memref<64x128xf32, #tpu.memory_space<vmem>>, vector<8x128xf32>
    %cst_32 = arith.constant dense<0.000000e+00> : vector<8x128xf32>
    %72 = tpu.matmul %63, %13, %cst_32 {dimension_numbers = #tpu.dot_dimension_numbers<[1], [0], [0], [1], [0, 0, 1, 1], [], []>} : vector<8x32xf32>, vector<32x128xf32>, vector<8x128xf32> -> vector<8x128xf32>
    %73 = arith.addf %71, %72 : vector<8x128xf32>
    %74 = vector.extract_strided_slice %73 {offsets = [0, 0], sizes = [8, 96], strides = [1, 1]} : vector<8x128xf32> to vector<8x96xf32>
    %75 = arith.negf %74 : vector<8x96xf32>
    %76 = math.exp %75 : vector<8x96xf32>
    %cst_33 = arith.constant 1.000000e+00 : f32
    %77 = vector.broadcast %cst_33 : f32 to vector<8x96xf32>
    %78 = arith.addf %77, %76 : vector<8x96xf32>
    %79 = arith.divf %77, %78 : vector<8x96xf32>
    %80 = vector.extract_strided_slice %73 {offsets = [0, 96], sizes = [8, 32], strides = [1, 1]} : vector<8x128xf32> to vector<8x32xf32>
    %81 = math.tanh %80 : vector<8x32xf32>
    %82 = vector.extract_strided_slice %79 {offsets = [0, 0], sizes = [8, 32], strides = [1, 1]} : vector<8x96xf32> to vector<8x32xf32>
    %83 = vector.extract_strided_slice %79 {offsets = [0, 32], sizes = [8, 32], strides = [1, 1]} : vector<8x96xf32> to vector<8x32xf32>
    %84 = vector.extract_strided_slice %79 {offsets = [0, 64], sizes = [8, 32], strides = [1, 1]} : vector<8x96xf32> to vector<8x32xf32>
    %85 = arith.mulf %83, %61 : vector<8x32xf32>
    %86 = arith.mulf %82, %81 : vector<8x32xf32>
    %87 = arith.addf %85, %86 : vector<8x32xf32>
    %88 = math.tanh %87 : vector<8x32xf32>
    %89 = arith.mulf %84, %88 : vector<8x32xf32>
    %90 = arith.index_cast %c2_i32 : i32 to index
    %c0_34 = arith.constant 0 : index
    %c0_35 = arith.constant 0 : index
    %91 = vector.load %arg7[%90, %c0_34, %c0_35] : memref<8x8x64xf32, #tpu.memory_space<vmem>>, vector<1x8x32xf32>
    %92 = vector.shape_cast %91 : vector<1x8x32xf32> to vector<8x32xf32>
    %93 = vector.shape_cast %89 : vector<8x32xf32> to vector<1x8x32xf32>
    tpu.vector_store %arg7[%90, %c0_34, %c0_35], %93 {strides = array<i32>} : memref<8x8x64xf32, #tpu.memory_space<vmem>>, vector<1x8x32xf32>,
    %c3_i32 = arith.constant 3 : i32
    %c8_i32_36 = arith.constant 8 : i32
    %94 = arith.muli %c3_i32, %c8_i32_36 : i32
    %95 = tpu.assume_multiple %94, 8 : i32
    %96 = arith.index_cast %95 : i32 to index
    %c0_37 = arith.constant 0 : index
    %97 = vector.load %arg8[%96, %c0_37] : memref<64x128xf32, #tpu.memory_space<vmem>>, vector<8x128xf32>
    %cst_38 = arith.constant dense<0.000000e+00> : vector<8x128xf32>
    %98 = tpu.matmul %89, %13, %cst_38 {dimension_numbers = #tpu.dot_dimension_numbers<[1], [0], [0], [1], [0, 0, 1, 1], [], []>} : vector<8x32xf32>, vector<32x128xf32>, vector<8x128xf32> -> vector<8x128xf32>
    %99 = arith.addf %97, %98 : vector<8x128xf32>
    %100 = vector.extract_strided_slice %99 {offsets = [0, 0], sizes = [8, 96], strides = [1, 1]} : vector<8x128xf32> to vector<8x96xf32>
    %101 = arith.negf %100 : vector<8x96xf32>
    %102 = math.exp %101 : vector<8x96xf32>
    %cst_39 = arith.constant 1.000000e+00 : f32
    %103 = vector.broadcast %cst_39 : f32 to vector<8x96xf32>
    %104 = arith.addf %103, %102 : vector<8x96xf32>
    %105 = arith.divf %103, %104 : vector<8x96xf32>
    %106 = vector.extract_strided_slice %99 {offsets = [0, 96], sizes = [8, 32], strides = [1, 1]} : vector<8x128xf32> to vector<8x32xf32>
    %107 = math.tanh %106 : vector<8x32xf32>
    %108 = vector.extract_strided_slice %105 {offsets = [0, 0], sizes = [8, 32], strides = [1, 1]} : vector<8x96xf32> to vector<8x32xf32>
    %109 = vector.extract_strided_slice %105 {offsets = [0, 32], sizes = [8, 32], strides = [1, 1]} : vector<8x96xf32> to vector<8x32xf32>
    %110 = vector.extract_strided_slice %105 {offsets = [0, 64], sizes = [8, 32], strides = [1, 1]} : vector<8x96xf32> to vector<8x32xf32>
    %111 = arith.mulf %109, %87 : vector<8x32xf32>
    %112 = arith.mulf %108, %107 : vector<8x32xf32>
    %113 = arith.addf %111, %112 : vector<8x32xf32>
    %114 = math.tanh %113 : vector<8x32xf32>
    %115 = arith.mulf %110, %114 : vector<8x32xf32>
    %116 = arith.index_cast %c3_i32 : i32 to index
    %c0_40 = arith.constant 0 : index
    %c0_41 = arith.constant 0 : index
    %117 = vector.load %arg7[%116, %c0_40, %c0_41] : memref<8x8x64xf32, #tpu.memory_space<vmem>>, vector<1x8x32xf32>
    %118 = vector.shape_cast %117 : vector<1x8x32xf32> to vector<8x32xf32>
    %119 = vector.shape_cast %115 : vector<8x32xf32> to vector<1x8x32xf32>
    tpu.vector_store %arg7[%116, %c0_40, %c0_41], %119 {strides = array<i32>} : memref<8x8x64xf32, #tpu.memory_space<vmem>>, vector<1x8x32xf32>,
    %c4_i32 = arith.constant 4 : i32
    %c8_i32_42 = arith.constant 8 : i32
    %120 = arith.muli %c4_i32, %c8_i32_42 : i32
    %121 = tpu.assume_multiple %120, 8 : i32
    %122 = arith.index_cast %121 : i32 to index
    %c0_43 = arith.constant 0 : index
    %123 = vector.load %arg8[%122, %c0_43] : memref<64x128xf32, #tpu.memory_space<vmem>>, vector<8x128xf32>
    %cst_44 = arith.constant dense<0.000000e+00> : vector<8x128xf32>
    %124 = tpu.matmul %115, %13, %cst_44 {dimension_numbers = #tpu.dot_dimension_numbers<[1], [0], [0], [1], [0, 0, 1, 1], [], []>} : vector<8x32xf32>, vector<32x128xf32>, vector<8x128xf32> -> vector<8x128xf32>
    %125 = arith.addf %123, %124 : vector<8x128xf32>
    %126 = vector.extract_strided_slice %125 {offsets = [0, 0], sizes = [8, 96], strides = [1, 1]} : vector<8x128xf32> to vector<8x96xf32>
    %127 = arith.negf %126 : vector<8x96xf32>
    %128 = math.exp %127 : vector<8x96xf32>
    %cst_45 = arith.constant 1.000000e+00 : f32
    %129 = vector.broadcast %cst_45 : f32 to vector<8x96xf32>
    %130 = arith.addf %129, %128 : vector<8x96xf32>
    %131 = arith.divf %129, %130 : vector<8x96xf32>
    %132 = vector.extract_strided_slice %125 {offsets = [0, 96], sizes = [8, 32], strides = [1, 1]} : vector<8x128xf32> to vector<8x32xf32>
    %133 = math.tanh %132 : vector<8x32xf32>
    %134 = vector.extract_strided_slice %131 {offsets = [0, 0], sizes = [8, 32], strides = [1, 1]} : vector<8x96xf32> to vector<8x32xf32>
    %135 = vector.extract_strided_slice %131 {offsets = [0, 32], sizes = [8, 32], strides = [1, 1]} : vector<8x96xf32> to vector<8x32xf32>
    %136 = vector.extract_strided_slice %131 {offsets = [0, 64], sizes = [8, 32], strides = [1, 1]} : vector<8x96xf32> to vector<8x32xf32>
    %137 = arith.mulf %135, %113 : vector<8x32xf32>
    %138 = arith.mulf %134, %133 : vector<8x32xf32>
    %139 = arith.addf %137, %138 : vector<8x32xf32>
    %140 = math.tanh %139 : vector<8x32xf32>
    %141 = arith.mulf %136, %140 : vector<8x32xf32>
    %142 = arith.index_cast %c4_i32 : i32 to index
    %c0_46 = arith.constant 0 : index
    %c0_47 = arith.constant 0 : index
    %143 = vector.load %arg7[%142, %c0_46, %c0_47] : memref<8x8x64xf32, #tpu.memory_space<vmem>>, vector<1x8x32xf32>
    %144 = vector.shape_cast %143 : vector<1x8x32xf32> to vector<8x32xf32>
    %145 = vector.shape_cast %141 : vector<8x32xf32> to vector<1x8x32xf32>
    tpu.vector_store %arg7[%142, %c0_46, %c0_47], %145 {strides = array<i32>} : memref<8x8x64xf32, #tpu.memory_space<vmem>>, vector<1x8x32xf32>,
    %c5_i32 = arith.constant 5 : i32
    %c8_i32_48 = arith.constant 8 : i32
    %146 = arith.muli %c5_i32, %c8_i32_48 : i32
    %147 = tpu.assume_multiple %146, 8 : i32
    %148 = arith.index_cast %147 : i32 to index
    %c0_49 = arith.constant 0 : index
    %149 = vector.load %arg8[%148, %c0_49] : memref<64x128xf32, #tpu.memory_space<vmem>>, vector<8x128xf32>
    %cst_50 = arith.constant dense<0.000000e+00> : vector<8x128xf32>
    %150 = tpu.matmul %141, %13, %cst_50 {dimension_numbers = #tpu.dot_dimension_numbers<[1], [0], [0], [1], [0, 0, 1, 1], [], []>} : vector<8x32xf32>, vector<32x128xf32>, vector<8x128xf32> -> vector<8x128xf32>
    %151 = arith.addf %149, %150 : vector<8x128xf32>
    %152 = vector.extract_strided_slice %151 {offsets = [0, 0], sizes = [8, 96], strides = [1, 1]} : vector<8x128xf32> to vector<8x96xf32>
    %153 = arith.negf %152 : vector<8x96xf32>
    %154 = math.exp %153 : vector<8x96xf32>
    %cst_51 = arith.constant 1.000000e+00 : f32
    %155 = vector.broadcast %cst_51 : f32 to vector<8x96xf32>
    %156 = arith.addf %155, %154 : vector<8x96xf32>
    %157 = arith.divf %155, %156 : vector<8x96xf32>
    %158 = vector.extract_strided_slice %151 {offsets = [0, 96], sizes = [8, 32], strides = [1, 1]} : vector<8x128xf32> to vector<8x32xf32>
    %159 = math.tanh %158 : vector<8x32xf32>
    %160 = vector.extract_strided_slice %157 {offsets = [0, 0], sizes = [8, 32], strides = [1, 1]} : vector<8x96xf32> to vector<8x32xf32>
    %161 = vector.extract_strided_slice %157 {offsets = [0, 32], sizes = [8, 32], strides = [1, 1]} : vector<8x96xf32> to vector<8x32xf32>
    %162 = vector.extract_strided_slice %157 {offsets = [0, 64], sizes = [8, 32], strides = [1, 1]} : vector<8x96xf32> to vector<8x32xf32>
    %163 = arith.mulf %161, %139 : vector<8x32xf32>
    %164 = arith.mulf %160, %159 : vector<8x32xf32>
    %165 = arith.addf %163, %164 : vector<8x32xf32>
    %166 = math.tanh %165 : vector<8x32xf32>
    %167 = arith.mulf %162, %166 : vector<8x32xf32>
    %168 = arith.index_cast %c5_i32 : i32 to index
    %c0_52 = arith.constant 0 : index
    %c0_53 = arith.constant 0 : index
    %169 = vector.load %arg7[%168, %c0_52, %c0_53] : memref<8x8x64xf32, #tpu.memory_space<vmem>>, vector<1x8x32xf32>
    %170 = vector.shape_cast %169 : vector<1x8x32xf32> to vector<8x32xf32>
    %171 = vector.shape_cast %167 : vector<8x32xf32> to vector<1x8x32xf32>
    tpu.vector_store %arg7[%168, %c0_52, %c0_53], %171 {strides = array<i32>} : memref<8x8x64xf32, #tpu.memory_space<vmem>>, vector<1x8x32xf32>,
    %c6_i32 = arith.constant 6 : i32
    %c8_i32_54 = arith.constant 8 : i32
    %172 = arith.muli %c6_i32, %c8_i32_54 : i32
    %173 = tpu.assume_multiple %172, 8 : i32
    %174 = arith.index_cast %173 : i32 to index
    %c0_55 = arith.constant 0 : index
    %175 = vector.load %arg8[%174, %c0_55] : memref<64x128xf32, #tpu.memory_space<vmem>>, vector<8x128xf32>
    %cst_56 = arith.constant dense<0.000000e+00> : vector<8x128xf32>
    %176 = tpu.matmul %167, %13, %cst_56 {dimension_numbers = #tpu.dot_dimension_numbers<[1], [0], [0], [1], [0, 0, 1, 1], [], []>} : vector<8x32xf32>, vector<32x128xf32>, vector<8x128xf32> -> vector<8x128xf32>
    %177 = arith.addf %175, %176 : vector<8x128xf32>
    %178 = vector.extract_strided_slice %177 {offsets = [0, 0], sizes = [8, 96], strides = [1, 1]} : vector<8x128xf32> to vector<8x96xf32>
    %179 = arith.negf %178 : vector<8x96xf32>
    %180 = math.exp %179 : vector<8x96xf32>
    %cst_57 = arith.constant 1.000000e+00 : f32
    %181 = vector.broadcast %cst_57 : f32 to vector<8x96xf32>
    %182 = arith.addf %181, %180 : vector<8x96xf32>
    %183 = arith.divf %181, %182 : vector<8x96xf32>
    %184 = vector.extract_strided_slice %177 {offsets = [0, 96], sizes = [8, 32], strides = [1, 1]} : vector<8x128xf32> to vector<8x32xf32>
    %185 = math.tanh %184 : vector<8x32xf32>
    %186 = vector.extract_strided_slice %183 {offsets = [0, 0], sizes = [8, 32], strides = [1, 1]} : vector<8x96xf32> to vector<8x32xf32>
    %187 = vector.extract_strided_slice %183 {offsets = [0, 32], sizes = [8, 32], strides = [1, 1]} : vector<8x96xf32> to vector<8x32xf32>
    %188 = vector.extract_strided_slice %183 {offsets = [0, 64], sizes = [8, 32], strides = [1, 1]} : vector<8x96xf32> to vector<8x32xf32>
    %189 = arith.mulf %187, %165 : vector<8x32xf32>
    %190 = arith.mulf %186, %185 : vector<8x32xf32>
    %191 = arith.addf %189, %190 : vector<8x32xf32>
    %192 = math.tanh %191 : vector<8x32xf32>
    %193 = arith.mulf %188, %192 : vector<8x32xf32>
    %194 = arith.index_cast %c6_i32 : i32 to index
    %c0_58 = arith.constant 0 : index
    %c0_59 = arith.constant 0 : index
    %195 = vector.load %arg7[%194, %c0_58, %c0_59] : memref<8x8x64xf32, #tpu.memory_space<vmem>>, vector<1x8x32xf32>
    %196 = vector.shape_cast %195 : vector<1x8x32xf32> to vector<8x32xf32>
    %197 = vector.shape_cast %193 : vector<8x32xf32> to vector<1x8x32xf32>
    tpu.vector_store %arg7[%194, %c0_58, %c0_59], %197 {strides = array<i32>} : memref<8x8x64xf32, #tpu.memory_space<vmem>>, vector<1x8x32xf32>,
    %c7_i32 = arith.constant 7 : i32
    %c8_i32_60 = arith.constant 8 : i32
    %198 = arith.muli %c7_i32, %c8_i32_60 : i32
    %199 = tpu.assume_multiple %198, 8 : i32
    %200 = arith.index_cast %199 : i32 to index
    %c0_61 = arith.constant 0 : index
    %201 = vector.load %arg8[%200, %c0_61] : memref<64x128xf32, #tpu.memory_space<vmem>>, vector<8x128xf32>
    %cst_62 = arith.constant dense<0.000000e+00> : vector<8x128xf32>
    %202 = tpu.matmul %193, %13, %cst_62 {dimension_numbers = #tpu.dot_dimension_numbers<[1], [0], [0], [1], [0, 0, 1, 1], [], []>} : vector<8x32xf32>, vector<32x128xf32>, vector<8x128xf32> -> vector<8x128xf32>
    %203 = arith.addf %201, %202 : vector<8x128xf32>
    %204 = vector.extract_strided_slice %203 {offsets = [0, 0], sizes = [8, 96], strides = [1, 1]} : vector<8x128xf32> to vector<8x96xf32>
    %205 = arith.negf %204 : vector<8x96xf32>
    %206 = math.exp %205 : vector<8x96xf32>
    %cst_63 = arith.constant 1.000000e+00 : f32
    %207 = vector.broadcast %cst_63 : f32 to vector<8x96xf32>
    %208 = arith.addf %207, %206 : vector<8x96xf32>
    %209 = arith.divf %207, %208 : vector<8x96xf32>
    %210 = vector.extract_strided_slice %203 {offsets = [0, 96], sizes = [8, 32], strides = [1, 1]} : vector<8x128xf32> to vector<8x32xf32>
    %211 = math.tanh %210 : vector<8x32xf32>
    %212 = vector.extract_strided_slice %209 {offsets = [0, 0], sizes = [8, 32], strides = [1, 1]} : vector<8x96xf32> to vector<8x32xf32>
    %213 = vector.extract_strided_slice %209 {offsets = [0, 32], sizes = [8, 32], strides = [1, 1]} : vector<8x96xf32> to vector<8x32xf32>
    %214 = vector.extract_strided_slice %209 {offsets = [0, 64], sizes = [8, 32], strides = [1, 1]} : vector<8x96xf32> to vector<8x32xf32>
    %215 = arith.mulf %213, %191 : vector<8x32xf32>
    %216 = arith.mulf %212, %211 : vector<8x32xf32>
    %217 = arith.addf %215, %216 : vector<8x32xf32>
    %218 = math.tanh %217 : vector<8x32xf32>
    %219 = arith.mulf %214, %218 : vector<8x32xf32>
    %220 = arith.index_cast %c7_i32 : i32 to index
    %c0_64 = arith.constant 0 : index
    %c0_65 = arith.constant 0 : index
    %221 = vector.load %arg7[%220, %c0_64, %c0_65] : memref<8x8x64xf32, #tpu.memory_space<vmem>>, vector<1x8x32xf32>
    %222 = vector.shape_cast %221 : vector<1x8x32xf32> to vector<8x32xf32>
    %223 = vector.shape_cast %219 : vector<8x32xf32> to vector<1x8x32xf32>
    tpu.vector_store %arg7[%220, %c0_64, %c0_65], %223 {strides = array<i32>} : memref<8x8x64xf32, #tpu.memory_space<vmem>>, vector<1x8x32xf32>,
    %c8_i32_66 = arith.constant 8 : i32
    %c0_i32_67 = arith.constant 0 : i32
    %c7_i32_68 = arith.constant 7 : i32
    %224 = arith.subi %c7_i32_68, %c0_i32_67 : i32
    %c8_i32_69 = arith.constant 8 : i32
    %225 = arith.muli %224, %c8_i32_69 : i32
    %226 = tpu.assume_multiple %225, 8 : i32
    %227 = arith.index_cast %226 : i32 to index
    %c0_70 = arith.constant 0 : index
    %228 = vector.load %arg9[%227, %c0_70] : memref<64x128xf32, #tpu.memory_space<vmem>>, vector<8x128xf32>
    %cst_71 = arith.constant dense<0.000000e+00> : vector<8x128xf32>
    %229 = tpu.matmul %15, %14, %cst_71 {dimension_numbers = #tpu.dot_dimension_numbers<[1], [0], [0], [1], [0, 0, 1, 1], [], []>} : vector<8x32xf32>, vector<32x128xf32>, vector<8x128xf32> -> vector<8x128xf32>
    %230 = arith.addf %228, %229 : vector<8x128xf32>
    %231 = vector.extract_strided_slice %230 {offsets = [0, 0], sizes = [8, 96], strides = [1, 1]} : vector<8x128xf32> to vector<8x96xf32>
    %232 = arith.negf %231 : vector<8x96xf32>
    %233 = math.exp %232 : vector<8x96xf32>
    %cst_72 = arith.constant 1.000000e+00 : f32
    %234 = vector.broadcast %cst_72 : f32 to vector<8x96xf32>
    %235 = arith.addf %234, %233 : vector<8x96xf32>
    %236 = arith.divf %234, %235 : vector<8x96xf32>
    %237 = vector.extract_strided_slice %230 {offsets = [0, 96], sizes = [8, 32], strides = [1, 1]} : vector<8x128xf32> to vector<8x32xf32>
    %238 = math.tanh %237 : vector<8x32xf32>
    %239 = vector.extract_strided_slice %236 {offsets = [0, 0], sizes = [8, 32], strides = [1, 1]} : vector<8x96xf32> to vector<8x32xf32>
    %240 = vector.extract_strided_slice %236 {offsets = [0, 32], sizes = [8, 32], strides = [1, 1]} : vector<8x96xf32> to vector<8x32xf32>
    %241 = vector.extract_strided_slice %236 {offsets = [0, 64], sizes = [8, 32], strides = [1, 1]} : vector<8x96xf32> to vector<8x32xf32>
    %242 = arith.mulf %240, %15 : vector<8x32xf32>
    %243 = arith.mulf %239, %238 : vector<8x32xf32>
    %244 = arith.addf %242, %243 : vector<8x32xf32>
    %245 = math.tanh %244 : vector<8x32xf32>
    %246 = arith.mulf %241, %245 : vector<8x32xf32>
    %247 = arith.index_cast %224 : i32 to index
    %c0_73 = arith.constant 0 : index
    %c32 = arith.constant 32 : index
    %248 = vector.load %arg7[%247, %c0_73, %c32] : memref<8x8x64xf32, #tpu.memory_space<vmem>>, vector<1x8x32xf32>
    %249 = vector.shape_cast %248 : vector<1x8x32xf32> to vector<8x32xf32>
    %250 = vector.shape_cast %246 : vector<8x32xf32> to vector<1x8x32xf32>
    tpu.vector_store %arg7[%247, %c0_73, %c32], %250 {strides = array<i32>} : memref<8x8x64xf32, #tpu.memory_space<vmem>>, vector<1x8x32xf32>,
    %c1_i32_74 = arith.constant 1 : i32
    %c7_i32_75 = arith.constant 7 : i32
    %251 = arith.subi %c7_i32_75, %c1_i32_74 : i32
    %c8_i32_76 = arith.constant 8 : i32
    %252 = arith.muli %251, %c8_i32_76 : i32
    %253 = tpu.assume_multiple %252, 8 : i32
    %254 = arith.index_cast %253 : i32 to index
    %c0_77 = arith.constant 0 : index
    %255 = vector.load %arg9[%254, %c0_77] : memref<64x128xf32, #tpu.memory_space<vmem>>, vector<8x128xf32>
    %cst_78 = arith.constant dense<0.000000e+00> : vector<8x128xf32>
    %256 = tpu.matmul %246, %14, %cst_78 {dimension_numbers = #tpu.dot_dimension_numbers<[1], [0], [0], [1], [0, 0, 1, 1], [], []>} : vector<8x32xf32>, vector<32x128xf32>, vector<8x128xf32> -> vector<8x128xf32>
    %257 = arith.addf %255, %256 : vector<8x128xf32>
    %258 = vector.extract_strided_slice %257 {offsets = [0, 0], sizes = [8, 96], strides = [1, 1]} : vector<8x128xf32> to vector<8x96xf32>
    %259 = arith.negf %258 : vector<8x96xf32>
    %260 = math.exp %259 : vector<8x96xf32>
    %cst_79 = arith.constant 1.000000e+00 : f32
    %261 = vector.broadcast %cst_79 : f32 to vector<8x96xf32>
    %262 = arith.addf %261, %260 : vector<8x96xf32>
    %263 = arith.divf %261, %262 : vector<8x96xf32>
    %264 = vector.extract_strided_slice %257 {offsets = [0, 96], sizes = [8, 32], strides = [1, 1]} : vector<8x128xf32> to vector<8x32xf32>
    %265 = math.tanh %264 : vector<8x32xf32>
    %266 = vector.extract_strided_slice %263 {offsets = [0, 0], sizes = [8, 32], strides = [1, 1]} : vector<8x96xf32> to vector<8x32xf32>
    %267 = vector.extract_strided_slice %263 {offsets = [0, 32], sizes = [8, 32], strides = [1, 1]} : vector<8x96xf32> to vector<8x32xf32>
    %268 = vector.extract_strided_slice %263 {offsets = [0, 64], sizes = [8, 32], strides = [1, 1]} : vector<8x96xf32> to vector<8x32xf32>
    %269 = arith.mulf %267, %244 : vector<8x32xf32>
    %270 = arith.mulf %266, %265 : vector<8x32xf32>
    %271 = arith.addf %269, %270 : vector<8x32xf32>
    %272 = math.tanh %271 : vector<8x32xf32>
    %273 = arith.mulf %268, %272 : vector<8x32xf32>
    %274 = arith.index_cast %251 : i32 to index
    %c0_80 = arith.constant 0 : index
    %c32_81 = arith.constant 32 : index
    %275 = vector.load %arg7[%274, %c0_80, %c32_81] : memref<8x8x64xf32, #tpu.memory_space<vmem>>, vector<1x8x32xf32>
    %276 = vector.shape_cast %275 : vector<1x8x32xf32> to vector<8x32xf32>
    %277 = vector.shape_cast %273 : vector<8x32xf32> to vector<1x8x32xf32>
    tpu.vector_store %arg7[%274, %c0_80, %c32_81], %277 {strides = array<i32>} : memref<8x8x64xf32, #tpu.memory_space<vmem>>, vector<1x8x32xf32>,
    %c2_i32_82 = arith.constant 2 : i32
    %c7_i32_83 = arith.constant 7 : i32
    %278 = arith.subi %c7_i32_83, %c2_i32_82 : i32
    %c8_i32_84 = arith.constant 8 : i32
    %279 = arith.muli %278, %c8_i32_84 : i32
    %280 = tpu.assume_multiple %279, 8 : i32
    %281 = arith.index_cast %280 : i32 to index
    %c0_85 = arith.constant 0 : index
    %282 = vector.load %arg9[%281, %c0_85] : memref<64x128xf32, #tpu.memory_space<vmem>>, vector<8x128xf32>
    %cst_86 = arith.constant dense<0.000000e+00> : vector<8x128xf32>
    %283 = tpu.matmul %273, %14, %cst_86 {dimension_numbers = #tpu.dot_dimension_numbers<[1], [0], [0], [1], [0, 0, 1, 1], [], []>} : vector<8x32xf32>, vector<32x128xf32>, vector<8x128xf32> -> vector<8x128xf32>
    %284 = arith.addf %282, %283 : vector<8x128xf32>
    %285 = vector.extract_strided_slice %284 {offsets = [0, 0], sizes = [8, 96], strides = [1, 1]} : vector<8x128xf32> to vector<8x96xf32>
    %286 = arith.negf %285 : vector<8x96xf32>
    %287 = math.exp %286 : vector<8x96xf32>
    %cst_87 = arith.constant 1.000000e+00 : f32
    %288 = vector.broadcast %cst_87 : f32 to vector<8x96xf32>
    %289 = arith.addf %288, %287 : vector<8x96xf32>
    %290 = arith.divf %288, %289 : vector<8x96xf32>
    %291 = vector.extract_strided_slice %284 {offsets = [0, 96], sizes = [8, 32], strides = [1, 1]} : vector<8x128xf32> to vector<8x32xf32>
    %292 = math.tanh %291 : vector<8x32xf32>
    %293 = vector.extract_strided_slice %290 {offsets = [0, 0], sizes = [8, 32], strides = [1, 1]} : vector<8x96xf32> to vector<8x32xf32>
    %294 = vector.extract_strided_slice %290 {offsets = [0, 32], sizes = [8, 32], strides = [1, 1]} : vector<8x96xf32> to vector<8x32xf32>
    %295 = vector.extract_strided_slice %290 {offsets = [0, 64], sizes = [8, 32], strides = [1, 1]} : vector<8x96xf32> to vector<8x32xf32>
    %296 = arith.mulf %294, %271 : vector<8x32xf32>
    %297 = arith.mulf %293, %292 : vector<8x32xf32>
    %298 = arith.addf %296, %297 : vector<8x32xf32>
    %299 = math.tanh %298 : vector<8x32xf32>
    %300 = arith.mulf %295, %299 : vector<8x32xf32>
    %301 = arith.index_cast %278 : i32 to index
    %c0_88 = arith.constant 0 : index
    %c32_89 = arith.constant 32 : index
    %302 = vector.load %arg7[%301, %c0_88, %c32_89] : memref<8x8x64xf32, #tpu.memory_space<vmem>>, vector<1x8x32xf32>
    %303 = vector.shape_cast %302 : vector<1x8x32xf32> to vector<8x32xf32>
    %304 = vector.shape_cast %300 : vector<8x32xf32> to vector<1x8x32xf32>
    tpu.vector_store %arg7[%301, %c0_88, %c32_89], %304 {strides = array<i32>} : memref<8x8x64xf32, #tpu.memory_space<vmem>>, vector<1x8x32xf32>,
    %c3_i32_90 = arith.constant 3 : i32
    %c7_i32_91 = arith.constant 7 : i32
    %305 = arith.subi %c7_i32_91, %c3_i32_90 : i32
    %c8_i32_92 = arith.constant 8 : i32
    %306 = arith.muli %305, %c8_i32_92 : i32
    %307 = tpu.assume_multiple %306, 8 : i32
    %308 = arith.index_cast %307 : i32 to index
    %c0_93 = arith.constant 0 : index
    %309 = vector.load %arg9[%308, %c0_93] : memref<64x128xf32, #tpu.memory_space<vmem>>, vector<8x128xf32>
    %cst_94 = arith.constant dense<0.000000e+00> : vector<8x128xf32>
    %310 = tpu.matmul %300, %14, %cst_94 {dimension_numbers = #tpu.dot_dimension_numbers<[1], [0], [0], [1], [0, 0, 1, 1], [], []>} : vector<8x32xf32>, vector<32x128xf32>, vector<8x128xf32> -> vector<8x128xf32>
    %311 = arith.addf %309, %310 : vector<8x128xf32>
    %312 = vector.extract_strided_slice %311 {offsets = [0, 0], sizes = [8, 96], strides = [1, 1]} : vector<8x128xf32> to vector<8x96xf32>
    %313 = arith.negf %312 : vector<8x96xf32>
    %314 = math.exp %313 : vector<8x96xf32>
    %cst_95 = arith.constant 1.000000e+00 : f32
    %315 = vector.broadcast %cst_95 : f32 to vector<8x96xf32>
    %316 = arith.addf %315, %314 : vector<8x96xf32>
    %317 = arith.divf %315, %316 : vector<8x96xf32>
    %318 = vector.extract_strided_slice %311 {offsets = [0, 96], sizes = [8, 32], strides = [1, 1]} : vector<8x128xf32> to vector<8x32xf32>
    %319 = math.tanh %318 : vector<8x32xf32>
    %320 = vector.extract_strided_slice %317 {offsets = [0, 0], sizes = [8, 32], strides = [1, 1]} : vector<8x96xf32> to vector<8x32xf32>
    %321 = vector.extract_strided_slice %317 {offsets = [0, 32], sizes = [8, 32], strides = [1, 1]} : vector<8x96xf32> to vector<8x32xf32>
    %322 = vector.extract_strided_slice %317 {offsets = [0, 64], sizes = [8, 32], strides = [1, 1]} : vector<8x96xf32> to vector<8x32xf32>
    %323 = arith.mulf %321, %298 : vector<8x32xf32>
    %324 = arith.mulf %320, %319 : vector<8x32xf32>
    %325 = arith.addf %323, %324 : vector<8x32xf32>
    %326 = math.tanh %325 : vector<8x32xf32>
    %327 = arith.mulf %322, %326 : vector<8x32xf32>
    %328 = arith.index_cast %305 : i32 to index
    %c0_96 = arith.constant 0 : index
    %c32_97 = arith.constant 32 : index
    %329 = vector.load %arg7[%328, %c0_96, %c32_97] : memref<8x8x64xf32, #tpu.memory_space<vmem>>, vector<1x8x32xf32>
    %330 = vector.shape_cast %329 : vector<1x8x32xf32> to vector<8x32xf32>
    %331 = vector.shape_cast %327 : vector<8x32xf32> to vector<1x8x32xf32>
    tpu.vector_store %arg7[%328, %c0_96, %c32_97], %331 {strides = array<i32>} : memref<8x8x64xf32, #tpu.memory_space<vmem>>, vector<1x8x32xf32>,
    %c4_i32_98 = arith.constant 4 : i32
    %c7_i32_99 = arith.constant 7 : i32
    %332 = arith.subi %c7_i32_99, %c4_i32_98 : i32
    %c8_i32_100 = arith.constant 8 : i32
    %333 = arith.muli %332, %c8_i32_100 : i32
    %334 = tpu.assume_multiple %333, 8 : i32
    %335 = arith.index_cast %334 : i32 to index
    %c0_101 = arith.constant 0 : index
    %336 = vector.load %arg9[%335, %c0_101] : memref<64x128xf32, #tpu.memory_space<vmem>>, vector<8x128xf32>
    %cst_102 = arith.constant dense<0.000000e+00> : vector<8x128xf32>
    %337 = tpu.matmul %327, %14, %cst_102 {dimension_numbers = #tpu.dot_dimension_numbers<[1], [0], [0], [1], [0, 0, 1, 1], [], []>} : vector<8x32xf32>, vector<32x128xf32>, vector<8x128xf32> -> vector<8x128xf32>
    %338 = arith.addf %336, %337 : vector<8x128xf32>
    %339 = vector.extract_strided_slice %338 {offsets = [0, 0], sizes = [8, 96], strides = [1, 1]} : vector<8x128xf32> to vector<8x96xf32>
    %340 = arith.negf %339 : vector<8x96xf32>
    %341 = math.exp %340 : vector<8x96xf32>
    %cst_103 = arith.constant 1.000000e+00 : f32
    %342 = vector.broadcast %cst_103 : f32 to vector<8x96xf32>
    %343 = arith.addf %342, %341 : vector<8x96xf32>
    %344 = arith.divf %342, %343 : vector<8x96xf32>
    %345 = vector.extract_strided_slice %338 {offsets = [0, 96], sizes = [8, 32], strides = [1, 1]} : vector<8x128xf32> to vector<8x32xf32>
    %346 = math.tanh %345 : vector<8x32xf32>
    %347 = vector.extract_strided_slice %344 {offsets = [0, 0], sizes = [8, 32], strides = [1, 1]} : vector<8x96xf32> to vector<8x32xf32>
    %348 = vector.extract_strided_slice %344 {offsets = [0, 32], sizes = [8, 32], strides = [1, 1]} : vector<8x96xf32> to vector<8x32xf32>
    %349 = vector.extract_strided_slice %344 {offsets = [0, 64], sizes = [8, 32], strides = [1, 1]} : vector<8x96xf32> to vector<8x32xf32>
    %350 = arith.mulf %348, %325 : vector<8x32xf32>
    %351 = arith.mulf %347, %346 : vector<8x32xf32>
    %352 = arith.addf %350, %351 : vector<8x32xf32>
    %353 = math.tanh %352 : vector<8x32xf32>
    %354 = arith.mulf %349, %353 : vector<8x32xf32>
    %355 = arith.index_cast %332 : i32 to index
    %c0_104 = arith.constant 0 : index
    %c32_105 = arith.constant 32 : index
    %356 = vector.load %arg7[%355, %c0_104, %c32_105] : memref<8x8x64xf32, #tpu.memory_space<vmem>>, vector<1x8x32xf32>
    %357 = vector.shape_cast %356 : vector<1x8x32xf32> to vector<8x32xf32>
    %358 = vector.shape_cast %354 : vector<8x32xf32> to vector<1x8x32xf32>
    tpu.vector_store %arg7[%355, %c0_104, %c32_105], %358 {strides = array<i32>} : memref<8x8x64xf32, #tpu.memory_space<vmem>>, vector<1x8x32xf32>,
    %c5_i32_106 = arith.constant 5 : i32
    %c7_i32_107 = arith.constant 7 : i32
    %359 = arith.subi %c7_i32_107, %c5_i32_106 : i32
    %c8_i32_108 = arith.constant 8 : i32
    %360 = arith.muli %359, %c8_i32_108 : i32
    %361 = tpu.assume_multiple %360, 8 : i32
    %362 = arith.index_cast %361 : i32 to index
    %c0_109 = arith.constant 0 : index
    %363 = vector.load %arg9[%362, %c0_109] : memref<64x128xf32, #tpu.memory_space<vmem>>, vector<8x128xf32>
    %cst_110 = arith.constant dense<0.000000e+00> : vector<8x128xf32>
    %364 = tpu.matmul %354, %14, %cst_110 {dimension_numbers = #tpu.dot_dimension_numbers<[1], [0], [0], [1], [0, 0, 1, 1], [], []>} : vector<8x32xf32>, vector<32x128xf32>, vector<8x128xf32> -> vector<8x128xf32>
    %365 = arith.addf %363, %364 : vector<8x128xf32>
    %366 = vector.extract_strided_slice %365 {offsets = [0, 0], sizes = [8, 96], strides = [1, 1]} : vector<8x128xf32> to vector<8x96xf32>
    %367 = arith.negf %366 : vector<8x96xf32>
    %368 = math.exp %367 : vector<8x96xf32>
    %cst_111 = arith.constant 1.000000e+00 : f32
    %369 = vector.broadcast %cst_111 : f32 to vector<8x96xf32>
    %370 = arith.addf %369, %368 : vector<8x96xf32>
    %371 = arith.divf %369, %370 : vector<8x96xf32>
    %372 = vector.extract_strided_slice %365 {offsets = [0, 96], sizes = [8, 32], strides = [1, 1]} : vector<8x128xf32> to vector<8x32xf32>
    %373 = math.tanh %372 : vector<8x32xf32>
    %374 = vector.extract_strided_slice %371 {offsets = [0, 0], sizes = [8, 32], strides = [1, 1]} : vector<8x96xf32> to vector<8x32xf32>
    %375 = vector.extract_strided_slice %371 {offsets = [0, 32], sizes = [8, 32], strides = [1, 1]} : vector<8x96xf32> to vector<8x32xf32>
    %376 = vector.extract_strided_slice %371 {offsets = [0, 64], sizes = [8, 32], strides = [1, 1]} : vector<8x96xf32> to vector<8x32xf32>
    %377 = arith.mulf %375, %352 : vector<8x32xf32>
    %378 = arith.mulf %374, %373 : vector<8x32xf32>
    %379 = arith.addf %377, %378 : vector<8x32xf32>
    %380 = math.tanh %379 : vector<8x32xf32>
    %381 = arith.mulf %376, %380 : vector<8x32xf32>
    %382 = arith.index_cast %359 : i32 to index
    %c0_112 = arith.constant 0 : index
    %c32_113 = arith.constant 32 : index
    %383 = vector.load %arg7[%382, %c0_112, %c32_113] : memref<8x8x64xf32, #tpu.memory_space<vmem>>, vector<1x8x32xf32>
    %384 = vector.shape_cast %383 : vector<1x8x32xf32> to vector<8x32xf32>
    %385 = vector.shape_cast %381 : vector<8x32xf32> to vector<1x8x32xf32>
    tpu.vector_store %arg7[%382, %c0_112, %c32_113], %385 {strides = array<i32>} : memref<8x8x64xf32, #tpu.memory_space<vmem>>, vector<1x8x32xf32>,
    %c6_i32_114 = arith.constant 6 : i32
    %c7_i32_115 = arith.constant 7 : i32
    %386 = arith.subi %c7_i32_115, %c6_i32_114 : i32
    %c8_i32_116 = arith.constant 8 : i32
    %387 = arith.muli %386, %c8_i32_116 : i32
    %388 = tpu.assume_multiple %387, 8 : i32
    %389 = arith.index_cast %388 : i32 to index
    %c0_117 = arith.constant 0 : index
    %390 = vector.load %arg9[%389, %c0_117] : memref<64x128xf32, #tpu.memory_space<vmem>>, vector<8x128xf32>
    %cst_118 = arith.constant dense<0.000000e+00> : vector<8x128xf32>
    %391 = tpu.matmul %381, %14, %cst_118 {dimension_numbers = #tpu.dot_dimension_numbers<[1], [0], [0], [1], [0, 0, 1, 1], [], []>} : vector<8x32xf32>, vector<32x128xf32>, vector<8x128xf32> -> vector<8x128xf32>
    %392 = arith.addf %390, %391 : vector<8x128xf32>
    %393 = vector.extract_strided_slice %392 {offsets = [0, 0], sizes = [8, 96], strides = [1, 1]} : vector<8x128xf32> to vector<8x96xf32>
    %394 = arith.negf %393 : vector<8x96xf32>
    %395 = math.exp %394 : vector<8x96xf32>
    %cst_119 = arith.constant 1.000000e+00 : f32
    %396 = vector.broadcast %cst_119 : f32 to vector<8x96xf32>
    %397 = arith.addf %396, %395 : vector<8x96xf32>
    %398 = arith.divf %396, %397 : vector<8x96xf32>
    %399 = vector.extract_strided_slice %392 {offsets = [0, 96], sizes = [8, 32], strides = [1, 1]} : vector<8x128xf32> to vector<8x32xf32>
    %400 = math.tanh %399 : vector<8x32xf32>
    %401 = vector.extract_strided_slice %398 {offsets = [0, 0], sizes = [8, 32], strides = [1, 1]} : vector<8x96xf32> to vector<8x32xf32>
    %402 = vector.extract_strided_slice %398 {offsets = [0, 32], sizes = [8, 32], strides = [1, 1]} : vector<8x96xf32> to vector<8x32xf32>
    %403 = vector.extract_strided_slice %398 {offsets = [0, 64], sizes = [8, 32], strides = [1, 1]} : vector<8x96xf32> to vector<8x32xf32>
    %404 = arith.mulf %402, %379 : vector<8x32xf32>
    %405 = arith.mulf %401, %400 : vector<8x32xf32>
    %406 = arith.addf %404, %405 : vector<8x32xf32>
    %407 = math.tanh %406 : vector<8x32xf32>
    %408 = arith.mulf %403, %407 : vector<8x32xf32>
    %409 = arith.index_cast %386 : i32 to index
    %c0_120 = arith.constant 0 : index
    %c32_121 = arith.constant 32 : index
    %410 = vector.load %arg7[%409, %c0_120, %c32_121] : memref<8x8x64xf32, #tpu.memory_space<vmem>>, vector<1x8x32xf32>
    %411 = vector.shape_cast %410 : vector<1x8x32xf32> to vector<8x32xf32>
    %412 = vector.shape_cast %408 : vector<8x32xf32> to vector<1x8x32xf32>
    tpu.vector_store %arg7[%409, %c0_120, %c32_121], %412 {strides = array<i32>} : memref<8x8x64xf32, #tpu.memory_space<vmem>>, vector<1x8x32xf32>,
    %c7_i32_122 = arith.constant 7 : i32
    %c7_i32_123 = arith.constant 7 : i32
    %413 = arith.subi %c7_i32_123, %c7_i32_122 : i32
    %c8_i32_124 = arith.constant 8 : i32
    %414 = arith.muli %413, %c8_i32_124 : i32
    %415 = tpu.assume_multiple %414, 8 : i32
    %416 = arith.index_cast %415 : i32 to index
    %c0_125 = arith.constant 0 : index
    %417 = vector.load %arg9[%416, %c0_125] : memref<64x128xf32, #tpu.memory_space<vmem>>, vector<8x128xf32>
    %cst_126 = arith.constant dense<0.000000e+00> : vector<8x128xf32>
    %418 = tpu.matmul %408, %14, %cst_126 {dimension_numbers = #tpu.dot_dimension_numbers<[1], [0], [0], [1], [0, 0, 1, 1], [], []>} : vector<8x32xf32>, vector<32x128xf32>, vector<8x128xf32> -> vector<8x128xf32>
    %419 = arith.addf %417, %418 : vector<8x128xf32>
    %420 = vector.extract_strided_slice %419 {offsets = [0, 0], sizes = [8, 96], strides = [1, 1]} : vector<8x128xf32> to vector<8x96xf32>
    %421 = arith.negf %420 : vector<8x96xf32>
    %422 = math.exp %421 : vector<8x96xf32>
    %cst_127 = arith.constant 1.000000e+00 : f32
    %423 = vector.broadcast %cst_127 : f32 to vector<8x96xf32>
    %424 = arith.addf %423, %422 : vector<8x96xf32>
    %425 = arith.divf %423, %424 : vector<8x96xf32>
    %426 = vector.extract_strided_slice %419 {offsets = [0, 96], sizes = [8, 32], strides = [1, 1]} : vector<8x128xf32> to vector<8x32xf32>
    %427 = math.tanh %426 : vector<8x32xf32>
    %428 = vector.extract_strided_slice %425 {offsets = [0, 0], sizes = [8, 32], strides = [1, 1]} : vector<8x96xf32> to vector<8x32xf32>
    %429 = vector.extract_strided_slice %425 {offsets = [0, 32], sizes = [8, 32], strides = [1, 1]} : vector<8x96xf32> to vector<8x32xf32>
    %430 = vector.extract_strided_slice %425 {offsets = [0, 64], sizes = [8, 32], strides = [1, 1]} : vector<8x96xf32> to vector<8x32xf32>
    %431 = arith.mulf %429, %406 : vector<8x32xf32>
    %432 = arith.mulf %428, %427 : vector<8x32xf32>
    %433 = arith.addf %431, %432 : vector<8x32xf32>
    %434 = math.tanh %433 : vector<8x32xf32>
    %435 = arith.mulf %430, %434 : vector<8x32xf32>
    %436 = arith.index_cast %413 : i32 to index
    %c0_128 = arith.constant 0 : index
    %c32_129 = arith.constant 32 : index
    %437 = vector.load %arg7[%436, %c0_128, %c32_129] : memref<8x8x64xf32, #tpu.memory_space<vmem>>, vector<1x8x32xf32>
    %438 = vector.shape_cast %437 : vector<1x8x32xf32> to vector<8x32xf32>
    %439 = vector.shape_cast %435 : vector<8x32xf32> to vector<1x8x32xf32>
    tpu.vector_store %arg7[%436, %c0_128, %c32_129], %439 {strides = array<i32>} : memref<8x8x64xf32, #tpu.memory_space<vmem>>, vector<1x8x32xf32>,
    %c8_i32_130 = arith.constant 8 : i32
    return
  }
}

module attributes {stable_mosaic.version = 11 : i64} {
  func.func @bilstm_layer_kernel(%arg0: memref<64x64xf32, #tpu.memory_space<vmem>>, %arg1: memref<64x128xf32, #tpu.memory_space<vmem>>, %arg2: memref<32x128xf32, #tpu.memory_space<vmem>>, %arg3: memref<1x128xf32, #tpu.memory_space<vmem>>, %arg4: memref<64x128xf32, #tpu.memory_space<vmem>>, %arg5: memref<32x128xf32, #tpu.memory_space<vmem>>, %arg6: memref<1x128xf32, #tpu.memory_space<vmem>>, %arg7: memref<8x8x64xf32, #tpu.memory_space<vmem>>, %arg8: memref<64x128xf32, #tpu.memory_space<vmem>>, %arg9: memref<64x128xf32, #tpu.memory_space<vmem>>) attributes {dimension_semantics = [], scalar_prefetch = 0 : i64, scratch_operands = 2 : i64, tpu.core_type = #tpu.core_type<tc>} {
    %c0 = arith.constant 0 : index
    %c0_0 = arith.constant 0 : index
    %0 = vector.load %arg0[%c0, %c0_0] : memref<64x64xf32, #tpu.memory_space<vmem>>, vector<64x64xf32>
    %c0_1 = arith.constant 0 : index
    %c0_2 = arith.constant 0 : index
    %1 = vector.load %arg1[%c0_1, %c0_2] : memref<64x128xf32, #tpu.memory_space<vmem>>, vector<64x128xf32>
    %cst = arith.constant dense<0.000000e+00> : vector<64x128xf32>
    %2 = tpu.matmul %0, %1, %cst {dimension_numbers = #tpu.dot_dimension_numbers<[1], [0], [0], [1], [0, 0, 1, 1], [], []>} : vector<64x64xf32>, vector<64x128xf32>, vector<64x128xf32> -> vector<64x128xf32>
    %c0_3 = arith.constant 0 : index
    %c0_4 = arith.constant 0 : index
    %3 = vector.load %arg3[%c0_3, %c0_4] : memref<1x128xf32, #tpu.memory_space<vmem>>, vector<1x128xf32>
    %4 = vector.broadcast %3 : vector<1x128xf32> to vector<64x128xf32>
    %5 = arith.addf %2, %4 : vector<64x128xf32>
    %c0_5 = arith.constant 0 : index
    %c0_6 = arith.constant 0 : index
    %6 = vector.load %arg8[%c0_5, %c0_6] : memref<64x128xf32, #tpu.memory_space<vmem>>, vector<64x128xf32>
    tpu.vector_store %arg8[%c0_5, %c0_6], %5 {strides = array<i32>} : memref<64x128xf32, #tpu.memory_space<vmem>>, vector<64x128xf32>,
    %c0_7 = arith.constant 0 : index
    %c0_8 = arith.constant 0 : index
    %7 = vector.load %arg4[%c0_7, %c0_8] : memref<64x128xf32, #tpu.memory_space<vmem>>, vector<64x128xf32>
    %cst_9 = arith.constant dense<0.000000e+00> : vector<64x128xf32>
    %8 = tpu.matmul %0, %7, %cst_9 {dimension_numbers = #tpu.dot_dimension_numbers<[1], [0], [0], [1], [0, 0, 1, 1], [], []>} : vector<64x64xf32>, vector<64x128xf32>, vector<64x128xf32> -> vector<64x128xf32>
    %c0_10 = arith.constant 0 : index
    %c0_11 = arith.constant 0 : index
    %9 = vector.load %arg6[%c0_10, %c0_11] : memref<1x128xf32, #tpu.memory_space<vmem>>, vector<1x128xf32>
    %10 = vector.broadcast %9 : vector<1x128xf32> to vector<64x128xf32>
    %11 = arith.addf %8, %10 : vector<64x128xf32>
    %c0_12 = arith.constant 0 : index
    %c0_13 = arith.constant 0 : index
    %12 = vector.load %arg9[%c0_12, %c0_13] : memref<64x128xf32, #tpu.memory_space<vmem>>, vector<64x128xf32>
    tpu.vector_store %arg9[%c0_12, %c0_13], %11 {strides = array<i32>} : memref<64x128xf32, #tpu.memory_space<vmem>>, vector<64x128xf32>,
    %c0_14 = arith.constant 0 : index
    %c0_15 = arith.constant 0 : index
    %13 = vector.load %arg2[%c0_14, %c0_15] : memref<32x128xf32, #tpu.memory_space<vmem>>, vector<32x128xf32>
    %c0_16 = arith.constant 0 : index
    %c0_17 = arith.constant 0 : index
    %14 = vector.load %arg5[%c0_16, %c0_17] : memref<32x128xf32, #tpu.memory_space<vmem>>, vector<32x128xf32>
    %cst_18 = arith.constant 0.000000e+00 : f32
    %15 = vector.broadcast %cst_18 : f32 to vector<8x32xf32>
    %c0_i32 = arith.constant 0 : i32
    %c8_i32 = arith.constant 8 : i32
    %16 = arith.muli %c0_i32, %c8_i32 : i32
    %17 = tpu.assume_multiple %16, 8 : i32
    %18 = arith.index_cast %17 : i32 to index
    %c0_19 = arith.constant 0 : index
    %19 = vector.load %arg8[%18, %c0_19] : memref<64x128xf32, #tpu.memory_space<vmem>>, vector<8x128xf32>
    %cst_20 = arith.constant dense<0.000000e+00> : vector<8x128xf32>
    %20 = tpu.matmul %15, %13, %cst_20 {dimension_numbers = #tpu.dot_dimension_numbers<[1], [0], [0], [1], [0, 0, 1, 1], [], []>} : vector<8x32xf32>, vector<32x128xf32>, vector<8x128xf32> -> vector<8x128xf32>
    %21 = arith.addf %19, %20 : vector<8x128xf32>
    %22 = vector.extract_strided_slice %21 {offsets = [0, 0], sizes = [8, 96], strides = [1, 1]} : vector<8x128xf32> to vector<8x96xf32>
    %23 = arith.negf %22 : vector<8x96xf32>
    %24 = math.exp %23 : vector<8x96xf32>
    %cst_21 = arith.constant 1.000000e+00 : f32
    %25 = vector.broadcast %cst_21 : f32 to vector<8x96xf32>
    %26 = arith.addf %25, %24 : vector<8x96xf32>
    %27 = arith.divf %25, %26 : vector<8x96xf32>
    %28 = vector.extract_strided_slice %21 {offsets = [0, 96], sizes = [8, 32], strides = [1, 1]} : vector<8x128xf32> to vector<8x32xf32>
    %29 = math.tanh %28 : vector<8x32xf32>
    %30 = vector.extract_strided_slice %27 {offsets = [0, 0], sizes = [8, 32], strides = [1, 1]} : vector<8x96xf32> to vector<8x32xf32>
    %31 = vector.extract_strided_slice %27 {offsets = [0, 32], sizes = [8, 32], strides = [1, 1]} : vector<8x96xf32> to vector<8x32xf32>
    %32 = vector.extract_strided_slice %27 {offsets = [0, 64], sizes = [8, 32], strides = [1, 1]} : vector<8x96xf32> to vector<8x32xf32>
    %33 = arith.mulf %31, %15 : vector<8x32xf32>
    %34 = arith.mulf %30, %29 : vector<8x32xf32>
    %35 = arith.addf %33, %34 : vector<8x32xf32>
    %36 = math.tanh %35 : vector<8x32xf32>
    %37 = arith.mulf %32, %36 : vector<8x32xf32>
    %38 = arith.index_cast %c0_i32 : i32 to index
    %c0_22 = arith.constant 0 : index
    %c0_23 = arith.constant 0 : index
    %39 = vector.load %arg7[%38, %c0_22, %c0_23] : memref<8x8x64xf32, #tpu.memory_space<vmem>>, vector<1x8x32xf32>
    %40 = vector.shape_cast %39 : vector<1x8x32xf32> to vector<8x32xf32>
    %41 = vector.shape_cast %37 : vector<8x32xf32> to vector<1x8x32xf32>
    tpu.vector_store %arg7[%38, %c0_22, %c0_23], %41 {strides = array<i32>} : memref<8x8x64xf32, #tpu.memory_space<vmem>>, vector<1x8x32xf32>,
    %c1_i32 = arith.constant 1 : i32
    %c8_i32_24 = arith.constant 8 : i32
    %42 = arith.muli %c1_i32, %c8_i32_24 : i32
    %43 = tpu.assume_multiple %42, 8 : i32
    %44 = arith.index_cast %43 : i32 to index
    %c0_25 = arith.constant 0 : index
    %45 = vector.load %arg8[%44, %c0_25] : memref<64x128xf32, #tpu.memory_space<vmem>>, vector<8x128xf32>
    %cst_26 = arith.constant dense<0.000000e+00> : vector<8x128xf32>
    %46 = tpu.matmul %37, %13, %cst_26 {dimension_numbers = #tpu.dot_dimension_numbers<[1], [0], [0], [1], [0, 0, 1, 1], [], []>} : vector<8x32xf32>, vector<32x128xf32>, vector<8x128xf32> -> vector<8x128xf32>
    %47 = arith.addf %45, %46 : vector<8x128xf32>
    %48 = vector.extract_strided_slice %47 {offsets = [0, 0], sizes = [8, 96], strides = [1, 1]} : vector<8x128xf32> to vector<8x96xf32>
    %49 = arith.negf %48 : vector<8x96xf32>
    %50 = math.exp %49 : vector<8x96xf32>
    %cst_27 = arith.constant 1.000000e+00 : f32
    %51 = vector.broadcast %cst_27 : f32 to vector<8x96xf32>
    %52 = arith.addf %51, %50 : vector<8x96xf32>
    %53 = arith.divf %51, %52 : vector<8x96xf32>
    %54 = vector.extract_strided_slice %47 {offsets = [0, 96], sizes = [8, 32], strides = [1, 1]} : vector<8x128xf32> to vector<8x32xf32>
    %55 = math.tanh %54 : vector<8x32xf32>
    %56 = vector.extract_strided_slice %53 {offsets = [0, 0], sizes = [8, 32], strides = [1, 1]} : vector<8x96xf32> to vector<8x32xf32>
    %57 = vector.extract_strided_slice %53 {offsets = [0, 32], sizes = [8, 32], strides = [1, 1]} : vector<8x96xf32> to vector<8x32xf32>
    %58 = vector.extract_strided_slice %53 {offsets = [0, 64], sizes = [8, 32], strides = [1, 1]} : vector<8x96xf32> to vector<8x32xf32>
    %59 = arith.mulf %57, %35 : vector<8x32xf32>
    %60 = arith.mulf %56, %55 : vector<8x32xf32>
    %61 = arith.addf %59, %60 : vector<8x32xf32>
    %62 = math.tanh %61 : vector<8x32xf32>
    %63 = arith.mulf %58, %62 : vector<8x32xf32>
    %64 = arith.index_cast %c1_i32 : i32 to index
    %c0_28 = arith.constant 0 : index
    %c0_29 = arith.constant 0 : index
    %65 = vector.load %arg7[%64, %c0_28, %c0_29] : memref<8x8x64xf32, #tpu.memory_space<vmem>>, vector<1x8x32xf32>
    %66 = vector.shape_cast %65 : vector<1x8x32xf32> to vector<8x32xf32>
    %67 = vector.shape_cast %63 : vector<8x32xf32> to vector<1x8x32xf32>
    tpu.vector_store %arg7[%64, %c0_28, %c0_29], %67 {strides = array<i32>} : memref<8x8x64xf32, #tpu.memory_space<vmem>>, vector<1x8x32xf32>,
    %c2_i32 = arith.constant 2 : i32
    %c8_i32_30 = arith.constant 8 : i32
    %68 = arith.muli %c2_i32, %c8_i32_30 : i32
    %69 = tpu.assume_multiple %68, 8 : i32
    %70 = arith.index_cast %69 : i32 to index
    %c0_31 = arith.constant 0 : index
    %71 = vector.load %arg8[%70, %c0_31] : memref<64x128xf32, #tpu.memory_space<vmem>>, vector<8x128xf32>
    %cst_32 = arith.constant dense<0.000000e+00> : vector<8x128xf32>
    %72 = tpu.matmul %63, %13, %cst_32 {dimension_numbers = #tpu.dot_dimension_numbers<[1], [0], [0], [1], [0, 0, 1, 1], [], []>} : vector<8x32xf32>, vector<32x128xf32>, vector<8x128xf32> -> vector<8x128xf32>
    %73 = arith.addf %71, %72 : vector<8x128xf32>
    %74 = vector.extract_strided_slice %73 {offsets = [0, 0], sizes = [8, 96], strides = [1, 1]} : vector<8x128xf32> to vector<8x96xf32>
    %75 = arith.negf %74 : vector<8x96xf32>
    %76 = math.exp %75 : vector<8x96xf32>
    %cst_33 = arith.constant 1.000000e+00 : f32
    %77 = vector.broadcast %cst_33 : f32 to vector<8x96xf32>
    %78 = arith.addf %77, %76 : vector<8x96xf32>
    %79 = arith.divf %77, %78 : vector<8x96xf32>
    %80 = vector.extract_strided_slice %73 {offsets = [0, 96], sizes = [8, 32], strides = [1, 1]} : vector<8x128xf32> to vector<8x32xf32>
    %81 = math.tanh %80 : vector<8x32xf32>
    %82 = vector.extract_strided_slice %79 {offsets = [0, 0], sizes = [8, 32], strides = [1, 1]} : vector<8x96xf32> to vector<8x32xf32>
    %83 = vector.extract_strided_slice %79 {offsets = [0, 32], sizes = [8, 32], strides = [1, 1]} : vector<8x96xf32> to vector<8x32xf32>
    %84 = vector.extract_strided_slice %79 {offsets = [0, 64], sizes = [8, 32], strides = [1, 1]} : vector<8x96xf32> to vector<8x32xf32>
    %85 = arith.mulf %83, %61 : vector<8x32xf32>
    %86 = arith.mulf %82, %81 : vector<8x32xf32>
    %87 = arith.addf %85, %86 : vector<8x32xf32>
    %88 = math.tanh %87 : vector<8x32xf32>
    %89 = arith.mulf %84, %88 : vector<8x32xf32>
    %90 = arith.index_cast %c2_i32 : i32 to index
    %c0_34 = arith.constant 0 : index
    %c0_35 = arith.constant 0 : index
    %91 = vector.load %arg7[%90, %c0_34, %c0_35] : memref<8x8x64xf32, #tpu.memory_space<vmem>>, vector<1x8x32xf32>
    %92 = vector.shape_cast %91 : vector<1x8x32xf32> to vector<8x32xf32>
    %93 = vector.shape_cast %89 : vector<8x32xf32> to vector<1x8x32xf32>
    tpu.vector_store %arg7[%90, %c0_34, %c0_35], %93 {strides = array<i32>} : memref<8x8x64xf32, #tpu.memory_space<vmem>>, vector<1x8x32xf32>,
    %c3_i32 = arith.constant 3 : i32
    %c8_i32_36 = arith.constant 8 : i32
    %94 = arith.muli %c3_i32, %c8_i32_36 : i32
    %95 = tpu.assume_multiple %94, 8 : i32
    %96 = arith.index_cast %95 : i32 to index
    %c0_37 = arith.constant 0 : index
    %97 = vector.load %arg8[%96, %c0_37] : memref<64x128xf32, #tpu.memory_space<vmem>>, vector<8x128xf32>
    %cst_38 = arith.constant dense<0.000000e+00> : vector<8x128xf32>
    %98 = tpu.matmul %89, %13, %cst_38 {dimension_numbers = #tpu.dot_dimension_numbers<[1], [0], [0], [1], [0, 0, 1, 1], [], []>} : vector<8x32xf32>, vector<32x128xf32>, vector<8x128xf32> -> vector<8x128xf32>
    %99 = arith.addf %97, %98 : vector<8x128xf32>
    %100 = vector.extract_strided_slice %99 {offsets = [0, 0], sizes = [8, 96], strides = [1, 1]} : vector<8x128xf32> to vector<8x96xf32>
    %101 = arith.negf %100 : vector<8x96xf32>
    %102 = math.exp %101 : vector<8x96xf32>
    %cst_39 = arith.constant 1.000000e+00 : f32
    %103 = vector.broadcast %cst_39 : f32 to vector<8x96xf32>
    %104 = arith.addf %103, %102 : vector<8x96xf32>
    %105 = arith.divf %103, %104 : vector<8x96xf32>
    %106 = vector.extract_strided_slice %99 {offsets = [0, 96], sizes = [8, 32], strides = [1, 1]} : vector<8x128xf32> to vector<8x32xf32>
    %107 = math.tanh %106 : vector<8x32xf32>
    %108 = vector.extract_strided_slice %105 {offsets = [0, 0], sizes = [8, 32], strides = [1, 1]} : vector<8x96xf32> to vector<8x32xf32>
    %109 = vector.extract_strided_slice %105 {offsets = [0, 32], sizes = [8, 32], strides = [1, 1]} : vector<8x96xf32> to vector<8x32xf32>
    %110 = vector.extract_strided_slice %105 {offsets = [0, 64], sizes = [8, 32], strides = [1, 1]} : vector<8x96xf32> to vector<8x32xf32>
    %111 = arith.mulf %109, %87 : vector<8x32xf32>
    %112 = arith.mulf %108, %107 : vector<8x32xf32>
    %113 = arith.addf %111, %112 : vector<8x32xf32>
    %114 = math.tanh %113 : vector<8x32xf32>
    %115 = arith.mulf %110, %114 : vector<8x32xf32>
    %116 = arith.index_cast %c3_i32 : i32 to index
    %c0_40 = arith.constant 0 : index
    %c0_41 = arith.constant 0 : index
    %117 = vector.load %arg7[%116, %c0_40, %c0_41] : memref<8x8x64xf32, #tpu.memory_space<vmem>>, vector<1x8x32xf32>
    %118 = vector.shape_cast %117 : vector<1x8x32xf32> to vector<8x32xf32>
    %119 = vector.shape_cast %115 : vector<8x32xf32> to vector<1x8x32xf32>
    tpu.vector_store %arg7[%116, %c0_40, %c0_41], %119 {strides = array<i32>} : memref<8x8x64xf32, #tpu.memory_space<vmem>>, vector<1x8x32xf32>,
    %c4_i32 = arith.constant 4 : i32
    %c8_i32_42 = arith.constant 8 : i32
    %120 = arith.muli %c4_i32, %c8_i32_42 : i32
    %121 = tpu.assume_multiple %120, 8 : i32
    %122 = arith.index_cast %121 : i32 to index
    %c0_43 = arith.constant 0 : index
    %123 = vector.load %arg8[%122, %c0_43] : memref<64x128xf32, #tpu.memory_space<vmem>>, vector<8x128xf32>
    %cst_44 = arith.constant dense<0.000000e+00> : vector<8x128xf32>
    %124 = tpu.matmul %115, %13, %cst_44 {dimension_numbers = #tpu.dot_dimension_numbers<[1], [0], [0], [1], [0, 0, 1, 1], [], []>} : vector<8x32xf32>, vector<32x128xf32>, vector<8x128xf32> -> vector<8x128xf32>
    %125 = arith.addf %123, %124 : vector<8x128xf32>
    %126 = vector.extract_strided_slice %125 {offsets = [0, 0], sizes = [8, 96], strides = [1, 1]} : vector<8x128xf32> to vector<8x96xf32>
    %127 = arith.negf %126 : vector<8x96xf32>
    %128 = math.exp %127 : vector<8x96xf32>
    %cst_45 = arith.constant 1.000000e+00 : f32
    %129 = vector.broadcast %cst_45 : f32 to vector<8x96xf32>
    %130 = arith.addf %129, %128 : vector<8x96xf32>
    %131 = arith.divf %129, %130 : vector<8x96xf32>
    %132 = vector.extract_strided_slice %125 {offsets = [0, 96], sizes = [8, 32], strides = [1, 1]} : vector<8x128xf32> to vector<8x32xf32>
    %133 = math.tanh %132 : vector<8x32xf32>
    %134 = vector.extract_strided_slice %131 {offsets = [0, 0], sizes = [8, 32], strides = [1, 1]} : vector<8x96xf32> to vector<8x32xf32>
    %135 = vector.extract_strided_slice %131 {offsets = [0, 32], sizes = [8, 32], strides = [1, 1]} : vector<8x96xf32> to vector<8x32xf32>
    %136 = vector.extract_strided_slice %131 {offsets = [0, 64], sizes = [8, 32], strides = [1, 1]} : vector<8x96xf32> to vector<8x32xf32>
    %137 = arith.mulf %135, %113 : vector<8x32xf32>
    %138 = arith.mulf %134, %133 : vector<8x32xf32>
    %139 = arith.addf %137, %138 : vector<8x32xf32>
    %140 = math.tanh %139 : vector<8x32xf32>
    %141 = arith.mulf %136, %140 : vector<8x32xf32>
    %142 = arith.index_cast %c4_i32 : i32 to index
    %c0_46 = arith.constant 0 : index
    %c0_47 = arith.constant 0 : index
    %143 = vector.load %arg7[%142, %c0_46, %c0_47] : memref<8x8x64xf32, #tpu.memory_space<vmem>>, vector<1x8x32xf32>
    %144 = vector.shape_cast %143 : vector<1x8x32xf32> to vector<8x32xf32>
    %145 = vector.shape_cast %141 : vector<8x32xf32> to vector<1x8x32xf32>
    tpu.vector_store %arg7[%142, %c0_46, %c0_47], %145 {strides = array<i32>} : memref<8x8x64xf32, #tpu.memory_space<vmem>>, vector<1x8x32xf32>,
    %c5_i32 = arith.constant 5 : i32
    %c8_i32_48 = arith.constant 8 : i32
    %146 = arith.muli %c5_i32, %c8_i32_48 : i32
    %147 = tpu.assume_multiple %146, 8 : i32
    %148 = arith.index_cast %147 : i32 to index
    %c0_49 = arith.constant 0 : index
    %149 = vector.load %arg8[%148, %c0_49] : memref<64x128xf32, #tpu.memory_space<vmem>>, vector<8x128xf32>
    %cst_50 = arith.constant dense<0.000000e+00> : vector<8x128xf32>
    %150 = tpu.matmul %141, %13, %cst_50 {dimension_numbers = #tpu.dot_dimension_numbers<[1], [0], [0], [1], [0, 0, 1, 1], [], []>} : vector<8x32xf32>, vector<32x128xf32>, vector<8x128xf32> -> vector<8x128xf32>
    %151 = arith.addf %149, %150 : vector<8x128xf32>
    %152 = vector.extract_strided_slice %151 {offsets = [0, 0], sizes = [8, 96], strides = [1, 1]} : vector<8x128xf32> to vector<8x96xf32>
    %153 = arith.negf %152 : vector<8x96xf32>
    %154 = math.exp %153 : vector<8x96xf32>
    %cst_51 = arith.constant 1.000000e+00 : f32
    %155 = vector.broadcast %cst_51 : f32 to vector<8x96xf32>
    %156 = arith.addf %155, %154 : vector<8x96xf32>
    %157 = arith.divf %155, %156 : vector<8x96xf32>
    %158 = vector.extract_strided_slice %151 {offsets = [0, 96], sizes = [8, 32], strides = [1, 1]} : vector<8x128xf32> to vector<8x32xf32>
    %159 = math.tanh %158 : vector<8x32xf32>
    %160 = vector.extract_strided_slice %157 {offsets = [0, 0], sizes = [8, 32], strides = [1, 1]} : vector<8x96xf32> to vector<8x32xf32>
    %161 = vector.extract_strided_slice %157 {offsets = [0, 32], sizes = [8, 32], strides = [1, 1]} : vector<8x96xf32> to vector<8x32xf32>
    %162 = vector.extract_strided_slice %157 {offsets = [0, 64], sizes = [8, 32], strides = [1, 1]} : vector<8x96xf32> to vector<8x32xf32>
    %163 = arith.mulf %161, %139 : vector<8x32xf32>
    %164 = arith.mulf %160, %159 : vector<8x32xf32>
    %165 = arith.addf %163, %164 : vector<8x32xf32>
    %166 = math.tanh %165 : vector<8x32xf32>
    %167 = arith.mulf %162, %166 : vector<8x32xf32>
    %168 = arith.index_cast %c5_i32 : i32 to index
    %c0_52 = arith.constant 0 : index
    %c0_53 = arith.constant 0 : index
    %169 = vector.load %arg7[%168, %c0_52, %c0_53] : memref<8x8x64xf32, #tpu.memory_space<vmem>>, vector<1x8x32xf32>
    %170 = vector.shape_cast %169 : vector<1x8x32xf32> to vector<8x32xf32>
    %171 = vector.shape_cast %167 : vector<8x32xf32> to vector<1x8x32xf32>
    tpu.vector_store %arg7[%168, %c0_52, %c0_53], %171 {strides = array<i32>} : memref<8x8x64xf32, #tpu.memory_space<vmem>>, vector<1x8x32xf32>,
    %c6_i32 = arith.constant 6 : i32
    %c8_i32_54 = arith.constant 8 : i32
    %172 = arith.muli %c6_i32, %c8_i32_54 : i32
    %173 = tpu.assume_multiple %172, 8 : i32
    %174 = arith.index_cast %173 : i32 to index
    %c0_55 = arith.constant 0 : index
    %175 = vector.load %arg8[%174, %c0_55] : memref<64x128xf32, #tpu.memory_space<vmem>>, vector<8x128xf32>
    %cst_56 = arith.constant dense<0.000000e+00> : vector<8x128xf32>
    %176 = tpu.matmul %167, %13, %cst_56 {dimension_numbers = #tpu.dot_dimension_numbers<[1], [0], [0], [1], [0, 0, 1, 1], [], []>} : vector<8x32xf32>, vector<32x128xf32>, vector<8x128xf32> -> vector<8x128xf32>
    %177 = arith.addf %175, %176 : vector<8x128xf32>
    %178 = vector.extract_strided_slice %177 {offsets = [0, 0], sizes = [8, 96], strides = [1, 1]} : vector<8x128xf32> to vector<8x96xf32>
    %179 = arith.negf %178 : vector<8x96xf32>
    %180 = math.exp %179 : vector<8x96xf32>
    %cst_57 = arith.constant 1.000000e+00 : f32
    %181 = vector.broadcast %cst_57 : f32 to vector<8x96xf32>
    %182 = arith.addf %181, %180 : vector<8x96xf32>
    %183 = arith.divf %181, %182 : vector<8x96xf32>
    %184 = vector.extract_strided_slice %177 {offsets = [0, 96], sizes = [8, 32], strides = [1, 1]} : vector<8x128xf32> to vector<8x32xf32>
    %185 = math.tanh %184 : vector<8x32xf32>
    %186 = vector.extract_strided_slice %183 {offsets = [0, 0], sizes = [8, 32], strides = [1, 1]} : vector<8x96xf32> to vector<8x32xf32>
    %187 = vector.extract_strided_slice %183 {offsets = [0, 32], sizes = [8, 32], strides = [1, 1]} : vector<8x96xf32> to vector<8x32xf32>
    %188 = vector.extract_strided_slice %183 {offsets = [0, 64], sizes = [8, 32], strides = [1, 1]} : vector<8x96xf32> to vector<8x32xf32>
    %189 = arith.mulf %187, %165 : vector<8x32xf32>
    %190 = arith.mulf %186, %185 : vector<8x32xf32>
    %191 = arith.addf %189, %190 : vector<8x32xf32>
    %192 = math.tanh %191 : vector<8x32xf32>
    %193 = arith.mulf %188, %192 : vector<8x32xf32>
    %194 = arith.index_cast %c6_i32 : i32 to index
    %c0_58 = arith.constant 0 : index
    %c0_59 = arith.constant 0 : index
    %195 = vector.load %arg7[%194, %c0_58, %c0_59] : memref<8x8x64xf32, #tpu.memory_space<vmem>>, vector<1x8x32xf32>
    %196 = vector.shape_cast %195 : vector<1x8x32xf32> to vector<8x32xf32>
    %197 = vector.shape_cast %193 : vector<8x32xf32> to vector<1x8x32xf32>
    tpu.vector_store %arg7[%194, %c0_58, %c0_59], %197 {strides = array<i32>} : memref<8x8x64xf32, #tpu.memory_space<vmem>>, vector<1x8x32xf32>,
    %c7_i32 = arith.constant 7 : i32
    %c8_i32_60 = arith.constant 8 : i32
    %198 = arith.muli %c7_i32, %c8_i32_60 : i32
    %199 = tpu.assume_multiple %198, 8 : i32
    %200 = arith.index_cast %199 : i32 to index
    %c0_61 = arith.constant 0 : index
    %201 = vector.load %arg8[%200, %c0_61] : memref<64x128xf32, #tpu.memory_space<vmem>>, vector<8x128xf32>
    %cst_62 = arith.constant dense<0.000000e+00> : vector<8x128xf32>
    %202 = tpu.matmul %193, %13, %cst_62 {dimension_numbers = #tpu.dot_dimension_numbers<[1], [0], [0], [1], [0, 0, 1, 1], [], []>} : vector<8x32xf32>, vector<32x128xf32>, vector<8x128xf32> -> vector<8x128xf32>
    %203 = arith.addf %201, %202 : vector<8x128xf32>
    %204 = vector.extract_strided_slice %203 {offsets = [0, 0], sizes = [8, 96], strides = [1, 1]} : vector<8x128xf32> to vector<8x96xf32>
    %205 = arith.negf %204 : vector<8x96xf32>
    %206 = math.exp %205 : vector<8x96xf32>
    %cst_63 = arith.constant 1.000000e+00 : f32
    %207 = vector.broadcast %cst_63 : f32 to vector<8x96xf32>
    %208 = arith.addf %207, %206 : vector<8x96xf32>
    %209 = arith.divf %207, %208 : vector<8x96xf32>
    %210 = vector.extract_strided_slice %203 {offsets = [0, 96], sizes = [8, 32], strides = [1, 1]} : vector<8x128xf32> to vector<8x32xf32>
    %211 = math.tanh %210 : vector<8x32xf32>
    %212 = vector.extract_strided_slice %209 {offsets = [0, 0], sizes = [8, 32], strides = [1, 1]} : vector<8x96xf32> to vector<8x32xf32>
    %213 = vector.extract_strided_slice %209 {offsets = [0, 32], sizes = [8, 32], strides = [1, 1]} : vector<8x96xf32> to vector<8x32xf32>
    %214 = vector.extract_strided_slice %209 {offsets = [0, 64], sizes = [8, 32], strides = [1, 1]} : vector<8x96xf32> to vector<8x32xf32>
    %215 = arith.mulf %213, %191 : vector<8x32xf32>
    %216 = arith.mulf %212, %211 : vector<8x32xf32>
    %217 = arith.addf %215, %216 : vector<8x32xf32>
    %218 = math.tanh %217 : vector<8x32xf32>
    %219 = arith.mulf %214, %218 : vector<8x32xf32>
    %220 = arith.index_cast %c7_i32 : i32 to index
    %c0_64 = arith.constant 0 : index
    %c0_65 = arith.constant 0 : index
    %221 = vector.load %arg7[%220, %c0_64, %c0_65] : memref<8x8x64xf32, #tpu.memory_space<vmem>>, vector<1x8x32xf32>
    %222 = vector.shape_cast %221 : vector<1x8x32xf32> to vector<8x32xf32>
    %223 = vector.shape_cast %219 : vector<8x32xf32> to vector<1x8x32xf32>
    tpu.vector_store %arg7[%220, %c0_64, %c0_65], %223 {strides = array<i32>} : memref<8x8x64xf32, #tpu.memory_space<vmem>>, vector<1x8x32xf32>,
    %c8_i32_66 = arith.constant 8 : i32
    %c0_i32_67 = arith.constant 0 : i32
    %c7_i32_68 = arith.constant 7 : i32
    %224 = arith.subi %c7_i32_68, %c0_i32_67 : i32
    %c8_i32_69 = arith.constant 8 : i32
    %225 = arith.muli %224, %c8_i32_69 : i32
    %226 = tpu.assume_multiple %225, 8 : i32
    %227 = arith.index_cast %226 : i32 to index
    %c0_70 = arith.constant 0 : index
    %228 = vector.load %arg9[%227, %c0_70] : memref<64x128xf32, #tpu.memory_space<vmem>>, vector<8x128xf32>
    %cst_71 = arith.constant dense<0.000000e+00> : vector<8x128xf32>
    %229 = tpu.matmul %15, %14, %cst_71 {dimension_numbers = #tpu.dot_dimension_numbers<[1], [0], [0], [1], [0, 0, 1, 1], [], []>} : vector<8x32xf32>, vector<32x128xf32>, vector<8x128xf32> -> vector<8x128xf32>
    %230 = arith.addf %228, %229 : vector<8x128xf32>
    %231 = vector.extract_strided_slice %230 {offsets = [0, 0], sizes = [8, 96], strides = [1, 1]} : vector<8x128xf32> to vector<8x96xf32>
    %232 = arith.negf %231 : vector<8x96xf32>
    %233 = math.exp %232 : vector<8x96xf32>
    %cst_72 = arith.constant 1.000000e+00 : f32
    %234 = vector.broadcast %cst_72 : f32 to vector<8x96xf32>
    %235 = arith.addf %234, %233 : vector<8x96xf32>
    %236 = arith.divf %234, %235 : vector<8x96xf32>
    %237 = vector.extract_strided_slice %230 {offsets = [0, 96], sizes = [8, 32], strides = [1, 1]} : vector<8x128xf32> to vector<8x32xf32>
    %238 = math.tanh %237 : vector<8x32xf32>
    %239 = vector.extract_strided_slice %236 {offsets = [0, 0], sizes = [8, 32], strides = [1, 1]} : vector<8x96xf32> to vector<8x32xf32>
    %240 = vector.extract_strided_slice %236 {offsets = [0, 32], sizes = [8, 32], strides = [1, 1]} : vector<8x96xf32> to vector<8x32xf32>
    %241 = vector.extract_strided_slice %236 {offsets = [0, 64], sizes = [8, 32], strides = [1, 1]} : vector<8x96xf32> to vector<8x32xf32>
    %242 = arith.mulf %240, %15 : vector<8x32xf32>
    %243 = arith.mulf %239, %238 : vector<8x32xf32>
    %244 = arith.addf %242, %243 : vector<8x32xf32>
    %245 = math.tanh %244 : vector<8x32xf32>
    %246 = arith.mulf %241, %245 : vector<8x32xf32>
    %247 = arith.index_cast %224 : i32 to index
    %c0_73 = arith.constant 0 : index
    %c32 = arith.constant 32 : index
    %248 = vector.load %arg7[%247, %c0_73, %c32] : memref<8x8x64xf32, #tpu.memory_space<vmem>>, vector<1x8x32xf32>
    %249 = vector.shape_cast %248 : vector<1x8x32xf32> to vector<8x32xf32>
    %250 = vector.shape_cast %246 : vector<8x32xf32> to vector<1x8x32xf32>
    tpu.vector_store %arg7[%247, %c0_73, %c32], %250 {strides = array<i32>} : memref<8x8x64xf32, #tpu.memory_space<vmem>>, vector<1x8x32xf32>,
    %c1_i32_74 = arith.constant 1 : i32
    %c7_i32_75 = arith.constant 7 : i32
    %251 = arith.subi %c7_i32_75, %c1_i32_74 : i32
    %c8_i32_76 = arith.constant 8 : i32
    %252 = arith.muli %251, %c8_i32_76 : i32
    %253 = tpu.assume_multiple %252, 8 : i32
    %254 = arith.index_cast %253 : i32 to index
    %c0_77 = arith.constant 0 : index
    %255 = vector.load %arg9[%254, %c0_77] : memref<64x128xf32, #tpu.memory_space<vmem>>, vector<8x128xf32>
    %cst_78 = arith.constant dense<0.000000e+00> : vector<8x128xf32>
    %256 = tpu.matmul %246, %14, %cst_78 {dimension_numbers = #tpu.dot_dimension_numbers<[1], [0], [0], [1], [0, 0, 1, 1], [], []>} : vector<8x32xf32>, vector<32x128xf32>, vector<8x128xf32> -> vector<8x128xf32>
    %257 = arith.addf %255, %256 : vector<8x128xf32>
    %258 = vector.extract_strided_slice %257 {offsets = [0, 0], sizes = [8, 96], strides = [1, 1]} : vector<8x128xf32> to vector<8x96xf32>
    %259 = arith.negf %258 : vector<8x96xf32>
    %260 = math.exp %259 : vector<8x96xf32>
    %cst_79 = arith.constant 1.000000e+00 : f32
    %261 = vector.broadcast %cst_79 : f32 to vector<8x96xf32>
    %262 = arith.addf %261, %260 : vector<8x96xf32>
    %263 = arith.divf %261, %262 : vector<8x96xf32>
    %264 = vector.extract_strided_slice %257 {offsets = [0, 96], sizes = [8, 32], strides = [1, 1]} : vector<8x128xf32> to vector<8x32xf32>
    %265 = math.tanh %264 : vector<8x32xf32>
    %266 = vector.extract_strided_slice %263 {offsets = [0, 0], sizes = [8, 32], strides = [1, 1]} : vector<8x96xf32> to vector<8x32xf32>
    %267 = vector.extract_strided_slice %263 {offsets = [0, 32], sizes = [8, 32], strides = [1, 1]} : vector<8x96xf32> to vector<8x32xf32>
    %268 = vector.extract_strided_slice %263 {offsets = [0, 64], sizes = [8, 32], strides = [1, 1]} : vector<8x96xf32> to vector<8x32xf32>
    %269 = arith.mulf %267, %244 : vector<8x32xf32>
    %270 = arith.mulf %266, %265 : vector<8x32xf32>
    %271 = arith.addf %269, %270 : vector<8x32xf32>
    %272 = math.tanh %271 : vector<8x32xf32>
    %273 = arith.mulf %268, %272 : vector<8x32xf32>
    %274 = arith.index_cast %251 : i32 to index
    %c0_80 = arith.constant 0 : index
    %c32_81 = arith.constant 32 : index
    %275 = vector.load %arg7[%274, %c0_80, %c32_81] : memref<8x8x64xf32, #tpu.memory_space<vmem>>, vector<1x8x32xf32>
    %276 = vector.shape_cast %275 : vector<1x8x32xf32> to vector<8x32xf32>
    %277 = vector.shape_cast %273 : vector<8x32xf32> to vector<1x8x32xf32>
    tpu.vector_store %arg7[%274, %c0_80, %c32_81], %277 {strides = array<i32>} : memref<8x8x64xf32, #tpu.memory_space<vmem>>, vector<1x8x32xf32>,
    %c2_i32_82 = arith.constant 2 : i32
    %c7_i32_83 = arith.constant 7 : i32
    %278 = arith.subi %c7_i32_83, %c2_i32_82 : i32
    %c8_i32_84 = arith.constant 8 : i32
    %279 = arith.muli %278, %c8_i32_84 : i32
    %280 = tpu.assume_multiple %279, 8 : i32
    %281 = arith.index_cast %280 : i32 to index
    %c0_85 = arith.constant 0 : index
    %282 = vector.load %arg9[%281, %c0_85] : memref<64x128xf32, #tpu.memory_space<vmem>>, vector<8x128xf32>
    %cst_86 = arith.constant dense<0.000000e+00> : vector<8x128xf32>
    %283 = tpu.matmul %273, %14, %cst_86 {dimension_numbers = #tpu.dot_dimension_numbers<[1], [0], [0], [1], [0, 0, 1, 1], [], []>} : vector<8x32xf32>, vector<32x128xf32>, vector<8x128xf32> -> vector<8x128xf32>
    %284 = arith.addf %282, %283 : vector<8x128xf32>
    %285 = vector.extract_strided_slice %284 {offsets = [0, 0], sizes = [8, 96], strides = [1, 1]} : vector<8x128xf32> to vector<8x96xf32>
    %286 = arith.negf %285 : vector<8x96xf32>
    %287 = math.exp %286 : vector<8x96xf32>
    %cst_87 = arith.constant 1.000000e+00 : f32
    %288 = vector.broadcast %cst_87 : f32 to vector<8x96xf32>
    %289 = arith.addf %288, %287 : vector<8x96xf32>
    %290 = arith.divf %288, %289 : vector<8x96xf32>
    %291 = vector.extract_strided_slice %284 {offsets = [0, 96], sizes = [8, 32], strides = [1, 1]} : vector<8x128xf32> to vector<8x32xf32>
    %292 = math.tanh %291 : vector<8x32xf32>
    %293 = vector.extract_strided_slice %290 {offsets = [0, 0], sizes = [8, 32], strides = [1, 1]} : vector<8x96xf32> to vector<8x32xf32>
    %294 = vector.extract_strided_slice %290 {offsets = [0, 32], sizes = [8, 32], strides = [1, 1]} : vector<8x96xf32> to vector<8x32xf32>
    %295 = vector.extract_strided_slice %290 {offsets = [0, 64], sizes = [8, 32], strides = [1, 1]} : vector<8x96xf32> to vector<8x32xf32>
    %296 = arith.mulf %294, %271 : vector<8x32xf32>
    %297 = arith.mulf %293, %292 : vector<8x32xf32>
    %298 = arith.addf %296, %297 : vector<8x32xf32>
    %299 = math.tanh %298 : vector<8x32xf32>
    %300 = arith.mulf %295, %299 : vector<8x32xf32>
    %301 = arith.index_cast %278 : i32 to index
    %c0_88 = arith.constant 0 : index
    %c32_89 = arith.constant 32 : index
    %302 = vector.load %arg7[%301, %c0_88, %c32_89] : memref<8x8x64xf32, #tpu.memory_space<vmem>>, vector<1x8x32xf32>
    %303 = vector.shape_cast %302 : vector<1x8x32xf32> to vector<8x32xf32>
    %304 = vector.shape_cast %300 : vector<8x32xf32> to vector<1x8x32xf32>
    tpu.vector_store %arg7[%301, %c0_88, %c32_89], %304 {strides = array<i32>} : memref<8x8x64xf32, #tpu.memory_space<vmem>>, vector<1x8x32xf32>,
    %c3_i32_90 = arith.constant 3 : i32
    %c7_i32_91 = arith.constant 7 : i32
    %305 = arith.subi %c7_i32_91, %c3_i32_90 : i32
    %c8_i32_92 = arith.constant 8 : i32
    %306 = arith.muli %305, %c8_i32_92 : i32
    %307 = tpu.assume_multiple %306, 8 : i32
    %308 = arith.index_cast %307 : i32 to index
    %c0_93 = arith.constant 0 : index
    %309 = vector.load %arg9[%308, %c0_93] : memref<64x128xf32, #tpu.memory_space<vmem>>, vector<8x128xf32>
    %cst_94 = arith.constant dense<0.000000e+00> : vector<8x128xf32>
    %310 = tpu.matmul %300, %14, %cst_94 {dimension_numbers = #tpu.dot_dimension_numbers<[1], [0], [0], [1], [0, 0, 1, 1], [], []>} : vector<8x32xf32>, vector<32x128xf32>, vector<8x128xf32> -> vector<8x128xf32>
    %311 = arith.addf %309, %310 : vector<8x128xf32>
    %312 = vector.extract_strided_slice %311 {offsets = [0, 0], sizes = [8, 96], strides = [1, 1]} : vector<8x128xf32> to vector<8x96xf32>
    %313 = arith.negf %312 : vector<8x96xf32>
    %314 = math.exp %313 : vector<8x96xf32>
    %cst_95 = arith.constant 1.000000e+00 : f32
    %315 = vector.broadcast %cst_95 : f32 to vector<8x96xf32>
    %316 = arith.addf %315, %314 : vector<8x96xf32>
    %317 = arith.divf %315, %316 : vector<8x96xf32>
    %318 = vector.extract_strided_slice %311 {offsets = [0, 96], sizes = [8, 32], strides = [1, 1]} : vector<8x128xf32> to vector<8x32xf32>
    %319 = math.tanh %318 : vector<8x32xf32>
    %320 = vector.extract_strided_slice %317 {offsets = [0, 0], sizes = [8, 32], strides = [1, 1]} : vector<8x96xf32> to vector<8x32xf32>
    %321 = vector.extract_strided_slice %317 {offsets = [0, 32], sizes = [8, 32], strides = [1, 1]} : vector<8x96xf32> to vector<8x32xf32>
    %322 = vector.extract_strided_slice %317 {offsets = [0, 64], sizes = [8, 32], strides = [1, 1]} : vector<8x96xf32> to vector<8x32xf32>
    %323 = arith.mulf %321, %298 : vector<8x32xf32>
    %324 = arith.mulf %320, %319 : vector<8x32xf32>
    %325 = arith.addf %323, %324 : vector<8x32xf32>
    %326 = math.tanh %325 : vector<8x32xf32>
    %327 = arith.mulf %322, %326 : vector<8x32xf32>
    %328 = arith.index_cast %305 : i32 to index
    %c0_96 = arith.constant 0 : index
    %c32_97 = arith.constant 32 : index
    %329 = vector.load %arg7[%328, %c0_96, %c32_97] : memref<8x8x64xf32, #tpu.memory_space<vmem>>, vector<1x8x32xf32>
    %330 = vector.shape_cast %329 : vector<1x8x32xf32> to vector<8x32xf32>
    %331 = vector.shape_cast %327 : vector<8x32xf32> to vector<1x8x32xf32>
    tpu.vector_store %arg7[%328, %c0_96, %c32_97], %331 {strides = array<i32>} : memref<8x8x64xf32, #tpu.memory_space<vmem>>, vector<1x8x32xf32>,
    %c4_i32_98 = arith.constant 4 : i32
    %c7_i32_99 = arith.constant 7 : i32
    %332 = arith.subi %c7_i32_99, %c4_i32_98 : i32
    %c8_i32_100 = arith.constant 8 : i32
    %333 = arith.muli %332, %c8_i32_100 : i32
    %334 = tpu.assume_multiple %333, 8 : i32
    %335 = arith.index_cast %334 : i32 to index
    %c0_101 = arith.constant 0 : index
    %336 = vector.load %arg9[%335, %c0_101] : memref<64x128xf32, #tpu.memory_space<vmem>>, vector<8x128xf32>
    %cst_102 = arith.constant dense<0.000000e+00> : vector<8x128xf32>
    %337 = tpu.matmul %327, %14, %cst_102 {dimension_numbers = #tpu.dot_dimension_numbers<[1], [0], [0], [1], [0, 0, 1, 1], [], []>} : vector<8x32xf32>, vector<32x128xf32>, vector<8x128xf32> -> vector<8x128xf32>
    %338 = arith.addf %336, %337 : vector<8x128xf32>
    %339 = vector.extract_strided_slice %338 {offsets = [0, 0], sizes = [8, 96], strides = [1, 1]} : vector<8x128xf32> to vector<8x96xf32>
    %340 = arith.negf %339 : vector<8x96xf32>
    %341 = math.exp %340 : vector<8x96xf32>
    %cst_103 = arith.constant 1.000000e+00 : f32
    %342 = vector.broadcast %cst_103 : f32 to vector<8x96xf32>
    %343 = arith.addf %342, %341 : vector<8x96xf32>
    %344 = arith.divf %342, %343 : vector<8x96xf32>
    %345 = vector.extract_strided_slice %338 {offsets = [0, 96], sizes = [8, 32], strides = [1, 1]} : vector<8x128xf32> to vector<8x32xf32>
    %346 = math.tanh %345 : vector<8x32xf32>
    %347 = vector.extract_strided_slice %344 {offsets = [0, 0], sizes = [8, 32], strides = [1, 1]} : vector<8x96xf32> to vector<8x32xf32>
    %348 = vector.extract_strided_slice %344 {offsets = [0, 32], sizes = [8, 32], strides = [1, 1]} : vector<8x96xf32> to vector<8x32xf32>
    %349 = vector.extract_strided_slice %344 {offsets = [0, 64], sizes = [8, 32], strides = [1, 1]} : vector<8x96xf32> to vector<8x32xf32>
    %350 = arith.mulf %348, %325 : vector<8x32xf32>
    %351 = arith.mulf %347, %346 : vector<8x32xf32>
    %352 = arith.addf %350, %351 : vector<8x32xf32>
    %353 = math.tanh %352 : vector<8x32xf32>
    %354 = arith.mulf %349, %353 : vector<8x32xf32>
    %355 = arith.index_cast %332 : i32 to index
    %c0_104 = arith.constant 0 : index
    %c32_105 = arith.constant 32 : index
    %356 = vector.load %arg7[%355, %c0_104, %c32_105] : memref<8x8x64xf32, #tpu.memory_space<vmem>>, vector<1x8x32xf32>
    %357 = vector.shape_cast %356 : vector<1x8x32xf32> to vector<8x32xf32>
    %358 = vector.shape_cast %354 : vector<8x32xf32> to vector<1x8x32xf32>
    tpu.vector_store %arg7[%355, %c0_104, %c32_105], %358 {strides = array<i32>} : memref<8x8x64xf32, #tpu.memory_space<vmem>>, vector<1x8x32xf32>,
    %c5_i32_106 = arith.constant 5 : i32
    %c7_i32_107 = arith.constant 7 : i32
    %359 = arith.subi %c7_i32_107, %c5_i32_106 : i32
    %c8_i32_108 = arith.constant 8 : i32
    %360 = arith.muli %359, %c8_i32_108 : i32
    %361 = tpu.assume_multiple %360, 8 : i32
    %362 = arith.index_cast %361 : i32 to index
    %c0_109 = arith.constant 0 : index
    %363 = vector.load %arg9[%362, %c0_109] : memref<64x128xf32, #tpu.memory_space<vmem>>, vector<8x128xf32>
    %cst_110 = arith.constant dense<0.000000e+00> : vector<8x128xf32>
    %364 = tpu.matmul %354, %14, %cst_110 {dimension_numbers = #tpu.dot_dimension_numbers<[1], [0], [0], [1], [0, 0, 1, 1], [], []>} : vector<8x32xf32>, vector<32x128xf32>, vector<8x128xf32> -> vector<8x128xf32>
    %365 = arith.addf %363, %364 : vector<8x128xf32>
    %366 = vector.extract_strided_slice %365 {offsets = [0, 0], sizes = [8, 96], strides = [1, 1]} : vector<8x128xf32> to vector<8x96xf32>
    %367 = arith.negf %366 : vector<8x96xf32>
    %368 = math.exp %367 : vector<8x96xf32>
    %cst_111 = arith.constant 1.000000e+00 : f32
    %369 = vector.broadcast %cst_111 : f32 to vector<8x96xf32>
    %370 = arith.addf %369, %368 : vector<8x96xf32>
    %371 = arith.divf %369, %370 : vector<8x96xf32>
    %372 = vector.extract_strided_slice %365 {offsets = [0, 96], sizes = [8, 32], strides = [1, 1]} : vector<8x128xf32> to vector<8x32xf32>
    %373 = math.tanh %372 : vector<8x32xf32>
    %374 = vector.extract_strided_slice %371 {offsets = [0, 0], sizes = [8, 32], strides = [1, 1]} : vector<8x96xf32> to vector<8x32xf32>
    %375 = vector.extract_strided_slice %371 {offsets = [0, 32], sizes = [8, 32], strides = [1, 1]} : vector<8x96xf32> to vector<8x32xf32>
    %376 = vector.extract_strided_slice %371 {offsets = [0, 64], sizes = [8, 32], strides = [1, 1]} : vector<8x96xf32> to vector<8x32xf32>
    %377 = arith.mulf %375, %352 : vector<8x32xf32>
    %378 = arith.mulf %374, %373 : vector<8x32xf32>
    %379 = arith.addf %377, %378 : vector<8x32xf32>
    %380 = math.tanh %379 : vector<8x32xf32>
    %381 = arith.mulf %376, %380 : vector<8x32xf32>
    %382 = arith.index_cast %359 : i32 to index
    %c0_112 = arith.constant 0 : index
    %c32_113 = arith.constant 32 : index
    %383 = vector.load %arg7[%382, %c0_112, %c32_113] : memref<8x8x64xf32, #tpu.memory_space<vmem>>, vector<1x8x32xf32>
    %384 = vector.shape_cast %383 : vector<1x8x32xf32> to vector<8x32xf32>
    %385 = vector.shape_cast %381 : vector<8x32xf32> to vector<1x8x32xf32>
    tpu.vector_store %arg7[%382, %c0_112, %c32_113], %385 {strides = array<i32>} : memref<8x8x64xf32, #tpu.memory_space<vmem>>, vector<1x8x32xf32>,
    %c6_i32_114 = arith.constant 6 : i32
    %c7_i32_115 = arith.constant 7 : i32
    %386 = arith.subi %c7_i32_115, %c6_i32_114 : i32
    %c8_i32_116 = arith.constant 8 : i32
    %387 = arith.muli %386, %c8_i32_116 : i32
    %388 = tpu.assume_multiple %387, 8 : i32
    %389 = arith.index_cast %388 : i32 to index
    %c0_117 = arith.constant 0 : index
    %390 = vector.load %arg9[%389, %c0_117] : memref<64x128xf32, #tpu.memory_space<vmem>>, vector<8x128xf32>
    %cst_118 = arith.constant dense<0.000000e+00> : vector<8x128xf32>
    %391 = tpu.matmul %381, %14, %cst_118 {dimension_numbers = #tpu.dot_dimension_numbers<[1], [0], [0], [1], [0, 0, 1, 1], [], []>} : vector<8x32xf32>, vector<32x128xf32>, vector<8x128xf32> -> vector<8x128xf32>
    %392 = arith.addf %390, %391 : vector<8x128xf32>
    %393 = vector.extract_strided_slice %392 {offsets = [0, 0], sizes = [8, 96], strides = [1, 1]} : vector<8x128xf32> to vector<8x96xf32>
    %394 = arith.negf %393 : vector<8x96xf32>
    %395 = math.exp %394 : vector<8x96xf32>
    %cst_119 = arith.constant 1.000000e+00 : f32
    %396 = vector.broadcast %cst_119 : f32 to vector<8x96xf32>
    %397 = arith.addf %396, %395 : vector<8x96xf32>
    %398 = arith.divf %396, %397 : vector<8x96xf32>
    %399 = vector.extract_strided_slice %392 {offsets = [0, 96], sizes = [8, 32], strides = [1, 1]} : vector<8x128xf32> to vector<8x32xf32>
    %400 = math.tanh %399 : vector<8x32xf32>
    %401 = vector.extract_strided_slice %398 {offsets = [0, 0], sizes = [8, 32], strides = [1, 1]} : vector<8x96xf32> to vector<8x32xf32>
    %402 = vector.extract_strided_slice %398 {offsets = [0, 32], sizes = [8, 32], strides = [1, 1]} : vector<8x96xf32> to vector<8x32xf32>
    %403 = vector.extract_strided_slice %398 {offsets = [0, 64], sizes = [8, 32], strides = [1, 1]} : vector<8x96xf32> to vector<8x32xf32>
    %404 = arith.mulf %402, %379 : vector<8x32xf32>
    %405 = arith.mulf %401, %400 : vector<8x32xf32>
    %406 = arith.addf %404, %405 : vector<8x32xf32>
    %407 = math.tanh %406 : vector<8x32xf32>
    %408 = arith.mulf %403, %407 : vector<8x32xf32>
    %409 = arith.index_cast %386 : i32 to index
    %c0_120 = arith.constant 0 : index
    %c32_121 = arith.constant 32 : index
    %410 = vector.load %arg7[%409, %c0_120, %c32_121] : memref<8x8x64xf32, #tpu.memory_space<vmem>>, vector<1x8x32xf32>
    %411 = vector.shape_cast %410 : vector<1x8x32xf32> to vector<8x32xf32>
    %412 = vector.shape_cast %408 : vector<8x32xf32> to vector<1x8x32xf32>
    tpu.vector_store %arg7[%409, %c0_120, %c32_121], %412 {strides = array<i32>} : memref<8x8x64xf32, #tpu.memory_space<vmem>>, vector<1x8x32xf32>,
    %c7_i32_122 = arith.constant 7 : i32
    %c7_i32_123 = arith.constant 7 : i32
    %413 = arith.subi %c7_i32_123, %c7_i32_122 : i32
    %c8_i32_124 = arith.constant 8 : i32
    %414 = arith.muli %413, %c8_i32_124 : i32
    %415 = tpu.assume_multiple %414, 8 : i32
    %416 = arith.index_cast %415 : i32 to index
    %c0_125 = arith.constant 0 : index
    %417 = vector.load %arg9[%416, %c0_125] : memref<64x128xf32, #tpu.memory_space<vmem>>, vector<8x128xf32>
    %cst_126 = arith.constant dense<0.000000e+00> : vector<8x128xf32>
    %418 = tpu.matmul %408, %14, %cst_126 {dimension_numbers = #tpu.dot_dimension_numbers<[1], [0], [0], [1], [0, 0, 1, 1], [], []>} : vector<8x32xf32>, vector<32x128xf32>, vector<8x128xf32> -> vector<8x128xf32>
    %419 = arith.addf %417, %418 : vector<8x128xf32>
    %420 = vector.extract_strided_slice %419 {offsets = [0, 0], sizes = [8, 96], strides = [1, 1]} : vector<8x128xf32> to vector<8x96xf32>
    %421 = arith.negf %420 : vector<8x96xf32>
    %422 = math.exp %421 : vector<8x96xf32>
    %cst_127 = arith.constant 1.000000e+00 : f32
    %423 = vector.broadcast %cst_127 : f32 to vector<8x96xf32>
    %424 = arith.addf %423, %422 : vector<8x96xf32>
    %425 = arith.divf %423, %424 : vector<8x96xf32>
    %426 = vector.extract_strided_slice %419 {offsets = [0, 96], sizes = [8, 32], strides = [1, 1]} : vector<8x128xf32> to vector<8x32xf32>
    %427 = math.tanh %426 : vector<8x32xf32>
    %428 = vector.extract_strided_slice %425 {offsets = [0, 0], sizes = [8, 32], strides = [1, 1]} : vector<8x96xf32> to vector<8x32xf32>
    %429 = vector.extract_strided_slice %425 {offsets = [0, 32], sizes = [8, 32], strides = [1, 1]} : vector<8x96xf32> to vector<8x32xf32>
    %430 = vector.extract_strided_slice %425 {offsets = [0, 64], sizes = [8, 32], strides = [1, 1]} : vector<8x96xf32> to vector<8x32xf32>
    %431 = arith.mulf %429, %406 : vector<8x32xf32>
    %432 = arith.mulf %428, %427 : vector<8x32xf32>
    %433 = arith.addf %431, %432 : vector<8x32xf32>
    %434 = math.tanh %433 : vector<8x32xf32>
    %435 = arith.mulf %430, %434 : vector<8x32xf32>
    %436 = arith.index_cast %413 : i32 to index
    %c0_128 = arith.constant 0 : index
    %c32_129 = arith.constant 32 : index
    %437 = vector.load %arg7[%436, %c0_128, %c32_129] : memref<8x8x64xf32, #tpu.memory_space<vmem>>, vector<1x8x32xf32>
    %438 = vector.shape_cast %437 : vector<1x8x32xf32> to vector<8x32xf32>
    %439 = vector.shape_cast %435 : vector<8x32xf32> to vector<1x8x32xf32>
    tpu.vector_store %arg7[%436, %c0_128, %c32_129], %439 {strides = array<i32>} : memref<8x8x64xf32, #tpu.memory_space<vmem>>, vector<1x8x32xf32>,
    %c8_i32_130 = arith.constant 8 : i32
    return
  }
}

</mosaic_0001>

<bundles_post_ra>
// kernel: bilstm_encoder_forward.2
= control target key start
LH: loop header
LB: loop body
LE: loop exit
PB: predicated region body
PF: predicated region fallthrough
CT: control target
= control target key end

     0   :  { %vm43_vm0 = vcmask 130048   ;;  %v2607_v8 = vmov 0.0|0.0   ;;  %vm2608_vm1 = vmmov 0   ;;  %v2609_v18 = vmov 0.0   ;;  %s2612_s28 = smov 96   ;;  %s3105_s1 = inlined_call_operand.vmem [shape: f32[16,128], index: 1, kind: input, shape index: {}]   ;;  %s3106_s0 = inlined_call_operand.vmem [shape: f32[64,16], index: 0, kind: input, shape index: {}]   ;;  %s3107_s2 = inlined_call_operand.vmem [shape: f32[32,128], index: 2, kind: input, shape index: {}]   ;;  %s3108_s3 = inlined_call_operand.vmem [shape: f32[1,128], index: 3, kind: input, shape index: {}]   ;;  %s3109_s4 = inlined_call_operand.vmem [shape: f32[16,128], index: 4, kind: input, shape index: {}]   ;;  %s3110_s6 = inlined_call_operand.vmem [shape: f32[1,128], index: 6, kind: input, shape index: {}]   ;;  %s3111_s7 = inlined_call_operand.vmem [shape: f32[8,8,64], index: 7, kind: output, shape index: {}]   ;;  %s3112_s5 = inlined_call_operand.vmem [shape: f32[32,128], index: 5, kind: input, shape index: {}]  }
   0x1   :  { %v34_v0 = vld [vmem:[%s3105_s1] sm:$0xff]  ;;  %v35_v1 = vld [vmem:[%s3105_s1 + $0x8] sm:$0xff]  ;;  %v2681_v9 = vld [vmem:[%s3106_s0 + $0x10] sm:$0xff]  ;;  %vm312_vm2 = vcmask 261120   ;;  %vm1252_vm3 = vcmask 523520  }
   0x2   :  { %v26_v2 = vld [vmem:[%s3106_s0] sm:$0xff]  ;;  %v2369_v3 = vpack.c.bf16 %v35_v1, %v34_v0  ;;  %v304_v5 = vld [vmem:[%s3107_s2 + $0x8] sm:$0xff]  ;;  %v305_v10 = vld [vmem:[%s3107_s2 + $0x10] sm:$0xff] }
   0x3   :  { %2165 = vmatprep.mubr.msk.f32.mxu0 %vm43_vm0, %v26_v2  ;;  %v303_v4 = vld [vmem:[%s3107_s2] sm:$0xff]  ;;  %2181 = vmatprep.mubr.msk.f32.mxu1 %vm43_vm0, %v26_v2  ;;  %v2673_v6 = vld [vmem:[%s3106_s0 + $0x8] sm:$0xff]  ;;  %v306_v11 = vld [vmem:[%s3107_s2 + $0x18] sm:$0xff] }
   0x4   :  { %2370 = vmatprep.subr.bf16.mxu0 %v2369_v3  ;;  %v2675_v7 = vpack.c.bf16 %v304_v5, %v303_v4  ;;  %v2697_v12 = vld [vmem:[%s3106_s0 + $0x18] sm:$0xff]  ;;  %v2699_v13 = vpack.c.bf16 %v306_v11, %v305_v10  ;;  %v2704_v14 = vld [vmem:[%s3106_s0 + $0x20] sm:$0xff]  ;;  %v2714_v15 = vld [vmem:[%s3106_s0 + $0x28] sm:$0xff] }
   0x5   :  { %2372 = vmatpush3.bf16.msra.mxu0 %v2369_v3  ;;  %v2720_v16 = vld [vmem:[%s3106_s0 + $0x30] sm:$0xff]  ;;  %v2730_v17 = vld [vmem:[%s3106_s0 + $0x38] sm:$0xff]  ;;  %v1999_v19 = vld [vmem:[%s3108_s3] ss:$0 sm:$0xff]  ;;  %s2610_s3 = smov 32  }
   0x6   :  { %2377 = vmatprep.subr.bf16.mxu0 %v2607_v8  ;;  %v181_v49 = vld [vmem:[%s3109_s4] sm:$0xff]  ;;  %v182_v50 = vld [vmem:[%s3109_s4 + $0x8] sm:$0xff]  ;;  %s2611_s4 = smov 64  }
   0x7   :  { %v2373_v51 = vpack.c.bf16 %v182_v50, %v181_v49  ;;  %v2797_v55 = vld [vmem:[%s3110_s6] ss:$0 sm:$0xff] }
   0x8   :  { %2166 = vmatmul.mubr.msk.f32.vlgmr.msra.gmra.mrb[0].mxu0 %vm43_vm0, %v2673_v6 }
   0x9   :  { %2379 = vmatpush3.bf16.msra.mxu0 %v2675_v7  ;;  %2168 = vmatprep.mubr.msk.f32.mxu0 %vm43_vm0, %v2681_v9 }
   0xa   :  { %2380 = vmatprep.subr.bf16.mxu0 %v2607_v8  ;;  %2374 = vmatprep.subr.bf16.mxu1 %v2373_v51 }
   0xb   :  { %2376 = vmatpush3.bf16.msra.mxu1 %v2373_v51 }
   0xc   :  { %2169 = vmatmul.mubr.msk.f32.gmra.mrb[2].mxu0 %vm43_vm0, %v2697_v12  ;;  %2383 = vmatprep.subr.bf16.mxu1 %v2607_v8 }
   0xd   :  { %2171 = vmatprep.mubr.msk.f32.mxu0 %vm43_vm0, %v2704_v14  ;;  %2382 = vmatpush3.bf16.msra.mxu0 %v2699_v13 }
   0xe   :  { %2389 = vmatprep.subr.bf16.mxu0 %v2607_v8  ;;  %2182 = vmatmul.mubr.msk.f32.vlgmr.msra.gmra.mrb[0].mxu1 %vm43_vm0, %v2673_v6 }
   0xf   :  { %2385 = vmatpush3.bf16.msra.mxu1 %v2675_v7  ;;  %2184 = vmatprep.mubr.msk.f32.mxu1 %vm43_vm0, %v2681_v9 }
  0x10   :  { %2172 = vmatmul.mubr.msk.f32.gmra.mrb[4].mxu0 %vm43_vm0, %v2714_v15  ;;  %2386 = vmatprep.subr.bf16.mxu1 %v2607_v8 }
  0x11   :  { %2174 = vmatprep.mubr.msk.f32.mxu0 %vm43_vm0, %v2720_v16 }
  0x12   :  { %2185 = vmatmul.mubr.msk.f32.gmra.mrb[2].mxu1 %vm43_vm0, %v2697_v12 }
  0x13   :  { %2187 = vmatprep.mubr.msk.f32.mxu1 %vm43_vm0, %v2704_v14  ;;  %2388 = vmatpush3.bf16.msra.mxu1 %v2699_v13 }
  0x14   :  { %2175 = vmatmul.mubr.msk.f32.gmra.mrb[6].mxu0 %vm43_vm0, %v2730_v17  ;;  %2395 = vmatprep.subr.bf16.mxu1 %v2607_v8 }
  0x15   :  { %2201 = vmatprep.mubr.msk.f32.mxu0 %vm2608_vm1, %v2609_v18 }
  0x16   :  { %2188 = vmatmul.mubr.msk.f32.gmra.mrb[4].mxu1 %vm43_vm0, %v2714_v15 }
  0x17   :  { %2190 = vmatprep.mubr.msk.f32.mxu1 %vm43_vm0, %v2720_v16 }
  0x18   :  { %2202 = vmatmul.mubr.f32.vlgmr.msra.gmra.mrb[8].mxu0 %v2609_v18 }
  0x19   :  { %2391 = vmatpush3.bf16.msra.mxu0 %v2675_v7  ;;  %2223 = vmatprep.mubr.msk.f32.mxu0 %vm2608_vm1, %v2609_v18 }
  0x1a   :  { %2392 = vmatprep.subr.bf16.mxu0 %v2607_v8  ;;  %2191 = vmatmul.mubr.msk.f32.gmra.mrb[6].mxu1 %vm43_vm0, %v2730_v17 }
  0x1b   :  { %2212 = vmatprep.mubr.msk.f32.mxu1 %vm2608_vm1, %v2609_v18 }
  0x1d   :  { %2394 = vmatpush3.bf16.msra.mxu0 %v2699_v13 }
  0x1e   :  { %2401 = vmatprep.subr.bf16.mxu0 %v2607_v8 }
  0xdb   :  { %v2167_v20 = vpop.f32.mrb[0].mxu0 }
  0xdc   :  { %v2746_v21 = vadd.f32 %v2167_v20, %v1999_v19  ;;  %v134_v22 = vpop.f32.mrb[1].mxu0 }
  0xdd   :  { %v135_v35 = vadd.f32 %v1999_v19, %v134_v22 }
  0xdf   :  { %v2170_v23 = vpop.f32.mrb[2].mxu0 }
  0xe0   :  { %v2748_v24 = vadd.f32 %v2170_v23, %v1999_v19  ;;  %v144_v25 = vpop.f32.mrb[3].mxu0 }
  0xe1   :  { %v2750_v26 = vadd.f32 %v1999_v19, %v144_v25  ;;  %v2183_v56 = vpop.f32.mrb[0].mxu1 }
  0xe2   :  { %v2800_v57 = vadd.f32 %v2183_v56, %v2797_v55  ;;  %v256_v58 = vpop.f32.mrb[1].mxu1 }
  0xe3   :  { %v2173_v27 = vpop.f32.mrb[4].mxu0  ;;  %v2803_v59 = vadd.f32 %v2797_v55, %v256_v58 }
  0xe4   :  { %v2752_v28 = vadd.f32 %v2173_v27, %v1999_v19  ;;  %v154_v29 = vpop.f32.mrb[5].mxu0 }
  0xe5   :  { %v2754_v30 = vadd.f32 %v1999_v19, %v154_v29  ;;  %v2186_v60 = vpop.f32.mrb[2].mxu1 }
  0xe6   :  { %v2806_v61 = vadd.f32 %v2186_v60, %v2797_v55  ;;  %v266_v62 = vpop.f32.mrb[3].mxu1 }
  0xe7   :  { %v2176_v31 = vpop.f32.mrb[6].mxu0  ;;  %v2809_v63 = vadd.f32 %v2797_v55, %v266_v62 }
  0xe8   :  { %v2756_v32 = vadd.f32 %v2176_v31, %v1999_v19  ;;  %v164_v33 = vpop.f32.mrb[7].mxu0 }
  0xe9   :  { %v2758_v34 = vadd.f32 %v1999_v19, %v164_v33  ;;  %v2189_v0 = vpop.f32.mrb[4].mxu1 }
  0xea   :  { %v2812_v1 = vadd.f32 %v2189_v0, %v2797_v55  ;;  %v276_v2 = vpop.f32.mrb[5].mxu1 }
  0xeb   :  { %v382_v36 = vpop.f32.mrb[8].mxu0  ;;  %v2815_v3 = vadd.f32 %v2797_v55, %v276_v2 }
  0xec   :  { %v386_v37 = vadd.f32 %v382_v36, %v135_v35  ;;  %v2203_v38 = vpop.f32.mrb[9].mxu0 }
  0xed   :  { %v2817_v4 = vpop.f32.mrb[6].mxu1 }
  0xee   :  { %2479 = vtanh.f32 %v386_v37  ;;  %v2017_v40 = vmul.f32 -1.442695, %v386_v37  ;;  %v286_v5 = vpop.f32.mrb[7].mxu1 }
  0xef   :  { %v2820_v6 = vadd.f32 %v2797_v55, %v286_v5 }
  0xf0   :  { %2481 = vpow2.f32 %v2017_v40 }
  0xf8   :  { %v2480_v39 = vpop.eup %2479 }
  0xf9   :  { %396 = vrot.lane.b32.xlu0 %v2480_v39, %s2610_s3 }
  0xfa   :  { %v2482_v41 = vpop.eup %2481 }
  0xfb   :  { %v390_v42 = vadd.f32 1.0, %v2482_v41 }
  0xfd   :  { %2483 = vrcp.f32 %v390_v42 }
 0x107   :  { %v2484_v43 = vpop.eup %2483 }
 0x108   :  { %v394_v46 = vmul.f32 0.0, %v2484_v43 }
 0x16b   :  { %v397_v44 = vpop.permute.xlu0 %396 }
 0x16c   :  { %v399_v45 = vmul.f32 %v2484_v43, %v397_v44 }
 0x16e   :  { %401 = vrot.lane.b32.xlu0 %v399_v45, %s2610_s3 }
 0x1e0   :  { %v402_v47 = vpop.permute.xlu0 %401 }
 0x1e1   :  { %v2762_v48 = vadd.f32 %v402_v47, %v394_v46 }
 0x1e3   :  { %2485 = vtanh.f32 %v2762_v48 }
 0x1ed   :  { %v2486_v52 = vpop.eup %2485 }
 0x1ee   :  { %407 = vrot.lane.b32.xlu1 %v2486_v52, %s2610_s3 }
 0x260   :  { %v408_v53 = vpop.permute.xlu1 %407 }
 0x261   :  { %v410_v54 = vmul.f32 %v2484_v43, %v408_v53 }
 0x263   :  { %412 = vrot.lane.b32.xlu1 %v410_v54, %s2611_s4 }
 0x2d5   :  { %v413_v9 = vpop.permute.xlu1 %412 }
 0x2d6   :  { %415 = vst.msk [vmem:[%s3111_s7] sm:$0xff] %vm312_vm2, %v413_v9  ;;  %2213 = vmatmul.mubr.msk.f32.vlgmr.msra.gmra.mrb[8].mxu1 %vm312_vm2, %v413_v9 }
 0x2d7   :  { %2397 = vmatpush3.bf16.msra.mxu1 %v2675_v7  ;;  %2234 = vmatprep.mubr.msk.f32.mxu1 %vm2608_vm1, %v2609_v18 }
 0x2d8   :  { %2398 = vmatprep.subr.bf16.mxu1 %v2607_v8 }
 0x2db   :  { %2400 = vmatpush3.bf16.msra.mxu1 %v2699_v13 }
 0x2dc   :  { %2407 = vmatprep.subr.bf16.mxu1 %v2607_v8 }
 0x3a9   :  { %v486_v10 = vpop.f32.mrb[8].mxu1 }
 0x3aa   :  { %v490_v11 = vadd.f32 %v486_v10, %v2746_v21  ;;  %v2214_v12 = vpop.f32.mrb[9].mxu1 }
 0x3ac   :  { %2487 = vtanh.f32 %v490_v11  ;;  %v2019_v15 = vmul.f32 -1.442695, %v490_v11 }
 0x3ae   :  { %2489 = vpow2.f32 %v2019_v15 }
 0x3b6   :  { %v2488_v14 = vpop.eup %2487 }
 0x3b7   :  { %500 = vrot.lane.b32.xlu0 %v2488_v14, %s2610_s3 }
 0x3b8   :  { %v2490_v16 = vpop.eup %2489 }
 0x3b9   :  { %v494_v17 = vadd.f32 1.0, %v2490_v16 }
 0x3bb   :  { %2491 = vrcp.f32 %v494_v17 }
 0x3c5   :  { %v2492_v19 = vpop.eup %2491 }
 0x3c6   :  { %v498_v23 = vmul.f32 %v2492_v19, %v2762_v48 }
 0x429   :  { %v501_v20 = vpop.permute.xlu0 %500 }
 0x42a   :  { %v503_v22 = vmul.f32 %v2492_v19, %v501_v20 }
 0x42c   :  { %505 = vrot.lane.b32.xlu1 %v503_v22, %s2610_s3 }
 0x49e   :  { %v506_v25 = vpop.permute.xlu1 %505 }
 0x49f   :  { %v508_v27 = vadd.f32 %v506_v25, %v498_v23 }
 0x4a1   :  { %2493 = vtanh.f32 %v508_v27 }
 0x4ab   :  { %v2494_v21 = vpop.eup %2493 }
 0x4ac   :  { %511 = vrot.lane.b32.xlu0 %v2494_v21, %s2610_s3 }
 0x51e   :  { %v512_v29 = vpop.permute.xlu0 %511 }
 0x51f   :  { %v514_v31 = vmul.f32 %v2492_v19, %v512_v29 }
 0x521   :  { %516 = vrot.lane.b32.xlu1 %v514_v31, %s2611_s4 }
 0x593   :  { %v517_v33 = vpop.permute.xlu1 %516 }
 0x594   :  { %2020 = vst.msk [vmem:[%s3111_s7 + $0x8] sm:$0xff] %vm312_vm2, %v517_v33  ;;  %2224 = vmatmul.mubr.msk.f32.vlgmr.msra.gmra.mrb[10].mxu0 %vm312_vm2, %v517_v33 }
 0x595   :  { %2403 = vmatpush3.bf16.msra.mxu0 %v2675_v7  ;;  %2245 = vmatprep.mubr.msk.f32.mxu0 %vm2608_vm1, %v2609_v18 }
 0x596   :  { %2404 = vmatprep.subr.bf16.mxu0 %v2607_v8 }
 0x599   :  { %2406 = vmatpush3.bf16.msra.mxu0 %v2699_v13 }
 0x59a   :  { %2413 = vmatprep.subr.bf16.mxu0 %v2607_v8 }
 0x667   :  { %v591_v35 = vpop.f32.mrb[10].mxu0 }
 0x668   :  { %v595_v36 = vadd.f32 %v591_v35, %v2750_v26  ;;  %v2225_v37 = vpop.f32.mrb[11].mxu0 }
 0x66a   :  { %2495 = vtanh.f32 %v595_v36  ;;  %v2022_v39 = vmul.f32 -1.442695, %v595_v36 }
 0x66c   :  { %2497 = vpow2.f32 %v2022_v39 }
 0x674   :  { %v2496_v38 = vpop.eup %2495 }
 0x675   :  { %605 = vrot.lane.b32.xlu0 %v2496_v38, %s2610_s3 }
 0x676   :  { %v2498_v40 = vpop.eup %2497 }
 0x677   :  { %v599_v41 = vadd.f32 1.0, %v2498_v40 }
 0x679   :  { %2499 = vrcp.f32 %v599_v41 }
 0x683   :  { %v2500_v42 = vpop.eup %2499 }
 0x684   :  { %v603_v45 = vmul.f32 %v2500_v42, %v508_v27 }
 0x6e7   :  { %v606_v43 = vpop.permute.xlu0 %605 }
 0x6e8   :  { %v608_v44 = vmul.f32 %v2500_v42, %v606_v43 }
 0x6ea   :  { %610 = vrot.lane.b32.xlu1 %v608_v44, %s2610_s3 }
 0x75c   :  { %v611_v46 = vpop.permute.xlu1 %610 }
 0x75d   :  { %v613_v47 = vadd.f32 %v611_v46, %v603_v45 }
 0x75f   :  { %2501 = vtanh.f32 %v613_v47 }
 0x769   :  { %v2502_v26 = vpop.eup %2501 }
 0x76a   :  { %616 = vrot.lane.b32.xlu0 %v2502_v26, %s2610_s3 }
 0x7dc   :  { %v617_v48 = vpop.permute.xlu0 %616 }
 0x7dd   :  { %v619_v49 = vmul.f32 %v2500_v42, %v617_v48 }
 0x7df   :  { %621 = vrot.lane.b32.xlu1 %v619_v49, %s2611_s4 }
 0x851   :  { %v622_v50 = vpop.permute.xlu1 %621 }
 0x852   :  { %2023 = vst.msk [vmem:[%s3111_s7 + $0x10] sm:$0xff] %vm312_vm2, %v622_v50  ;;  %2235 = vmatmul.mubr.msk.f32.vlgmr.msra.gmra.mrb[10].mxu1 %vm312_vm2, %v622_v50  ;;  %v307_v50 = vld [vmem:[%s3112_s5] sm:$0xff] }
 0x853   :  { %2409 = vmatpush3.bf16.msra.mxu1 %v2675_v7  ;;  %2256 = vmatprep.mubr.msk.f32.mxu1 %vm2608_vm1, %v2609_v18 }
 0x854   :  { %2410 = vmatprep.subr.bf16.mxu1 %v2607_v8 }
 0x857   :  { %2412 = vmatpush3.bf16.msra.mxu1 %v2699_v13 }
 0x858   :  { %2419 = vmatprep.subr.bf16.mxu1 %v2607_v8 }
 0x925   :  { %v696_v51 = vpop.f32.mrb[10].mxu1 }
 0x926   :  { %v700_v52 = vadd.f32 %v696_v51, %v2748_v24  ;;  %v2236_v53 = vpop.f32.mrb[11].mxu1  ;;  %v308_v51 = vld [vmem:[%s3112_s5 + $0x8] sm:$0xff] }
 0x927   :  { %v309_v53 = vld [vmem:[%s3112_s5 + $0x10] sm:$0xff] }
 0x928   :  { %2503 = vtanh.f32 %v700_v52  ;;  %v2025_v56 = vmul.f32 -1.442695, %v700_v52  ;;  %v2909_v52 = vpack.c.bf16 %v308_v51, %v307_v50 }
 0x92a   :  { %2505 = vpow2.f32 %v2025_v56 }
 0x932   :  { %v2504_v54 = vpop.eup %2503 }
 0x933   :  { %710 = vrot.lane.b32.xlu0 %v2504_v54, %s2610_s3  ;;  %v310_v54 = vld [vmem:[%s3112_s5 + $0x18] sm:$0xff] }
 0x934   :  { %v2506_v58 = vpop.eup %2505 }
 0x935   :  { %v704_v60 = vadd.f32 1.0, %v2506_v58  ;;  %v2923_v58 = vpack.c.bf16 %v310_v54, %v309_v53 }
 0x937   :  { %2507 = vrcp.f32 %v704_v60 }
 0x941   :  { %v2508_v62 = vpop.eup %2507 }
 0x942   :  { %v708_v5 = vmul.f32 %v2508_v62, %v613_v47 }
 0x9a5   :  { %v711_v0 = vpop.permute.xlu0 %710 }
 0x9a6   :  { %v713_v2 = vmul.f32 %v2508_v62, %v711_v0 }
 0x9a8   :  { %715 = vrot.lane.b32.xlu1 %v713_v2, %s2610_s3  ;;  %v292_v2 = vadd.f32 %v2817_v4, %v2797_v55 }
 0xa1a   :  { %v716_v9 = vpop.permute.xlu1 %715 }
 0xa1b   :  { %v718_v10 = vadd.f32 %v716_v9, %v708_v5 }
 0xa1d   :  { %2509 = vtanh.f32 %v718_v10 }
 0xa27   :  { %v2510_v24 = vpop.eup %2509 }
 0xa28   :  { %721 = vrot.lane.b32.xlu0 %v2510_v24, %s2610_s3 }
 0xa9a   :  { %v722_v11 = vpop.permute.xlu0 %721 }
 0xa9b   :  { %v724_v12 = vmul.f32 %v2508_v62, %v722_v11 }
 0xa9d   :  { %726 = vrot.lane.b32.xlu1 %v724_v12, %s2611_s4 }
 0xb0f   :  { %v727_v14 = vpop.permute.xlu1 %726 }
 0xb10   :  { %2026 = vst.msk [vmem:[%s3111_s7 + $0x18] sm:$0xff] %vm312_vm2, %v727_v14  ;;  %2246 = vmatmul.mubr.msk.f32.vlgmr.msra.gmra.mrb[12].mxu0 %vm312_vm2, %v727_v14 }
 0xb11   :  { %2415 = vmatpush3.bf16.msra.mxu0 %v2675_v7  ;;  %2267 = vmatprep.mubr.msk.f32.mxu0 %vm2608_vm1, %v2609_v18 }
 0xb12   :  { %2416 = vmatprep.subr.bf16.mxu0 %v2607_v8 }
 0xb15   :  { %2418 = vmatpush3.bf16.msra.mxu0 %v2699_v13 }
 0xb16   :  { %2425 = vmatprep.subr.bf16.mxu0 %v2607_v8 }
 0xbe3   :  { %v801_v15 = vpop.f32.mrb[12].mxu0 }
 0xbe4   :  { %v805_v16 = vadd.f32 %v801_v15, %v2754_v30  ;;  %v2247_v17 = vpop.f32.mrb[13].mxu0 }
 0xbe6   :  { %2511 = vtanh.f32 %v805_v16  ;;  %v2028_v20 = vmul.f32 -1.442695, %v805_v16 }
 0xbe8   :  { %2513 = vpow2.f32 %v2028_v20 }
 0xbf0   :  { %v2512_v19 = vpop.eup %2511 }
 0xbf1   :  { %815 = vrot.lane.b32.xlu0 %v2512_v19, %s2610_s3 }
 0xbf2   :  { %v2514_v22 = vpop.eup %2513 }
 0xbf3   :  { %v809_v23 = vadd.f32 1.0, %v2514_v22 }
 0xbf5   :  { %2515 = vrcp.f32 %v809_v23 }
 0xbff   :  { %v2516_v25 = vpop.eup %2515 }
 0xc00   :  { %v813_v29 = vmul.f32 %v2516_v25, %v718_v10 }
 0xc63   :  { %v816_v27 = vpop.permute.xlu0 %815 }
 0xc64   :  { %v818_v21 = vmul.f32 %v2516_v25, %v816_v27 }
 0xc66   :  { %820 = vrot.lane.b32.xlu1 %v818_v21, %s2610_s3 }
 0xcd8   :  { %v821_v31 = vpop.permute.xlu1 %820 }
 0xcd9   :  { %v823_v33 = vadd.f32 %v821_v31, %v813_v29 }
 0xcdb   :  { %2517 = vtanh.f32 %v823_v33 }
 0xce5   :  { %v2518_v30 = vpop.eup %2517 }
 0xce6   :  { %826 = vrot.lane.b32.xlu0 %v2518_v30, %s2610_s3 }
 0xd58   :  { %v827_v35 = vpop.permute.xlu0 %826 }
 0xd59   :  { %v829_v36 = vmul.f32 %v2516_v25, %v827_v35 }
 0xd5b   :  { %831 = vrot.lane.b32.xlu1 %v829_v36, %s2611_s4 }
 0xdcd   :  { %v832_v37 = vpop.permute.xlu1 %831 }
 0xdce   :  { %2029 = vst.msk [vmem:[%s3111_s7 + $0x20] sm:$0xff] %vm312_vm2, %v832_v37  ;;  %2257 = vmatmul.mubr.msk.f32.vlgmr.msra.gmra.mrb[12].mxu1 %vm312_vm2, %v832_v37 }
 0xdcf   :  { %2421 = vmatpush3.bf16.msra.mxu1 %v2675_v7  ;;  %2278 = vmatprep.mubr.msk.f32.mxu1 %vm2608_vm1, %v2609_v18 }
 0xdd0   :  { %2422 = vmatprep.subr.bf16.mxu1 %v2607_v8 }
 0xdd3   :  { %2424 = vmatpush3.bf16.msra.mxu1 %v2699_v13 }
 0xdd4   :  { %2431 = vmatprep.subr.bf16.mxu1 %v2607_v8 }
 0xea1   :  { %v906_v38 = vpop.f32.mrb[12].mxu1 }
 0xea2   :  { %v910_v39 = vadd.f32 %v906_v38, %v2752_v28  ;;  %v2258_v40 = vpop.f32.mrb[13].mxu1 }
 0xea4   :  { %2519 = vtanh.f32 %v910_v39  ;;  %v2031_v42 = vmul.f32 -1.442695, %v910_v39 }
 0xea6   :  { %2521 = vpow2.f32 %v2031_v42 }
 0xeae   :  { %v2520_v41 = vpop.eup %2519 }
 0xeaf   :  { %920 = vrot.lane.b32.xlu0 %v2520_v41, %s2610_s3 }
 0xeb0   :  { %v2522_v7 = vpop.eup %2521 }
 0xeb1   :  { %v914_v43 = vadd.f32 1.0, %v2522_v7 }
 0xeb3   :  { %2523 = vrcp.f32 %v914_v43 }
 0xebd   :  { %v2524_v44 = vpop.eup %2523 }
 0xebe   :  { %v918_v13 = vmul.f32 %v2524_v44, %v823_v33 }
 0xf21   :  { %v921_v45 = vpop.permute.xlu0 %920 }
 0xf22   :  { %v923_v46 = vmul.f32 %v2524_v44, %v921_v45 }
 0xf24   :  { %925 = vrot.lane.b32.xlu1 %v923_v46, %s2610_s3 }
 0xf96   :  { %v926_v47 = vpop.permute.xlu1 %925 }
 0xf97   :  { %v928_v26 = vadd.f32 %v926_v47, %v918_v13 }
 0xf99   :  { %2525 = vtanh.f32 %v928_v26 }
 0xfa3   :  { %v2526_v28 = vpop.eup %2525 }
 0xfa4   :  { %931 = vrot.lane.b32.xlu0 %v2526_v28, %s2610_s3 }
0x1016   :  { %v932_v48 = vpop.permute.xlu0 %931 }
0x1017   :  { %v934_v49 = vmul.f32 %v2524_v44, %v932_v48 }
0x1019   :  { %936 = vrot.lane.b32.xlu1 %v934_v49, %s2611_s4 }
0x108b   :  { %v937_v56 = vpop.permute.xlu1 %936 }
0x108c   :  { %2032 = vst.msk [vmem:[%s3111_s7 + $0x28] sm:$0xff] %vm312_vm2, %v937_v56  ;;  %2268 = vmatmul.mubr.msk.f32.vlgmr.msra.gmra.mrb[14].mxu0 %vm312_vm2, %v937_v56 }
0x108d   :  { %2427 = vmatpush3.bf16.msra.mxu0 %v2909_v52  ;;  %2289 = vmatprep.mubr.msk.f32.mxu0 %vm2608_vm1, %v2609_v18 }
0x108e   :  { %2428 = vmatprep.subr.bf16.mxu0 %v2607_v8 }
0x1091   :  { %2430 = vmatpush3.bf16.msra.mxu0 %v2923_v58 }
0x1092   :  { %2437 = vmatprep.subr.bf16.mxu0 %v2607_v8 }
0x1094   :  { %2290 = vmatmul.mubr.f32.vlgmr.msra.gmra.mrb[16].mxu0 %v2609_v18 }
0x1095   :  { %2439 = vmatpush3.bf16.msra.mxu0 %v2909_v52  ;;  %2311 = vmatprep.mubr.msk.f32.mxu0 %vm2608_vm1, %v2609_v18 }
0x1096   :  { %2440 = vmatprep.subr.bf16.mxu0 %v2607_v8 }
0x1099   :  { %2442 = vmatpush3.bf16.msra.mxu0 %v2923_v58 }
0x109a   :  { %2449 = vmatprep.subr.bf16.mxu0 %v2607_v8 }
0x115f   :  { %v1011_v60 = vpop.f32.mrb[14].mxu0 }
0x1160   :  { %v1015_v62 = vadd.f32 %v1011_v60, %v2758_v34  ;;  %v2269_v0 = vpop.f32.mrb[15].mxu0 }
0x1162   :  { %2527 = vtanh.f32 %v1015_v62  ;;  %v2034_v12 = vmul.f32 -1.442695, %v1015_v62 }
0x1167   :  { %v1219_v5 = vpop.f32.mrb[16].mxu0 }
0x1168   :  { %v1223_v9 = vadd.f32 %v1219_v5, %v292_v2  ;;  %v2291_v10 = vpop.f32.mrb[17].mxu0 }
0x116a   :  { %2529 = vtanh.f32 %v1223_v9  ;;  %v2039_v14 = vmul.f32 -1.442695, %v1223_v9 }
0x116b   :  { %2531 = vpow2.f32 %v2034_v12 }
0x116c   :  { %v2528_v24 = vpop.eup %2527  ;;  %2533 = vpow2.f32 %v2039_v14 }
0x116d   :  { %1025 = vrot.lane.b32.xlu0 %v2528_v24, %s2610_s3 }
0x1174   :  { %v2530_v11 = vpop.eup %2529 }
0x1175   :  { %1233 = vrot.lane.b32.xlu1 %v2530_v11, %s2610_s3  ;;  %v2532_v34 = vpop.eup %2531 }
0x1176   :  { %v1019_v15 = vadd.f32 1.0, %v2532_v34  ;;  %v2534_v16 = vpop.eup %2533 }
0x1177   :  { %v1227_v17 = vadd.f32 1.0, %v2534_v16 }
0x1178   :  { %2535 = vrcp.f32 %v1019_v15 }
0x1179   :  { %2537 = vrcp.f32 %v1227_v17 }
0x1182   :  { %v2536_v55 = vpop.eup %2535 }
0x1183   :  { %v2538_v20 = vpop.eup %2537  ;;  %v1023_v25 = vmul.f32 %v2536_v55, %v928_v26 }
0x1184   :  { %v1231_v29 = vmul.f32 0.0, %v2538_v20 }
0x11df   :  { %v1026_v4 = vpop.permute.xlu0 %1025 }
0x11e0   :  { %v1028_v19 = vmul.f32 %v2536_v55, %v1026_v4 }
0x11e2   :  { %1030 = vrot.lane.b32.xlu0 %v1028_v19, %s2610_s3 }
0x11e7   :  { %v1234_v22 = vpop.permute.xlu1 %1233 }
0x11e8   :  { %v1236_v23 = vmul.f32 %v2538_v20, %v1234_v22 }
0x11ea   :  { %1238 = vrot.lane.b32.xlu1 %v1236_v23, %s2610_s3 }
0x1254   :  { %v1031_v27 = vpop.permute.xlu0 %1030 }
0x1255   :  { %v2944_v21 = vadd.f32 %v1031_v27, %v1023_v25 }
0x1257   :  { %2539 = vtanh.f32 %v2944_v21 }
0x125c   :  { %v1239_v31 = vpop.permute.xlu1 %1238 }
0x125d   :  { %v1241_v33 = vadd.f32 %v1239_v31, %v1231_v29 }
0x125f   :  { %2541 = vtanh.f32 %v1241_v33 }
0x1261   :  { %v2540_v30 = vpop.eup %2539 }
0x1262   :  { %1036 = vrot.lane.b32.xlu0 %v2540_v30, %s2610_s3 }
0x1269   :  { %v2542_v35 = vpop.eup %2541 }
0x126a   :  { %1244 = vrot.lane.b32.xlu1 %v2542_v35, %s2610_s3 }
0x12d4   :  { %v1037_v36 = vpop.permute.xlu0 %1036 }
0x12d5   :  { %v1039_v37 = vmul.f32 %v2536_v55, %v1037_v36 }
0x12d7   :  { %1041 = vrot.lane.b32.xlu0 %v1039_v37, %s2611_s4 }
0x12dc   :  { %v1245_v38 = vpop.permute.xlu1 %1244 }
0x12dd   :  { %v2950_v39 = vmul.f32 %v2538_v20, %v1245_v38 }
0x12df   :  { %1256 = vrot.lane.b32.xlu1 %v2950_v39, %s2611_s4 }
0x1349   :  { %v1042_v40 = vpop.permute.xlu0 %1041 }
0x134a   :  { %2035 = vst.msk [vmem:[%s3111_s7 + $0x30] sm:$0xff] %vm312_vm2, %v1042_v40  ;;  %2279 = vmatmul.mubr.msk.f32.vlgmr.msra.gmra.mrb[14].mxu1 %vm312_vm2, %v1042_v40 }
0x134b   :  { %2433 = vmatpush3.bf16.msra.mxu1 %v2909_v52  ;;  %2300 = vmatprep.mubr.msk.f32.mxu1 %vm2608_vm1, %v2609_v18 }
0x134c   :  { %2434 = vmatprep.subr.bf16.mxu1 %v2607_v8 }
0x134f   :  { %2436 = vmatpush3.bf16.msra.mxu1 %v2923_v58 }
0x1350   :  { %2443 = vmatprep.subr.bf16.mxu1 %v2607_v8 }
0x1351   :  { %v1257_v41 = vpop.permute.xlu1 %1256 }
0x1352   :  { %2301 = vmatmul.mubr.msk.f32.vlgmr.msra.gmra.mrb[16].mxu1 %vm312_vm2, %v1257_v41 }
0x1353   :  { %2445 = vmatpush3.bf16.msra.mxu1 %v2909_v52  ;;  %2322 = vmatprep.mubr.msk.f32.mxu1 %vm2608_vm1, %v2609_v18 }
0x1354   :  { %2446 = vmatprep.subr.bf16.mxu1 %v2607_v8 }
0x1357   :  { %2448 = vmatpush3.bf16.msra.mxu1 %v2923_v58 }
0x1358   :  { %2455 = vmatprep.subr.bf16.mxu1 %v2607_v8 }
0x141d   :  { %v1116_v42 = vpop.f32.mrb[14].mxu1 }
0x141e   :  { %v2973_v7 = vadd.f32 %v1116_v42, %v2756_v32  ;;  %v2280_v43 = vpop.f32.mrb[15].mxu1 }
0x1425   :  { %v1326_v44 = vpop.f32.mrb[16].mxu1 }
0x1426   :  { %v1330_v45 = vadd.f32 %v1326_v44, %v2820_v6  ;;  %v2302_v46 = vpop.f32.mrb[17].mxu1 }
0x1428   :  { %2543 = vtanh.f32 %v1330_v45  ;;  %v2042_v47 = vmul.f32 -1.442695, %v1330_v45 }
0x142a   :  { %2545 = vpow2.f32 %v2042_v47 }
0x1432   :  { %v2544_v13 = vpop.eup %2543 }
0x1433   :  { %1340 = vrot.lane.b32.xlu0 %v2544_v13, %s2610_s3 }
0x1434   :  { %v2546_v26 = vpop.eup %2545 }
0x1435   :  { %v1334_v28 = vadd.f32 1.0, %v2546_v26 }
0x1437   :  { %2547 = vrcp.f32 %v1334_v28 }
0x1441   :  { %v2548_v48 = vpop.eup %2547 }
0x1442   :  { %v1338_v32 = vmul.f32 %v2548_v48, %v1241_v33 }
0x14a5   :  { %v1341_v49 = vpop.permute.xlu0 %1340 }
0x14a6   :  { %v1343_v50 = vmul.f32 %v2548_v48, %v1341_v49 }
0x14a8   :  { %1345 = vrot.lane.b32.xlu1 %v1343_v50, %s2610_s3 }
0x151a   :  { %v1346_v51 = vpop.permute.xlu1 %1345 }
0x151b   :  { %v1348_v53 = vadd.f32 %v1346_v51, %v1338_v32 }
0x151d   :  { %2549 = vtanh.f32 %v1348_v53 }
0x1527   :  { %v2550_v6 = vpop.eup %2549 }
0x1528   :  { %1351 = vrot.lane.b32.xlu0 %v2550_v6, %s2610_s3 }
0x159a   :  { %v1352_v54 = vpop.permute.xlu0 %1351 }
0x159b   :  { %v2979_v56 = vmul.f32 %v2548_v48, %v1352_v54 }
0x159d   :  { %1362 = vrot.lane.b32.xlu1 %v2979_v56, %s2611_s4 }
0x160f   :  { %v1363_v60 = vpop.permute.xlu1 %1362 }
0x1610   :  { %2312 = vmatmul.mubr.msk.f32.vlgmr.msra.gmra.mrb[18].mxu0 %vm312_vm2, %v1363_v60 }
0x1611   :  { %2451 = vmatpush3.bf16.msra.mxu0 %v2909_v52  ;;  %2333 = vmatprep.mubr.msk.f32.mxu0 %vm2608_vm1, %v2609_v18 }
0x1612   :  { %2452 = vmatprep.subr.bf16.mxu0 %v2607_v8 }
0x1615   :  { %2454 = vmatpush3.bf16.msra.mxu0 %v2923_v58 }
0x1616   :  { %2461 = vmatprep.subr.bf16.mxu0 %v2607_v8 }
0x16e3   :  { %v1432_v62 = vpop.f32.mrb[18].mxu0 }
0x16e4   :  { %v1436_v0 = vadd.f32 %v1432_v62, %v2812_v1  ;;  %v2313_v2 = vpop.f32.mrb[19].mxu0 }
0x16e6   :  { %2551 = vtanh.f32 %v1436_v0  ;;  %v2045_v9 = vmul.f32 -1.442695, %v1436_v0 }
0x16e8   :  { %2553 = vpow2.f32 %v2045_v9 }
0x16f0   :  { %v2552_v5 = vpop.eup %2551 }
0x16f1   :  { %1446 = vrot.lane.b32.xlu0 %v2552_v5, %s2610_s3 }
0x16f2   :  { %v2554_v10 = vpop.eup %2553 }
0x16f3   :  { %v1440_v24 = vadd.f32 1.0, %v2554_v10 }
0x16f5   :  { %2555 = vrcp.f32 %v1440_v24 }
0x16ff   :  { %v2556_v11 = vpop.eup %2555 }
0x1700   :  { %v1444_v34 = vmul.f32 %v2556_v11, %v1348_v53 }
0x1763   :  { %v1447_v12 = vpop.permute.xlu0 %1446 }
0x1764   :  { %v1449_v14 = vmul.f32 %v2556_v11, %v1447_v12 }
0x1766   :  { %1451 = vrot.lane.b32.xlu1 %v1449_v14, %s2610_s3 }
0x17d8   :  { %v1452_v15 = vpop.permute.xlu1 %1451 }
0x17d9   :  { %v1454_v16 = vadd.f32 %v1452_v15, %v1444_v34 }
0x17db   :  { %2557 = vtanh.f32 %v1454_v16 }
0x17e5   :  { %v2558_v1 = vpop.eup %2557 }
0x17e6   :  { %1457 = vrot.lane.b32.xlu0 %v2558_v1, %s2610_s3 }
0x1858   :  { %v1458_v17 = vpop.permute.xlu0 %1457 }
0x1859   :  { %v2994_v55 = vmul.f32 %v2556_v11, %v1458_v17 }
0x185b   :  { %1468 = vrot.lane.b32.xlu1 %v2994_v55, %s2611_s4 }
0x18cd   :  { %v1469_v4 = vpop.permute.xlu1 %1468 }
0x18ce   :  { %2323 = vmatmul.mubr.msk.f32.vlgmr.msra.gmra.mrb[18].mxu1 %vm312_vm2, %v1469_v4 }
0x18cf   :  { %2457 = vmatpush3.bf16.msra.mxu1 %v2909_v52  ;;  %2344 = vmatprep.mubr.msk.f32.mxu1 %vm2608_vm1, %v2609_v18 }
0x18d0   :  { %2458 = vmatprep.subr.bf16.mxu1 %v2607_v8 }
0x18d3   :  { %2460 = vmatpush3.bf16.msra.mxu1 %v2923_v58 }
0x18d4   :  { %2467 = vmatprep.subr.bf16.mxu1 %v2607_v8 }
0x19a1   :  { %v1538_v19 = vpop.f32.mrb[18].mxu1 }
0x19a2   :  { %v1542_v20 = vadd.f32 %v1538_v19, %v2815_v3  ;;  %v2324_v22 = vpop.f32.mrb[19].mxu1 }
0x19a4   :  { %2559 = vtanh.f32 %v1542_v20  ;;  %v2048_v25 = vmul.f32 -1.442695, %v1542_v20 }
0x19a6   :  { %2561 = vpow2.f32 %v2048_v25 }
0x19ae   :  { %v2560_v23 = vpop.eup %2559 }
0x19af   :  { %1552 = vrot.lane.b32.xlu0 %v2560_v23, %s2610_s3 }
0x19b0   :  { %v2562_v27 = vpop.eup %2561 }
0x19b1   :  { %v1546_v29 = vadd.f32 1.0, %v2562_v27 }
0x19b3   :  { %2563 = vrcp.f32 %v1546_v29 }
0x19bd   :  { %v2564_v31 = vpop.eup %2563 }
0x19be   :  { %v1550_v35 = vmul.f32 %v2564_v31, %v1454_v16 }
0x1a21   :  { %v1553_v33 = vpop.permute.xlu0 %1552 }
0x1a22   :  { %v1555_v30 = vmul.f32 %v2564_v31, %v1553_v33  ;;  %v2037_v33 = vmul.f32 -1.442695, %v2973_v7 }
0x1a24   :  { %1557 = vrot.lane.b32.xlu1 %v1555_v30, %s2610_s3 }
0x1a96   :  { %v1558_v36 = vpop.permute.xlu1 %1557 }
0x1a97   :  { %v1560_v37 = vadd.f32 %v1558_v36, %v1550_v35 }
0x1a99   :  { %2565 = vtanh.f32 %v1560_v37 }
0x1aa3   :  { %v2566_v3 = vpop.eup %2565 }
0x1aa4   :  { %1563 = vrot.lane.b32.xlu0 %v2566_v3, %s2610_s3 }
0x1b16   :  { %v1564_v38 = vpop.permute.xlu0 %1563 }
0x1b17   :  { %v3009_v40 = vmul.f32 %v2564_v31, %v1564_v38 }
0x1b19   :  { %1574 = vrot.lane.b32.xlu1 %v3009_v40, %s2611_s4 }
0x1b8b   :  { %v1575_v41 = vpop.permute.xlu1 %1574 }
0x1b8c   :  { %2334 = vmatmul.mubr.msk.f32.vlgmr.msra.gmra.mrb[20].mxu0 %vm312_vm2, %v1575_v41 }
0x1b8d   :  { %2463 = vmatpush3.bf16.msra.mxu0 %v2909_v52  ;;  %2355 = vmatprep.mubr.msk.f32.mxu0 %vm2608_vm1, %v2609_v18 }
0x1b8e   :  { %2464 = vmatprep.subr.bf16.mxu0 %v2607_v8 }
0x1b91   :  { %2466 = vmatpush3.bf16.msra.mxu0 %v2923_v58 }
0x1c5f   :  { %v1644_v42 = vpop.f32.mrb[20].mxu0 }
0x1c60   :  { %v1648_v43 = vadd.f32 %v1644_v42, %v2806_v61  ;;  %v2335_v44 = vpop.f32.mrb[21].mxu0 }
0x1c62   :  { %2567 = vtanh.f32 %v1648_v43  ;;  %v2051_v46 = vmul.f32 -1.442695, %v1648_v43 }
0x1c64   :  { %2569 = vpow2.f32 %v2051_v46 }
0x1c6c   :  { %v2568_v45 = vpop.eup %2567 }
0x1c6d   :  { %1658 = vrot.lane.b32.xlu0 %v2568_v45, %s2610_s3 }
0x1c6e   :  { %v2570_v13 = vpop.eup %2569 }
0x1c6f   :  { %v1652_v47 = vadd.f32 1.0, %v2570_v13 }
0x1c71   :  { %2571 = vrcp.f32 %v1652_v47 }
0x1c7b   :  { %v2572_v26 = vpop.eup %2571 }
0x1c7c   :  { %v1656_v49 = vmul.f32 %v2572_v26, %v1560_v37 }
0x1cdf   :  { %v1659_v28 = vpop.permute.xlu0 %1658 }
0x1ce0   :  { %v1661_v48 = vmul.f32 %v2572_v26, %v1659_v28 }
0x1ce2   :  { %1663 = vrot.lane.b32.xlu1 %v1661_v48, %s2610_s3 }
0x1d54   :  { %v1664_v50 = vpop.permute.xlu1 %1663 }
0x1d55   :  { %v1666_v32 = vadd.f32 %v1664_v50, %v1656_v49 }
0x1d57   :  { %2573 = vtanh.f32 %v1666_v32 }
0x1d61   :  { %v2574_v61 = vpop.eup %2573 }
0x1d62   :  { %1669 = vrot.lane.b32.xlu0 %v2574_v61, %s2610_s3 }
0x1dd4   :  { %v1670_v51 = vpop.permute.xlu0 %1669 }
0x1dd5   :  { %v3023_v53 = vmul.f32 %v2572_v26, %v1670_v51 }
0x1dd7   :  { %1680 = vrot.lane.b32.xlu1 %v3023_v53, %s2611_s4 }
0x1e49   :  { %v1681_v6 = vpop.permute.xlu1 %1680 }
0x1e4a   :  { %2345 = vmatmul.mubr.msk.f32.vlgmr.msra.gmra.mrb[20].mxu1 %vm312_vm2, %v1681_v6 }
0x1e4b   :  { %2469 = vmatpush3.bf16.msra.mxu1 %v2909_v52  ;;  %2366 = vmatprep.mubr.msk.f32.mxu1 %vm2608_vm1, %v2609_v18 }
0x1e4c   :  { %2470 = vmatprep.subr.bf16.mxu1 %v2607_v8 }
0x1e4f   :  { %2472 = vmatpush3.bf16.msra.mxu1 %v2923_v58 }
0x1f1d   :  { %v1750_v54 = vpop.f32.mrb[20].mxu1 }
0x1f1e   :  { %v1754_v60 = vadd.f32 %v1750_v54, %v2809_v63  ;;  %v2346_v62 = vpop.f32.mrb[21].mxu1 }
0x1f20   :  { %2575 = vtanh.f32 %v1754_v60  ;;  %v2054_v2 = vmul.f32 -1.442695, %v1754_v60 }
0x1f22   :  { %2577 = vpow2.f32 %v2054_v2 }
0x1f2a   :  { %v2576_v0 = vpop.eup %2575 }
0x1f2b   :  { %1764 = vrot.lane.b32.xlu0 %v2576_v0, %s2610_s3 }
0x1f2c   :  { %v2578_v5 = vpop.eup %2577 }
0x1f2d   :  { %v1758_v9 = vadd.f32 1.0, %v2578_v5 }
0x1f2f   :  { %2579 = vrcp.f32 %v1758_v9 }
0x1f39   :  { %v2580_v52 = vpop.eup %2579 }
0x1f3a   :  { %v1762_v8 = vmul.f32 %v2580_v52, %v1666_v32 }
0x1f9d   :  { %v1765_v10 = vpop.permute.xlu0 %1764 }
0x1f9e   :  { %v1767_v18 = vmul.f32 %v2580_v52, %v1765_v10 }
0x1fa0   :  { %1769 = vrot.lane.b32.xlu1 %v1767_v18, %s2610_s3 }
0x2012   :  { %v1770_v58 = vpop.permute.xlu1 %1769 }
0x2013   :  { %v1772_v24 = vadd.f32 %v1770_v58, %v1762_v8 }
0x2015   :  { %2581 = vtanh.f32 %v1772_v24 }
0x201f   :  { %v2582_v63 = vpop.eup %2581 }
0x2020   :  { %1775 = vrot.lane.b32.xlu0 %v2582_v63, %s2610_s3 }
0x2092   :  { %v1776_v11 = vpop.permute.xlu0 %1775 }
0x2093   :  { %v1778_v12 = vmul.f32 %v2580_v52, %v1776_v11 }
0x2095   :  { %1786 = vrot.lane.b32.xlu1 %v1778_v12, %s2611_s4 }
0x2107   :  { %v1787_v14 = vpop.permute.xlu1 %1786 }
0x2108   :  { %2356 = vmatmul.mubr.msk.f32.vlgmr.msra.gmra.mrb[22].mxu0 %vm312_vm2, %v1787_v14 }
0x21db   :  { %v1856_v34 = vpop.f32.mrb[22].mxu0 }
0x21dc   :  { %v1860_v15 = vadd.f32 %v1856_v34, %v2800_v57  ;;  %v2357_v16 = vpop.f32.mrb[23].mxu0 }
0x21de   :  { %2583 = vtanh.f32 %v1860_v15  ;;  %v2057_v17 = vmul.f32 -1.442695, %v1860_v15 }
0x21e0   :  { %2585 = vpow2.f32 %v2057_v17 }
0x21e8   :  { %v2584_v1 = vpop.eup %2583 }
0x21e9   :  { %1870 = vrot.lane.b32.xlu0 %v2584_v1, %s2610_s3 }
0x21ea   :  { %v2586_v4 = vpop.eup %2585 }
0x21eb   :  { %v1864_v19 = vadd.f32 1.0, %v2586_v4 }
0x21ed   :  { %2587 = vrcp.f32 %v1864_v19 }
0x21f7   :  { %v2588_v20 = vpop.eup %2587 }
0x21f8   :  { %v1868_v25 = vmul.f32 %v2588_v20, %v1772_v24 }
0x225b   :  { %v1871_v22 = vpop.permute.xlu0 %1870 }
0x225c   :  { %v1873_v23 = vmul.f32 %v2588_v20, %v1871_v22 }
0x225e   :  { %1875 = vrot.lane.b32.xlu1 %v1873_v23, %s2610_s3 }
0x22d0   :  { %v1876_v27 = vpop.permute.xlu1 %1875 }
0x22d1   :  { %v1878_v29 = vadd.f32 %v1876_v27, %v1868_v25 }
0x22d3   :  { %2589 = vtanh.f32 %v1878_v29 }
0x22d4   :  { %2591 = vtanh.f32 %v2973_v7 }
0x22d5   :  { %2593 = vpow2.f32 %v2037_v33 }
0x22dd   :  { %v2590_v57 = vpop.eup %2589 }
0x22de   :  { %1881 = vrot.lane.b32.xlu0 %v2590_v57, %s2610_s3  ;;  %v2592_v31 = vpop.eup %2591 }
0x22df   :  { %v2594_v30 = vpop.eup %2593 }
0x22e0   :  { %v1124_v35 = vadd.f32 1.0, %v2594_v30 }
0x22e2   :  { %1130 = vrot.lane.b32.xlu0 %v2592_v31, %s2610_s3  ;;  %2595 = vrcp.f32 %v1124_v35 }
0x22ec   :  { %v2596_v3 = vpop.eup %2595 }
0x22ed   :  { %v1128_v43 = vmul.f32 %v2596_v3, %v2944_v21 }
0x2350   :  { %v1882_v36 = vpop.permute.xlu0 %1881 }
0x2351   :  { %v1884_v37 = vmul.f32 %v2588_v20, %v1882_v36 }
0x2353   :  { %1891 = vrot.lane.b32.xlu1 %v1884_v37, %s2611_s4 }
0x2354   :  { %v1131_v38 = vpop.permute.xlu0 %1130 }
0x2355   :  { %v1133_v41 = vmul.f32 %v2596_v3, %v1131_v38 }
0x2357   :  { %1135 = vrot.lane.b32.xlu0 %v1133_v41, %s2610_s3 }
0x23c5   :  { %v1892_v42 = vpop.permute.xlu1 %1891 }
0x23c6   :  { %2367 = vmatmul.mubr.msk.f32.vlgmr.msra.gmra.mrb[22].mxu1 %vm312_vm2, %v1892_v42 }
0x23c9   :  { %v1136_v44 = vpop.permute.xlu0 %1135 }
0x23ca   :  { %v1138_v7 = vadd.f32 %v1136_v44, %v1128_v43 }
0x23cc   :  { %2597 = vtanh.f32 %v1138_v7 }
0x23d6   :  { %v2598_v45 = vpop.eup %2597 }
0x23d7   :  { %1141 = vrot.lane.b32.xlu0 %v2598_v45, %s2610_s3 }
0x2449   :  { %v1142_v46 = vpop.permute.xlu0 %1141 }
0x244a   :  { %v1144_v13 = vmul.f32 %v2596_v3, %v1142_v46 }
0x244c   :  { %1146 = vrot.lane.b32.xlu0 %v1144_v13, %s2611_s4 }
0x2450   :  { %1356 = vrot.lane.b32.xlu0 %v2979_v56, %s2612_s28 }
0x2454   :  { %1568 = vrot.lane.b32.xlu0 %v3009_v40, %s2612_s28 }
0x2458   :  { %1780 = vrot.lane.b32.xlu0 %v1778_v12, %s2612_s28 }
0x2499   :  { %v1961_v21 = vpop.f32.mrb[22].mxu1 }
0x249a   :  { %v1965_v47 = vadd.f32 %v1961_v21, %v2803_v59  ;;  %v2368_v26 = vpop.f32.mrb[23].mxu1 }
0x249c   :  { %2599 = vtanh.f32 %v1965_v47  ;;  %v2060_v49 = vmul.f32 -1.442695, %v1965_v47 }
0x249e   :  { %2601 = vpow2.f32 %v2060_v49 }
0x24a6   :  { %v2600_v28 = vpop.eup %2599 }
0x24a7   :  { %1975 = vrot.lane.b32.xlu1 %v2600_v28, %s2610_s3 }
0x24a8   :  { %v2602_v50 = vpop.eup %2601 }
0x24a9   :  { %v1969_v32 = vadd.f32 1.0, %v2602_v50 }
0x24ab   :  { %2603 = vrcp.f32 %v1969_v32 }
0x24b5   :  { %v2604_v61 = vpop.eup %2603 }
0x24b6   :  { %v1973_v54 = vmul.f32 %v2604_v61, %v1878_v29 }
0x24be   :  { %v1147_v48 = vpop.permute.xlu0 %1146 }
0x24bf   :  { %2038 = vst.msk [vmem:[%s3111_s7 + $0x38] sm:$0xff] %vm312_vm2, %v1147_v48 }
0x24c2   :  { %v1357_v56 = vpop.permute.xlu0 %1356 }
0x24c3   :  { %2043 = vst.msk [vmem:[%s3111_s7 + $0x30] sm:$0xff] %vm1252_vm3, %v1357_v56 }
0x24c6   :  { %v1569_v40 = vpop.permute.xlu0 %1568 }
0x24c7   :  { %2049 = vst.msk [vmem:[%s3111_s7 + $0x20] sm:$0xff] %vm1252_vm3, %v1569_v40 }
0x24ca   :  { %v1781_v59 = vpop.permute.xlu0 %1780 }
0x24cb   :  { %2055 = vst.msk [vmem:[%s3111_s7 + $0x10] sm:$0xff] %vm1252_vm3, %v1781_v59 }
0x2519   :  { %v1976_v51 = vpop.permute.xlu1 %1975 }
0x251a   :  { %v1978_v6 = vmul.f32 %v2604_v61, %v1976_v51 }
0x251c   :  { %1980 = vrot.lane.b32.xlu1 %v1978_v6, %s2610_s3 }
0x258e   :  { %v1981_v60 = vpop.permute.xlu1 %1980 }
0x258f   :  { %v1983_v62 = vadd.f32 %v1981_v60, %v1973_v54 }
0x2591   :  { %2605 = vtanh.f32 %v1983_v62 }
0x259b   :  { %v2606_v0 = vpop.eup %2605 }
0x259c   :  { %1986 = vrot.lane.b32.xlu1 %v2606_v0, %s2610_s3 }
0x25a0   :  { %1249 = vrot.lane.b32.xlu1 %v2950_v39, %s2612_s28 }
0x25a4   :  { %1462 = vrot.lane.b32.xlu1 %v2994_v55, %s2612_s28 }
0x25a8   :  { %1674 = vrot.lane.b32.xlu1 %v3023_v53, %s2612_s28 }
0x25ac   :  { %1886 = vrot.lane.b32.xlu1 %v1884_v37, %s2612_s28 }
0x260e   :  { %v1987_v2 = vpop.permute.xlu1 %1986 }
0x260f   :  { %v1989_v5 = vmul.f32 %v2604_v61, %v1987_v2 }
0x2611   :  { %1991 = vrot.lane.b32.xlu0 %v1989_v5, %s2612_s28 }
0x2612   :  { %v1250_v9 = vpop.permute.xlu1 %1249 }
0x2613   :  { %2040 = vst.msk [vmem:[%s3111_s7 + $0x38] sm:$0xff] %vm1252_vm3, %v1250_v9 }
0x2616   :  { %v1463_v52 = vpop.permute.xlu1 %1462 }
0x2617   :  { %2046 = vst.msk [vmem:[%s3111_s7 + $0x28] sm:$0xff] %vm1252_vm3, %v1463_v52 }
0x261a   :  { %v1675_v39 = vpop.permute.xlu1 %1674 }
0x261b   :  { %2052 = vst.msk [vmem:[%s3111_s7 + $0x18] sm:$0xff] %vm1252_vm3, %v1675_v39 }
0x261e   :  { %v1887_v55 = vpop.permute.xlu1 %1886 }
0x261f   :  { %2058 = vst.msk [vmem:[%s3111_s7 + $0x8] sm:$0xff] %vm1252_vm3, %v1887_v55 }
0x2683   :  { %v1992_v53 = vpop.permute.xlu0 %1991 }
0x2684   :  { %1994 = vst.msk [vmem:[%s3111_s7] sm:$0xff] %vm1252_vm3, %v1992_v53 }

// kernel: bilstm_encoder_forward.3
= control target key start
LH: loop header
LB: loop body
LE: loop exit
PB: predicated region body
PF: predicated region fallthrough
CT: control target
= control target key end

     0   :  { %vm49_vm0 = vcmask 523264   ;;  %v2679_v17 = vmov 0.0|0.0   ;;  %vm2680_vm1 = vmmov 0   ;;  %v2681_v27 = vmov 0.0   ;;  %s2684_s28 = smov 96   ;;  %s3213_s1 = inlined_call_operand.vmem [shape: f32[64,128], index: 1, kind: input, shape index: {}]   ;;  %s3214_s0 = inlined_call_operand.vmem [shape: f32[64,64], index: 0, kind: input, shape index: {}]   ;;  %s3215_s2 = inlined_call_operand.vmem [shape: f32[32,128], index: 2, kind: input, shape index: {}]   ;;  %s3216_s3 = inlined_call_operand.vmem [shape: f32[1,128], index: 3, kind: input, shape index: {}]   ;;  %s3217_s4 = inlined_call_operand.vmem [shape: f32[64,128], index: 4, kind: input, shape index: {}]   ;;  %s3218_s6 = inlined_call_operand.vmem [shape: f32[1,128], index: 6, kind: input, shape index: {}]   ;;  %s3219_s7 = inlined_call_operand.vmem [shape: f32[8,8,64], index: 7, kind: output, shape index: {}]   ;;  %s3220_s5 = inlined_call_operand.vmem [shape: f32[32,128], index: 5, kind: input, shape index: {}]  }
   0x1   :  { %v34_v0 = vld [vmem:[%s3213_s1] sm:$0xff]  ;;  %v35_v1 = vld [vmem:[%s3213_s1 + $0x8] sm:$0xff]  ;;  %v36_v2 = vld [vmem:[%s3213_s1 + $0x10] sm:$0xff]  ;;  %vm324_vm2 = vcmask 261120   ;;  %vm1264_vm3 = vcmask 523520  }
   0x2   :  { %v2417_v3 = vpack.c.bf16 %v35_v1, %v34_v0  ;;  %v37_v4 = vld [vmem:[%s3213_s1 + $0x18] sm:$0xff]  ;;  %v38_v6 = vld [vmem:[%s3213_s1 + $0x20] sm:$0xff]  ;;  %v39_v7 = vld [vmem:[%s3213_s1 + $0x28] sm:$0xff] }
   0x3   :  { %v2421_v5 = vpack.c.bf16 %v37_v4, %v36_v2  ;;  %v26_v8 = vld [vmem:[%s3214_s0] sm:$0xff]  ;;  %v2425_v9 = vpack.c.bf16 %v39_v7, %v38_v6  ;;  %v40_v10 = vld [vmem:[%s3213_s1 + $0x30] sm:$0xff]  ;;  %v41_v11 = vld [vmem:[%s3213_s1 + $0x38] sm:$0xff] }
   0x4   :  { %2418 = vmatprep.subr.bf16.mxu0 %v2417_v3  ;;  %2201 = vmatprep.mubr.msk.f32.mxu0 %vm49_vm0, %v26_v8  ;;  %v2429_v12 = vpack.c.bf16 %v41_v11, %v40_v10  ;;  %v315_v13 = vld [vmem:[%s3215_s2] sm:$0xff]  ;;  %v316_v14 = vld [vmem:[%s3215_s2 + $0x8] sm:$0xff]  ;;  %v2771_v18 = vld [vmem:[%s3214_s0 + $0x10] sm:$0xff] }
   0x5   :  { %2420 = vmatpush3.bf16.msra.mxu0 %v2417_v3  ;;  %2229 = vmatprep.mubr.msk.f32.mxu1 %vm49_vm0, %v26_v8  ;;  %v2763_v15 = vld [vmem:[%s3214_s0 + $0x8] sm:$0xff]  ;;  %v2765_v16 = vpack.c.bf16 %v316_v14, %v315_v13  ;;  %v317_v19 = vld [vmem:[%s3215_s2 + $0x10] sm:$0xff]  ;;  %v318_v20 = vld [vmem:[%s3215_s2 + $0x18] sm:$0xff] }
   0x6   :  { %2422 = vmatprep.subr.bf16.mxu0 %v2421_v5  ;;  %v2787_v21 = vld [vmem:[%s3214_s0 + $0x18] sm:$0xff]  ;;  %v2789_v22 = vpack.c.bf16 %v318_v20, %v317_v19  ;;  %v2794_v23 = vld [vmem:[%s3214_s0 + $0x20] sm:$0xff]  ;;  %v2804_v24 = vld [vmem:[%s3214_s0 + $0x28] sm:$0xff] }
   0x7   :  { %v2810_v25 = vld [vmem:[%s3214_s0 + $0x30] sm:$0xff]  ;;  %v2820_v26 = vld [vmem:[%s3214_s0 + $0x38] sm:$0xff]  ;;  %v2011_v28 = vld [vmem:[%s3216_s3] ss:$0 sm:$0xff]  ;;  %s2682_s3 = smov 32  }
   0x8   :  { %v187_v58 = vld [vmem:[%s3217_s4] sm:$0xff]  ;;  %v188_v59 = vld [vmem:[%s3217_s4 + $0x8] sm:$0xff]  ;;  %v189_v60 = vld [vmem:[%s3217_s4 + $0x10] sm:$0xff] }
   0x9   :  { %2424 = vmatpush3.bf16.msra.mxu0 %v2421_v5  ;;  %v2433_v61 = vpack.c.bf16 %v188_v59, %v187_v58  ;;  %v190_v62 = vld [vmem:[%s3217_s4 + $0x18] sm:$0xff]  ;;  %v191_v0 = vld [vmem:[%s3217_s4 + $0x20] sm:$0xff]  ;;  %v192_v1 = vld [vmem:[%s3217_s4 + $0x28] sm:$0xff] }
   0xa   :  { %2426 = vmatprep.subr.bf16.mxu0 %v2425_v9  ;;  %v2437_v63 = vpack.c.bf16 %v190_v62, %v189_v60  ;;  %v2441_v2 = vpack.c.bf16 %v192_v1, %v191_v0  ;;  %v193_v3 = vld [vmem:[%s3217_s4 + $0x30] sm:$0xff]  ;;  %v194_v4 = vld [vmem:[%s3217_s4 + $0x38] sm:$0xff]  ;;  %s2683_s4 = smov 64  }
   0xb   :  { %2434 = vmatprep.subr.bf16.mxu1 %v2433_v61  ;;  %v2445_v6 = vpack.c.bf16 %v194_v4, %v193_v3 }
   0xc   :  { %2436 = vmatpush3.bf16.msra.mxu1 %v2433_v61 }
   0xd   :  { %2428 = vmatpush3.bf16.msra.mxu0 %v2425_v9  ;;  %2438 = vmatprep.subr.bf16.mxu1 %v2437_v63  ;;  %v2905_v9 = vld [vmem:[%s3218_s6] ss:$0 sm:$0xff] }
   0xe   :  { %2430 = vmatprep.subr.bf16.mxu0 %v2429_v12 }
  0x10   :  { %2440 = vmatpush3.bf16.msra.mxu1 %v2437_v63 }
  0x11   :  { %2432 = vmatpush3.bf16.msra.mxu0 %v2429_v12  ;;  %2442 = vmatprep.subr.bf16.mxu1 %v2441_v2 }
  0x12   :  { %2449 = vmatprep.subr.bf16.mxu0 %v2679_v17 }
  0x14   :  { %2202 = vmatmul.mubr.msk.f32.vlgmr.msra.gmra.mrb[0].mxu0 %vm49_vm0, %v2763_v15  ;;  %2444 = vmatpush3.bf16.msra.mxu1 %v2441_v2 }
  0x15   :  { %2451 = vmatpush3.bf16.msra.mxu0 %v2765_v16  ;;  %2204 = vmatprep.mubr.msk.f32.mxu0 %vm49_vm0, %v2771_v18 }
  0x16   :  { %2452 = vmatprep.subr.bf16.mxu0 %v2679_v17  ;;  %2446 = vmatprep.subr.bf16.mxu1 %v2445_v6 }
  0x18   :  { %2205 = vmatmul.mubr.msk.f32.gmra.mrb[2].mxu0 %vm49_vm0, %v2787_v21  ;;  %2448 = vmatpush3.bf16.msra.mxu1 %v2445_v6 }
  0x19   :  { %2207 = vmatprep.mubr.msk.f32.mxu0 %vm49_vm0, %v2794_v23  ;;  %2454 = vmatpush3.bf16.msra.mxu0 %v2789_v22 }
  0x1a   :  { %2461 = vmatprep.subr.bf16.mxu0 %v2679_v17  ;;  %2455 = vmatprep.subr.bf16.mxu1 %v2679_v17 }
  0x1b   :  { %2230 = vmatmul.mubr.msk.f32.vlgmr.msra.gmra.mrb[0].mxu1 %vm49_vm0, %v2763_v15 }
  0x1c   :  { %2208 = vmatmul.mubr.msk.f32.gmra.mrb[4].mxu0 %vm49_vm0, %v2804_v24  ;;  %2457 = vmatpush3.bf16.msra.mxu1 %v2765_v16 }
  0x1d   :  { %2210 = vmatprep.mubr.msk.f32.mxu0 %vm49_vm0, %v2810_v25  ;;  %2232 = vmatprep.mubr.msk.f32.mxu1 %vm49_vm0, %v2771_v18 }
  0x1e   :  { %2458 = vmatprep.subr.bf16.mxu1 %v2679_v17 }
  0x1f   :  { %2233 = vmatmul.mubr.msk.f32.gmra.mrb[2].mxu1 %vm49_vm0, %v2787_v21 }
  0x20   :  { %2211 = vmatmul.mubr.msk.f32.gmra.mrb[6].mxu0 %vm49_vm0, %v2820_v26  ;;  %2235 = vmatprep.mubr.msk.f32.mxu1 %vm49_vm0, %v2794_v23 }
  0x21   :  { %2249 = vmatprep.mubr.msk.f32.mxu0 %vm2680_vm1, %v2681_v27  ;;  %2460 = vmatpush3.bf16.msra.mxu1 %v2789_v22 }
  0x22   :  { %2467 = vmatprep.subr.bf16.mxu1 %v2679_v17 }
  0x23   :  { %2236 = vmatmul.mubr.msk.f32.gmra.mrb[4].mxu1 %vm49_vm0, %v2804_v24 }
  0x24   :  { %2250 = vmatmul.mubr.f32.vlgmr.msra.gmra.mrb[8].mxu0 %v2681_v27  ;;  %2238 = vmatprep.mubr.msk.f32.mxu1 %vm49_vm0, %v2810_v25 }
  0x25   :  { %2463 = vmatpush3.bf16.msra.mxu0 %v2765_v16  ;;  %2271 = vmatprep.mubr.msk.f32.mxu0 %vm2680_vm1, %v2681_v27 }
  0x26   :  { %2464 = vmatprep.subr.bf16.mxu0 %v2679_v17 }
  0x27   :  { %2239 = vmatmul.mubr.msk.f32.gmra.mrb[6].mxu1 %vm49_vm0, %v2820_v26 }
  0x28   :  { %2260 = vmatprep.mubr.msk.f32.mxu1 %vm2680_vm1, %v2681_v27 }
  0x29   :  { %2466 = vmatpush3.bf16.msra.mxu0 %v2789_v22 }
  0x2a   :  { %2473 = vmatprep.subr.bf16.mxu0 %v2679_v17 }
  0xe7   :  { %v2203_v29 = vpop.f32.mrb[0].mxu0 }
  0xe8   :  { %v2836_v30 = vadd.f32 %v2203_v29, %v2011_v28  ;;  %v140_v31 = vpop.f32.mrb[1].mxu0 }
  0xe9   :  { %v141_v44 = vadd.f32 %v2011_v28, %v140_v31 }
  0xeb   :  { %v2206_v32 = vpop.f32.mrb[2].mxu0 }
  0xec   :  { %v2838_v33 = vadd.f32 %v2206_v32, %v2011_v28  ;;  %v150_v34 = vpop.f32.mrb[3].mxu0 }
  0xed   :  { %v2840_v35 = vadd.f32 %v2011_v28, %v150_v34 }
  0xee   :  { %v2231_v10 = vpop.f32.mrb[0].mxu1 }
  0xef   :  { %v2209_v36 = vpop.f32.mrb[4].mxu0  ;;  %v2908_v11 = vadd.f32 %v2231_v10, %v2905_v9  ;;  %v268_v12 = vpop.f32.mrb[1].mxu1 }
  0xf0   :  { %v2842_v37 = vadd.f32 %v2209_v36, %v2011_v28  ;;  %v160_v38 = vpop.f32.mrb[5].mxu0  ;;  %v2911_v13 = vadd.f32 %v2905_v9, %v268_v12 }
  0xf1   :  { %v2844_v39 = vadd.f32 %v2011_v28, %v160_v38 }
  0xf2   :  { %v2234_v14 = vpop.f32.mrb[2].mxu1 }
  0xf3   :  { %v2212_v40 = vpop.f32.mrb[6].mxu0  ;;  %v2914_v15 = vadd.f32 %v2234_v14, %v2905_v9  ;;  %v278_v18 = vpop.f32.mrb[3].mxu1 }
  0xf4   :  { %v2846_v41 = vadd.f32 %v2212_v40, %v2011_v28  ;;  %v170_v42 = vpop.f32.mrb[7].mxu0  ;;  %v2917_v19 = vadd.f32 %v2905_v9, %v278_v18 }
  0xf5   :  { %v2848_v43 = vadd.f32 %v2011_v28, %v170_v42 }
  0xf6   :  { %v2237_v20 = vpop.f32.mrb[4].mxu1 }
  0xf7   :  { %v394_v45 = vpop.f32.mrb[8].mxu0  ;;  %v2920_v21 = vadd.f32 %v2237_v20, %v2905_v9  ;;  %v288_v23 = vpop.f32.mrb[5].mxu1 }
  0xf8   :  { %v398_v46 = vadd.f32 %v394_v45, %v141_v44  ;;  %v2251_v47 = vpop.f32.mrb[9].mxu0  ;;  %v2923_v24 = vadd.f32 %v2905_v9, %v288_v23 }
  0xfa   :  { %2551 = vtanh.f32 %v398_v46  ;;  %v2029_v49 = vmul.f32 -1.442695, %v398_v46  ;;  %v2930_v26 = vpop.f32.mrb[6].mxu1 }
  0xfb   :  { %v298_v28 = vpop.f32.mrb[7].mxu1 }
  0xfc   :  { %2553 = vpow2.f32 %v2029_v49  ;;  %v2936_v29 = vadd.f32 %v2905_v9, %v298_v28 }
 0x104   :  { %v2552_v48 = vpop.eup %2551 }
 0x105   :  { %408 = vrot.lane.b32.xlu0 %v2552_v48, %s2682_s3 }
 0x106   :  { %v2554_v50 = vpop.eup %2553 }
 0x107   :  { %v402_v51 = vadd.f32 1.0, %v2554_v50 }
 0x109   :  { %2555 = vrcp.f32 %v402_v51 }
 0x113   :  { %v2556_v52 = vpop.eup %2555 }
 0x114   :  { %v406_v55 = vmul.f32 0.0, %v2556_v52 }
 0x177   :  { %v409_v53 = vpop.permute.xlu0 %408 }
 0x178   :  { %v411_v54 = vmul.f32 %v2556_v52, %v409_v53 }
 0x17a   :  { %413 = vrot.lane.b32.xlu0 %v411_v54, %s2682_s3 }
 0x1ec   :  { %v414_v56 = vpop.permute.xlu0 %413 }
 0x1ed   :  { %v2852_v57 = vadd.f32 %v414_v56, %v406_v55 }
 0x1ef   :  { %2557 = vtanh.f32 %v2852_v57 }
 0x1f9   :  { %v2558_v5 = vpop.eup %2557 }
 0x1fa   :  { %419 = vrot.lane.b32.xlu1 %v2558_v5, %s2682_s3 }
 0x26c   :  { %v420_v7 = vpop.permute.xlu1 %419 }
 0x26d   :  { %v422_v8 = vmul.f32 %v2556_v52, %v420_v7 }
 0x26f   :  { %424 = vrot.lane.b32.xlu1 %v422_v8, %s2683_s4 }
 0x2e1   :  { %v425_v25 = vpop.permute.xlu1 %424 }
 0x2e2   :  { %427 = vst.msk [vmem:[%s3219_s7] sm:$0xff] %vm324_vm2, %v425_v25  ;;  %2261 = vmatmul.mubr.msk.f32.vlgmr.msra.gmra.mrb[8].mxu1 %vm324_vm2, %v425_v25 }
 0x2e3   :  { %2469 = vmatpush3.bf16.msra.mxu1 %v2765_v16  ;;  %2282 = vmatprep.mubr.msk.f32.mxu1 %vm2680_vm1, %v2681_v27 }
 0x2e4   :  { %2470 = vmatprep.subr.bf16.mxu1 %v2679_v17 }
 0x2e7   :  { %2472 = vmatpush3.bf16.msra.mxu1 %v2789_v22 }
 0x2e8   :  { %2479 = vmatprep.subr.bf16.mxu1 %v2679_v17 }
 0x3b5   :  { %v498_v31 = vpop.f32.mrb[8].mxu1 }
 0x3b6   :  { %v502_v32 = vadd.f32 %v498_v31, %v2836_v30  ;;  %v2262_v34 = vpop.f32.mrb[9].mxu1 }
 0x3b8   :  { %2559 = vtanh.f32 %v502_v32  ;;  %v2031_v38 = vmul.f32 -1.442695, %v502_v32 }
 0x3ba   :  { %2561 = vpow2.f32 %v2031_v38 }
 0x3c2   :  { %v2560_v36 = vpop.eup %2559 }
 0x3c3   :  { %512 = vrot.lane.b32.xlu0 %v2560_v36, %s2682_s3 }
 0x3c4   :  { %v2562_v40 = vpop.eup %2561 }
 0x3c5   :  { %v506_v42 = vadd.f32 1.0, %v2562_v40 }
 0x3c7   :  { %2563 = vrcp.f32 %v506_v42 }
 0x3d1   :  { %v2564_v44 = vpop.eup %2563 }
 0x3d2   :  { %v510_v47 = vmul.f32 %v2564_v44, %v2852_v57 }
 0x435   :  { %v513_v45 = vpop.permute.xlu0 %512 }
 0x436   :  { %v515_v46 = vmul.f32 %v2564_v44, %v513_v45 }
 0x438   :  { %517 = vrot.lane.b32.xlu1 %v515_v46, %s2682_s3 }
 0x4aa   :  { %v518_v48 = vpop.permute.xlu1 %517 }
 0x4ab   :  { %v520_v49 = vadd.f32 %v518_v48, %v510_v47 }
 0x4ad   :  { %2565 = vtanh.f32 %v520_v49 }
 0x4b7   :  { %v2566_v30 = vpop.eup %2565 }
 0x4b8   :  { %523 = vrot.lane.b32.xlu0 %v2566_v30, %s2682_s3 }
 0x52a   :  { %v524_v50 = vpop.permute.xlu0 %523 }
 0x52b   :  { %v526_v51 = vmul.f32 %v2564_v44, %v524_v50 }
 0x52d   :  { %528 = vrot.lane.b32.xlu1 %v526_v51, %s2683_s4 }
 0x59f   :  { %v529_v52 = vpop.permute.xlu1 %528 }
 0x5a0   :  { %2032 = vst.msk [vmem:[%s3219_s7 + $0x8] sm:$0xff] %vm324_vm2, %v529_v52  ;;  %2272 = vmatmul.mubr.msk.f32.vlgmr.msra.gmra.mrb[10].mxu0 %vm324_vm2, %v529_v52 }
 0x5a1   :  { %2475 = vmatpush3.bf16.msra.mxu0 %v2765_v16  ;;  %2293 = vmatprep.mubr.msk.f32.mxu0 %vm2680_vm1, %v2681_v27 }
 0x5a2   :  { %2476 = vmatprep.subr.bf16.mxu0 %v2679_v17 }
 0x5a5   :  { %2478 = vmatpush3.bf16.msra.mxu0 %v2789_v22 }
 0x5a6   :  { %2485 = vmatprep.subr.bf16.mxu0 %v2679_v17 }
 0x673   :  { %v603_v53 = vpop.f32.mrb[10].mxu0 }
 0x674   :  { %v607_v54 = vadd.f32 %v603_v53, %v2840_v35  ;;  %v2273_v55 = vpop.f32.mrb[11].mxu0 }
 0x676   :  { %2567 = vtanh.f32 %v607_v54  ;;  %v2034_v57 = vmul.f32 -1.442695, %v607_v54 }
 0x678   :  { %2569 = vpow2.f32 %v2034_v57 }
 0x680   :  { %v2568_v56 = vpop.eup %2567 }
 0x681   :  { %617 = vrot.lane.b32.xlu0 %v2568_v56, %s2682_s3 }
 0x682   :  { %v2570_v58 = vpop.eup %2569 }
 0x683   :  { %v611_v59 = vadd.f32 1.0, %v2570_v58 }
 0x685   :  { %2571 = vrcp.f32 %v611_v59 }
 0x68f   :  { %v2572_v60 = vpop.eup %2571 }
 0x690   :  { %v615_v63 = vmul.f32 %v2572_v60, %v520_v49 }
 0x6f3   :  { %v618_v61 = vpop.permute.xlu0 %617 }
 0x6f4   :  { %v620_v62 = vmul.f32 %v2572_v60, %v618_v61 }
 0x6f6   :  { %622 = vrot.lane.b32.xlu1 %v620_v62, %s2682_s3 }
 0x768   :  { %v623_v0 = vpop.permute.xlu1 %622 }
 0x769   :  { %v625_v1 = vadd.f32 %v623_v0, %v615_v63 }
 0x76b   :  { %2573 = vtanh.f32 %v625_v1 }
 0x775   :  { %v2574_v35 = vpop.eup %2573 }
 0x776   :  { %628 = vrot.lane.b32.xlu0 %v2574_v35, %s2682_s3 }
 0x7e8   :  { %v629_v2 = vpop.permute.xlu0 %628 }
 0x7e9   :  { %v631_v3 = vmul.f32 %v2572_v60, %v629_v2 }
 0x7eb   :  { %633 = vrot.lane.b32.xlu1 %v631_v3, %s2683_s4 }
 0x85d   :  { %v634_v4 = vpop.permute.xlu1 %633 }
 0x85e   :  { %2035 = vst.msk [vmem:[%s3219_s7 + $0x10] sm:$0xff] %vm324_vm2, %v634_v4  ;;  %2283 = vmatmul.mubr.msk.f32.vlgmr.msra.gmra.mrb[10].mxu1 %vm324_vm2, %v634_v4  ;;  %v319_v4 = vld [vmem:[%s3220_s5] sm:$0xff] }
 0x85f   :  { %2481 = vmatpush3.bf16.msra.mxu1 %v2765_v16  ;;  %2304 = vmatprep.mubr.msk.f32.mxu1 %vm2680_vm1, %v2681_v27 }
 0x860   :  { %2482 = vmatprep.subr.bf16.mxu1 %v2679_v17 }
 0x863   :  { %2484 = vmatpush3.bf16.msra.mxu1 %v2789_v22 }
 0x864   :  { %2491 = vmatprep.subr.bf16.mxu1 %v2679_v17 }
 0x931   :  { %v708_v5 = vpop.f32.mrb[10].mxu1 }
 0x932   :  { %v712_v6 = vadd.f32 %v708_v5, %v2838_v33  ;;  %v2284_v7 = vpop.f32.mrb[11].mxu1  ;;  %v320_v5 = vld [vmem:[%s3220_s5 + $0x8] sm:$0xff] }
 0x933   :  { %v321_v7 = vld [vmem:[%s3220_s5 + $0x10] sm:$0xff] }
 0x934   :  { %2575 = vtanh.f32 %v712_v6  ;;  %v2037_v10 = vmul.f32 -1.442695, %v712_v6  ;;  %v3017_v6 = vpack.c.bf16 %v320_v5, %v319_v4 }
 0x936   :  { %2577 = vpow2.f32 %v2037_v10 }
 0x93e   :  { %v2576_v8 = vpop.eup %2575 }
 0x93f   :  { %722 = vrot.lane.b32.xlu0 %v2576_v8, %s2682_s3  ;;  %v322_v8 = vld [vmem:[%s3220_s5 + $0x18] sm:$0xff] }
 0x940   :  { %v2578_v12 = vpop.eup %2577 }
 0x941   :  { %v716_v14 = vadd.f32 1.0, %v2578_v12  ;;  %v3031_v12 = vpack.c.bf16 %v322_v8, %v321_v7 }
 0x943   :  { %2579 = vrcp.f32 %v716_v14 }
 0x94d   :  { %v2580_v18 = vpop.eup %2579 }
 0x94e   :  { %v720_v25 = vmul.f32 %v2580_v18, %v625_v1 }
 0x9b1   :  { %v723_v20 = vpop.permute.xlu0 %722 }
 0x9b2   :  { %v725_v23 = vmul.f32 %v2580_v18, %v723_v20 }
 0x9b4   :  { %727 = vrot.lane.b32.xlu1 %v725_v23, %s2682_s3  ;;  %v304_v23 = vadd.f32 %v2930_v26, %v2905_v9 }
 0xa26   :  { %v728_v28 = vpop.permute.xlu1 %727 }
 0xa27   :  { %v730_v31 = vadd.f32 %v728_v28, %v720_v25 }
 0xa29   :  { %2581 = vtanh.f32 %v730_v31 }
 0xa33   :  { %v2582_v33 = vpop.eup %2581 }
 0xa34   :  { %733 = vrot.lane.b32.xlu0 %v2582_v33, %s2682_s3 }
 0xaa6   :  { %v734_v32 = vpop.permute.xlu0 %733 }
 0xaa7   :  { %v736_v34 = vmul.f32 %v2580_v18, %v734_v32 }
 0xaa9   :  { %738 = vrot.lane.b32.xlu1 %v736_v34, %s2683_s4 }
 0xb1b   :  { %v739_v36 = vpop.permute.xlu1 %738 }
 0xb1c   :  { %2038 = vst.msk [vmem:[%s3219_s7 + $0x18] sm:$0xff] %vm324_vm2, %v739_v36  ;;  %2294 = vmatmul.mubr.msk.f32.vlgmr.msra.gmra.mrb[12].mxu0 %vm324_vm2, %v739_v36 }
 0xb1d   :  { %2487 = vmatpush3.bf16.msra.mxu0 %v2765_v16  ;;  %2315 = vmatprep.mubr.msk.f32.mxu0 %vm2680_vm1, %v2681_v27 }
 0xb1e   :  { %2488 = vmatprep.subr.bf16.mxu0 %v2679_v17 }
 0xb21   :  { %2490 = vmatpush3.bf16.msra.mxu0 %v2789_v22 }
 0xb22   :  { %2497 = vmatprep.subr.bf16.mxu0 %v2679_v17 }
 0xbef   :  { %v813_v38 = vpop.f32.mrb[12].mxu0 }
 0xbf0   :  { %v817_v40 = vadd.f32 %v813_v38, %v2844_v39  ;;  %v2295_v42 = vpop.f32.mrb[13].mxu0 }
 0xbf2   :  { %2583 = vtanh.f32 %v817_v40  ;;  %v2040_v45 = vmul.f32 -1.442695, %v817_v40 }
 0xbf4   :  { %2585 = vpow2.f32 %v2040_v45 }
 0xbfc   :  { %v2584_v44 = vpop.eup %2583 }
 0xbfd   :  { %827 = vrot.lane.b32.xlu0 %v2584_v44, %s2682_s3 }
 0xbfe   :  { %v2586_v46 = vpop.eup %2585 }
 0xbff   :  { %v821_v47 = vadd.f32 1.0, %v2586_v46 }
 0xc01   :  { %2587 = vrcp.f32 %v821_v47 }
 0xc0b   :  { %v2588_v48 = vpop.eup %2587 }
 0xc0c   :  { %v825_v50 = vmul.f32 %v2588_v48, %v730_v31 }
 0xc6f   :  { %v828_v49 = vpop.permute.xlu0 %827 }
 0xc70   :  { %v830_v30 = vmul.f32 %v2588_v48, %v828_v49 }
 0xc72   :  { %832 = vrot.lane.b32.xlu1 %v830_v30, %s2682_s3 }
 0xce4   :  { %v833_v51 = vpop.permute.xlu1 %832 }
 0xce5   :  { %v835_v52 = vadd.f32 %v833_v51, %v825_v50 }
 0xce7   :  { %2589 = vtanh.f32 %v835_v52 }
 0xcf1   :  { %v2590_v39 = vpop.eup %2589 }
 0xcf2   :  { %838 = vrot.lane.b32.xlu0 %v2590_v39, %s2682_s3 }
 0xd64   :  { %v839_v53 = vpop.permute.xlu0 %838 }
 0xd65   :  { %v841_v54 = vmul.f32 %v2588_v48, %v839_v53 }
 0xd67   :  { %843 = vrot.lane.b32.xlu1 %v841_v54, %s2683_s4 }
 0xdd9   :  { %v844_v55 = vpop.permute.xlu1 %843 }
 0xdda   :  { %2041 = vst.msk [vmem:[%s3219_s7 + $0x20] sm:$0xff] %vm324_vm2, %v844_v55  ;;  %2305 = vmatmul.mubr.msk.f32.vlgmr.msra.gmra.mrb[12].mxu1 %vm324_vm2, %v844_v55 }
 0xddb   :  { %2493 = vmatpush3.bf16.msra.mxu1 %v2765_v16  ;;  %2326 = vmatprep.mubr.msk.f32.mxu1 %vm2680_vm1, %v2681_v27 }
 0xddc   :  { %2494 = vmatprep.subr.bf16.mxu1 %v2679_v17 }
 0xddf   :  { %2496 = vmatpush3.bf16.msra.mxu1 %v2789_v22 }
 0xde0   :  { %2503 = vmatprep.subr.bf16.mxu1 %v2679_v17 }
 0xead   :  { %v918_v56 = vpop.f32.mrb[12].mxu1 }
 0xeae   :  { %v922_v57 = vadd.f32 %v918_v56, %v2842_v37  ;;  %v2306_v58 = vpop.f32.mrb[13].mxu1 }
 0xeb0   :  { %2591 = vtanh.f32 %v922_v57  ;;  %v2043_v60 = vmul.f32 -1.442695, %v922_v57 }
 0xeb2   :  { %2593 = vpow2.f32 %v2043_v60 }
 0xeba   :  { %v2592_v59 = vpop.eup %2591 }
 0xebb   :  { %932 = vrot.lane.b32.xlu0 %v2592_v59, %s2682_s3 }
 0xebc   :  { %v2594_v16 = vpop.eup %2593 }
 0xebd   :  { %v926_v61 = vadd.f32 1.0, %v2594_v16 }
 0xebf   :  { %2595 = vrcp.f32 %v926_v61 }
 0xec9   :  { %v2596_v62 = vpop.eup %2595 }
 0xeca   :  { %v930_v22 = vmul.f32 %v2596_v62, %v835_v52 }
 0xf2d   :  { %v933_v63 = vpop.permute.xlu0 %932 }
 0xf2e   :  { %v935_v0 = vmul.f32 %v2596_v62, %v933_v63 }
 0xf30   :  { %937 = vrot.lane.b32.xlu1 %v935_v0, %s2682_s3 }
 0xfa2   :  { %v938_v1 = vpop.permute.xlu1 %937 }
 0xfa3   :  { %v940_v35 = vadd.f32 %v938_v1, %v930_v22 }
 0xfa5   :  { %2597 = vtanh.f32 %v940_v35 }
 0xfaf   :  { %v2598_v37 = vpop.eup %2597 }
 0xfb0   :  { %943 = vrot.lane.b32.xlu0 %v2598_v37, %s2682_s3 }
0x1022   :  { %v944_v2 = vpop.permute.xlu0 %943 }
0x1023   :  { %v946_v3 = vmul.f32 %v2596_v62, %v944_v2 }
0x1025   :  { %948 = vrot.lane.b32.xlu1 %v946_v3, %s2683_s4 }
0x1097   :  { %v949_v10 = vpop.permute.xlu1 %948 }
0x1098   :  { %2044 = vst.msk [vmem:[%s3219_s7 + $0x28] sm:$0xff] %vm324_vm2, %v949_v10  ;;  %2316 = vmatmul.mubr.msk.f32.vlgmr.msra.gmra.mrb[14].mxu0 %vm324_vm2, %v949_v10 }
0x1099   :  { %2499 = vmatpush3.bf16.msra.mxu0 %v3017_v6  ;;  %2337 = vmatprep.mubr.msk.f32.mxu0 %vm2680_vm1, %v2681_v27 }
0x109a   :  { %2500 = vmatprep.subr.bf16.mxu0 %v2679_v17 }
0x109d   :  { %2502 = vmatpush3.bf16.msra.mxu0 %v3031_v12 }
0x109e   :  { %2509 = vmatprep.subr.bf16.mxu0 %v2679_v17 }
0x10a0   :  { %2338 = vmatmul.mubr.f32.vlgmr.msra.gmra.mrb[16].mxu0 %v2681_v27 }
0x10a1   :  { %2511 = vmatpush3.bf16.msra.mxu0 %v3017_v6  ;;  %2359 = vmatprep.mubr.msk.f32.mxu0 %vm2680_vm1, %v2681_v27 }
0x10a2   :  { %2512 = vmatprep.subr.bf16.mxu0 %v2679_v17 }
0x10a5   :  { %2514 = vmatpush3.bf16.msra.mxu0 %v3031_v12 }
0x10a6   :  { %2521 = vmatprep.subr.bf16.mxu0 %v2679_v17 }
0x116b   :  { %v1023_v14 = vpop.f32.mrb[14].mxu0 }
0x116c   :  { %v1027_v18 = vadd.f32 %v1023_v14, %v2848_v43  ;;  %v2317_v20 = vpop.f32.mrb[15].mxu0 }
0x116e   :  { %2599 = vtanh.f32 %v1027_v18  ;;  %v2046_v34 = vmul.f32 -1.442695, %v1027_v18 }
0x1173   :  { %v1231_v25 = vpop.f32.mrb[16].mxu0 }
0x1174   :  { %v1235_v28 = vadd.f32 %v1231_v25, %v304_v23  ;;  %v2339_v31 = vpop.f32.mrb[17].mxu0 }
0x1176   :  { %2601 = vtanh.f32 %v1235_v28  ;;  %v2051_v36 = vmul.f32 -1.442695, %v1235_v28 }
0x1177   :  { %2603 = vpow2.f32 %v2046_v34 }
0x1178   :  { %v2600_v33 = vpop.eup %2599  ;;  %2605 = vpow2.f32 %v2051_v36 }
0x1179   :  { %1037 = vrot.lane.b32.xlu0 %v2600_v33, %s2682_s3 }
0x1180   :  { %v2602_v32 = vpop.eup %2601 }
0x1181   :  { %1245 = vrot.lane.b32.xlu1 %v2602_v32, %s2682_s3  ;;  %v2604_v43 = vpop.eup %2603 }
0x1182   :  { %v1031_v38 = vadd.f32 1.0, %v2604_v43  ;;  %v2606_v40 = vpop.eup %2605 }
0x1183   :  { %v1239_v42 = vadd.f32 1.0, %v2606_v40 }
0x1184   :  { %2607 = vrcp.f32 %v1031_v38 }
0x1185   :  { %2609 = vrcp.f32 %v1239_v42 }
0x118e   :  { %v2608_v9 = vpop.eup %2607 }
0x118f   :  { %v2610_v45 = vpop.eup %2609  ;;  %v1035_v48 = vmul.f32 %v2608_v9, %v940_v35 }
0x1190   :  { %v1243_v50 = vmul.f32 0.0, %v2610_v45 }
0x11eb   :  { %v1038_v26 = vpop.permute.xlu0 %1037 }
0x11ec   :  { %v1040_v44 = vmul.f32 %v2608_v9, %v1038_v26 }
0x11ee   :  { %1042 = vrot.lane.b32.xlu0 %v1040_v44, %s2682_s3 }
0x11f3   :  { %v1246_v46 = vpop.permute.xlu1 %1245 }
0x11f4   :  { %v1248_v47 = vmul.f32 %v2610_v45, %v1246_v46 }
0x11f6   :  { %1250 = vrot.lane.b32.xlu1 %v1248_v47, %s2682_s3 }
0x1260   :  { %v1043_v49 = vpop.permute.xlu0 %1042 }
0x1261   :  { %v3052_v30 = vadd.f32 %v1043_v49, %v1035_v48 }
0x1263   :  { %2611 = vtanh.f32 %v3052_v30 }
0x1268   :  { %v1251_v51 = vpop.permute.xlu1 %1250 }
0x1269   :  { %v1253_v52 = vadd.f32 %v1251_v51, %v1243_v50 }
0x126b   :  { %2613 = vtanh.f32 %v1253_v52 }
0x126d   :  { %v2612_v39 = vpop.eup %2611 }
0x126e   :  { %1048 = vrot.lane.b32.xlu0 %v2612_v39, %s2682_s3 }
0x1275   :  { %v2614_v53 = vpop.eup %2613 }
0x1276   :  { %1256 = vrot.lane.b32.xlu1 %v2614_v53, %s2682_s3 }
0x12e0   :  { %v1049_v54 = vpop.permute.xlu0 %1048 }
0x12e1   :  { %v1051_v55 = vmul.f32 %v2608_v9, %v1049_v54 }
0x12e3   :  { %1053 = vrot.lane.b32.xlu0 %v1051_v55, %s2683_s4 }
0x12e8   :  { %v1257_v56 = vpop.permute.xlu1 %1256 }
0x12e9   :  { %v3058_v57 = vmul.f32 %v2610_v45, %v1257_v56 }
0x12eb   :  { %1268 = vrot.lane.b32.xlu1 %v3058_v57, %s2683_s4 }
0x1355   :  { %v1054_v58 = vpop.permute.xlu0 %1053 }
0x1356   :  { %2047 = vst.msk [vmem:[%s3219_s7 + $0x30] sm:$0xff] %vm324_vm2, %v1054_v58  ;;  %2327 = vmatmul.mubr.msk.f32.vlgmr.msra.gmra.mrb[14].mxu1 %vm324_vm2, %v1054_v58 }
0x1357   :  { %2505 = vmatpush3.bf16.msra.mxu1 %v3017_v6  ;;  %2348 = vmatprep.mubr.msk.f32.mxu1 %vm2680_vm1, %v2681_v27 }
0x1358   :  { %2506 = vmatprep.subr.bf16.mxu1 %v2679_v17 }
0x135b   :  { %2508 = vmatpush3.bf16.msra.mxu1 %v3031_v12 }
0x135c   :  { %2515 = vmatprep.subr.bf16.mxu1 %v2679_v17 }
0x135d   :  { %v1269_v59 = vpop.permute.xlu1 %1268 }
0x135e   :  { %2349 = vmatmul.mubr.msk.f32.vlgmr.msra.gmra.mrb[16].mxu1 %vm324_vm2, %v1269_v59 }
0x135f   :  { %2517 = vmatpush3.bf16.msra.mxu1 %v3017_v6  ;;  %2370 = vmatprep.mubr.msk.f32.mxu1 %vm2680_vm1, %v2681_v27 }
0x1360   :  { %2518 = vmatprep.subr.bf16.mxu1 %v2679_v17 }
0x1363   :  { %2520 = vmatpush3.bf16.msra.mxu1 %v3031_v12 }
0x1364   :  { %2527 = vmatprep.subr.bf16.mxu1 %v2679_v17 }
0x1429   :  { %v1128_v60 = vpop.f32.mrb[14].mxu1 }
0x142a   :  { %v3081_v16 = vadd.f32 %v1128_v60, %v2846_v41  ;;  %v2328_v61 = vpop.f32.mrb[15].mxu1 }
0x1431   :  { %v1338_v62 = vpop.f32.mrb[16].mxu1 }
0x1432   :  { %v1342_v63 = vadd.f32 %v1338_v62, %v2936_v29  ;;  %v2350_v0 = vpop.f32.mrb[17].mxu1 }
0x1434   :  { %2615 = vtanh.f32 %v1342_v63  ;;  %v2054_v1 = vmul.f32 -1.442695, %v1342_v63 }
0x1436   :  { %2617 = vpow2.f32 %v2054_v1 }
0x143e   :  { %v2616_v22 = vpop.eup %2615 }
0x143f   :  { %1352 = vrot.lane.b32.xlu0 %v2616_v22, %s2682_s3 }
0x1440   :  { %v2618_v35 = vpop.eup %2617 }
0x1441   :  { %v1346_v37 = vadd.f32 1.0, %v2618_v35 }
0x1443   :  { %2619 = vrcp.f32 %v1346_v37 }
0x144d   :  { %v2620_v2 = vpop.eup %2619 }
0x144e   :  { %v1350_v41 = vmul.f32 %v2620_v2, %v1253_v52 }
0x14b1   :  { %v1353_v3 = vpop.permute.xlu0 %1352 }
0x14b2   :  { %v1355_v4 = vmul.f32 %v2620_v2, %v1353_v3 }
0x14b4   :  { %1357 = vrot.lane.b32.xlu1 %v1355_v4, %s2682_s3 }
0x1526   :  { %v1358_v5 = vpop.permute.xlu1 %1357 }
0x1527   :  { %v1360_v7 = vadd.f32 %v1358_v5, %v1350_v41 }
0x1529   :  { %2621 = vtanh.f32 %v1360_v7 }
0x1533   :  { %v2622_v29 = vpop.eup %2621 }
0x1534   :  { %1363 = vrot.lane.b32.xlu0 %v2622_v29, %s2682_s3 }
0x15a6   :  { %v1364_v8 = vpop.permute.xlu0 %1363 }
0x15a7   :  { %v3087_v10 = vmul.f32 %v2620_v2, %v1364_v8 }
0x15a9   :  { %1374 = vrot.lane.b32.xlu1 %v3087_v10, %s2683_s4 }
0x161b   :  { %v1375_v14 = vpop.permute.xlu1 %1374 }
0x161c   :  { %2360 = vmatmul.mubr.msk.f32.vlgmr.msra.gmra.mrb[18].mxu0 %vm324_vm2, %v1375_v14 }
0x161d   :  { %2523 = vmatpush3.bf16.msra.mxu0 %v3017_v6  ;;  %2381 = vmatprep.mubr.msk.f32.mxu0 %vm2680_vm1, %v2681_v27 }
0x161e   :  { %2524 = vmatprep.subr.bf16.mxu0 %v2679_v17 }
0x1621   :  { %2526 = vmatpush3.bf16.msra.mxu0 %v3031_v12 }
0x1622   :  { %2533 = vmatprep.subr.bf16.mxu0 %v2679_v17 }
0x16ef   :  { %v1444_v18 = vpop.f32.mrb[18].mxu0 }
0x16f0   :  { %v1448_v20 = vadd.f32 %v1444_v18, %v2920_v21  ;;  %v2361_v23 = vpop.f32.mrb[19].mxu0 }
0x16f2   :  { %2623 = vtanh.f32 %v1448_v20  ;;  %v2057_v28 = vmul.f32 -1.442695, %v1448_v20 }
0x16f4   :  { %2625 = vpow2.f32 %v2057_v28 }
0x16fc   :  { %v2624_v25 = vpop.eup %2623 }
0x16fd   :  { %1458 = vrot.lane.b32.xlu0 %v2624_v25, %s2682_s3 }
0x16fe   :  { %v2626_v31 = vpop.eup %2625 }
0x16ff   :  { %v1452_v33 = vadd.f32 1.0, %v2626_v31 }
0x1701   :  { %2627 = vrcp.f32 %v1452_v33 }
0x170b   :  { %v2628_v32 = vpop.eup %2627 }
0x170c   :  { %v1456_v43 = vmul.f32 %v2628_v32, %v1360_v7 }
0x176f   :  { %v1459_v34 = vpop.permute.xlu0 %1458 }
0x1770   :  { %v1461_v36 = vmul.f32 %v2628_v32, %v1459_v34 }
0x1772   :  { %1463 = vrot.lane.b32.xlu1 %v1461_v36, %s2682_s3 }
0x17e4   :  { %v1464_v38 = vpop.permute.xlu1 %1463 }
0x17e5   :  { %v1466_v40 = vadd.f32 %v1464_v38, %v1456_v43 }
0x17e7   :  { %2629 = vtanh.f32 %v1466_v40 }
0x17f1   :  { %v2630_v21 = vpop.eup %2629 }
0x17f2   :  { %1469 = vrot.lane.b32.xlu0 %v2630_v21, %s2682_s3 }
0x1864   :  { %v1470_v42 = vpop.permute.xlu0 %1469 }
0x1865   :  { %v3102_v9 = vmul.f32 %v2628_v32, %v1470_v42 }
0x1867   :  { %1480 = vrot.lane.b32.xlu1 %v3102_v9, %s2683_s4 }
0x18d9   :  { %v1481_v26 = vpop.permute.xlu1 %1480 }
0x18da   :  { %2371 = vmatmul.mubr.msk.f32.vlgmr.msra.gmra.mrb[18].mxu1 %vm324_vm2, %v1481_v26 }
0x18db   :  { %2529 = vmatpush3.bf16.msra.mxu1 %v3017_v6  ;;  %2392 = vmatprep.mubr.msk.f32.mxu1 %vm2680_vm1, %v2681_v27 }
0x18dc   :  { %2530 = vmatprep.subr.bf16.mxu1 %v2679_v17 }
0x18df   :  { %2532 = vmatpush3.bf16.msra.mxu1 %v3031_v12 }
0x18e0   :  { %2539 = vmatprep.subr.bf16.mxu1 %v2679_v17 }
0x19ad   :  { %v1550_v44 = vpop.f32.mrb[18].mxu1 }
0x19ae   :  { %v1554_v45 = vadd.f32 %v1550_v44, %v2923_v24  ;;  %v2372_v46 = vpop.f32.mrb[19].mxu1 }
0x19b0   :  { %2631 = vtanh.f32 %v1554_v45  ;;  %v2060_v48 = vmul.f32 -1.442695, %v1554_v45 }
0x19b2   :  { %2633 = vpow2.f32 %v2060_v48 }
0x19ba   :  { %v2632_v47 = vpop.eup %2631 }
0x19bb   :  { %1564 = vrot.lane.b32.xlu0 %v2632_v47, %s2682_s3 }
0x19bc   :  { %v2634_v49 = vpop.eup %2633 }
0x19bd   :  { %v1558_v50 = vadd.f32 1.0, %v2634_v49 }
0x19bf   :  { %2635 = vrcp.f32 %v1558_v50 }
0x19c9   :  { %v2636_v51 = vpop.eup %2635 }
0x19ca   :  { %v1562_v53 = vmul.f32 %v2636_v51, %v1466_v40 }
0x1a2d   :  { %v1565_v52 = vpop.permute.xlu0 %1564 }
0x1a2e   :  { %v1567_v39 = vmul.f32 %v2636_v51, %v1565_v52  ;;  %v2049_v52 = vmul.f32 -1.442695, %v3081_v16 }
0x1a30   :  { %1569 = vrot.lane.b32.xlu1 %v1567_v39, %s2682_s3 }
0x1aa2   :  { %v1570_v54 = vpop.permute.xlu1 %1569 }
0x1aa3   :  { %v1572_v55 = vadd.f32 %v1570_v54, %v1562_v53 }
0x1aa5   :  { %2637 = vtanh.f32 %v1572_v55 }
0x1aaf   :  { %v2638_v24 = vpop.eup %2637 }
0x1ab0   :  { %1575 = vrot.lane.b32.xlu0 %v2638_v24, %s2682_s3 }
0x1b22   :  { %v1576_v56 = vpop.permute.xlu0 %1575 }
0x1b23   :  { %v3117_v58 = vmul.f32 %v2636_v51, %v1576_v56 }
0x1b25   :  { %1586 = vrot.lane.b32.xlu1 %v3117_v58, %s2683_s4 }
0x1b97   :  { %v1587_v59 = vpop.permute.xlu1 %1586 }
0x1b98   :  { %2382 = vmatmul.mubr.msk.f32.vlgmr.msra.gmra.mrb[20].mxu0 %vm324_vm2, %v1587_v59 }
0x1b99   :  { %2535 = vmatpush3.bf16.msra.mxu0 %v3017_v6  ;;  %2403 = vmatprep.mubr.msk.f32.mxu0 %vm2680_vm1, %v2681_v27 }
0x1b9a   :  { %2536 = vmatprep.subr.bf16.mxu0 %v2679_v17 }
0x1b9d   :  { %2538 = vmatpush3.bf16.msra.mxu0 %v3031_v12 }
0x1c6b   :  { %v1656_v60 = vpop.f32.mrb[20].mxu0 }
0x1c6c   :  { %v1660_v61 = vadd.f32 %v1656_v60, %v2914_v15  ;;  %v2383_v62 = vpop.f32.mrb[21].mxu0 }
0x1c6e   :  { %2639 = vtanh.f32 %v1660_v61  ;;  %v2063_v0 = vmul.f32 -1.442695, %v1660_v61 }
0x1c70   :  { %2641 = vpow2.f32 %v2063_v0 }
0x1c78   :  { %v2640_v63 = vpop.eup %2639 }
0x1c79   :  { %1670 = vrot.lane.b32.xlu0 %v2640_v63, %s2682_s3 }
0x1c7a   :  { %v2642_v22 = vpop.eup %2641 }
0x1c7b   :  { %v1664_v1 = vadd.f32 1.0, %v2642_v22 }
0x1c7d   :  { %2643 = vrcp.f32 %v1664_v1 }
0x1c87   :  { %v2644_v35 = vpop.eup %2643 }
0x1c88   :  { %v1668_v3 = vmul.f32 %v2644_v35, %v1572_v55 }
0x1ceb   :  { %v1671_v37 = vpop.permute.xlu0 %1670 }
0x1cec   :  { %v1673_v2 = vmul.f32 %v2644_v35, %v1671_v37 }
0x1cee   :  { %1675 = vrot.lane.b32.xlu1 %v1673_v2, %s2682_s3 }
0x1d60   :  { %v1676_v4 = vpop.permute.xlu1 %1675 }
0x1d61   :  { %v1678_v41 = vadd.f32 %v1676_v4, %v1668_v3 }
0x1d63   :  { %2645 = vtanh.f32 %v1678_v41 }
0x1d6d   :  { %v2646_v15 = vpop.eup %2645 }
0x1d6e   :  { %1681 = vrot.lane.b32.xlu0 %v2646_v15, %s2682_s3 }
0x1de0   :  { %v1682_v5 = vpop.permute.xlu0 %1681 }
0x1de1   :  { %v3131_v7 = vmul.f32 %v2644_v35, %v1682_v5 }
0x1de3   :  { %1692 = vrot.lane.b32.xlu1 %v3131_v7, %s2683_s4 }
0x1e55   :  { %v1693_v29 = vpop.permute.xlu1 %1692 }
0x1e56   :  { %2393 = vmatmul.mubr.msk.f32.vlgmr.msra.gmra.mrb[20].mxu1 %vm324_vm2, %v1693_v29 }
0x1e57   :  { %2541 = vmatpush3.bf16.msra.mxu1 %v3017_v6  ;;  %2414 = vmatprep.mubr.msk.f32.mxu1 %vm2680_vm1, %v2681_v27 }
0x1e58   :  { %2542 = vmatprep.subr.bf16.mxu1 %v2679_v17 }
0x1e5b   :  { %2544 = vmatpush3.bf16.msra.mxu1 %v3031_v12 }
0x1f29   :  { %v1762_v8 = vpop.f32.mrb[20].mxu1 }
0x1f2a   :  { %v1766_v14 = vadd.f32 %v1762_v8, %v2917_v19  ;;  %v2394_v18 = vpop.f32.mrb[21].mxu1 }
0x1f2c   :  { %2647 = vtanh.f32 %v1766_v14  ;;  %v2066_v23 = vmul.f32 -1.442695, %v1766_v14 }
0x1f2e   :  { %2649 = vpow2.f32 %v2066_v23 }
0x1f36   :  { %v2648_v20 = vpop.eup %2647 }
0x1f37   :  { %1776 = vrot.lane.b32.xlu0 %v2648_v20, %s2682_s3 }
0x1f38   :  { %v2650_v25 = vpop.eup %2649 }
0x1f39   :  { %v1770_v28 = vadd.f32 1.0, %v2650_v25 }
0x1f3b   :  { %2651 = vrcp.f32 %v1770_v28 }
0x1f45   :  { %v2652_v6 = vpop.eup %2651 }
0x1f46   :  { %v1774_v17 = vmul.f32 %v2652_v6, %v1678_v41 }
0x1fa9   :  { %v1777_v31 = vpop.permute.xlu0 %1776 }
0x1faa   :  { %v1779_v27 = vmul.f32 %v2652_v6, %v1777_v31 }
0x1fac   :  { %1781 = vrot.lane.b32.xlu1 %v1779_v27, %s2682_s3 }
0x201e   :  { %v1782_v12 = vpop.permute.xlu1 %1781 }
0x201f   :  { %v1784_v33 = vadd.f32 %v1782_v12, %v1774_v17 }
0x2021   :  { %2653 = vtanh.f32 %v1784_v33 }
0x202b   :  { %v2654_v19 = vpop.eup %2653 }
0x202c   :  { %1787 = vrot.lane.b32.xlu0 %v2654_v19, %s2682_s3 }
0x209e   :  { %v1788_v32 = vpop.permute.xlu0 %1787 }
0x209f   :  { %v1790_v34 = vmul.f32 %v2652_v6, %v1788_v32 }
0x20a1   :  { %1798 = vrot.lane.b32.xlu1 %v1790_v34, %s2683_s4 }
0x2113   :  { %v1799_v36 = vpop.permute.xlu1 %1798 }
0x2114   :  { %2404 = vmatmul.mubr.msk.f32.vlgmr.msra.gmra.mrb[22].mxu0 %vm324_vm2, %v1799_v36 }
0x21e7   :  { %v1868_v43 = vpop.f32.mrb[22].mxu0 }
0x21e8   :  { %v1872_v38 = vadd.f32 %v1868_v43, %v2908_v11  ;;  %v2405_v40 = vpop.f32.mrb[23].mxu0 }
0x21ea   :  { %2655 = vtanh.f32 %v1872_v38  ;;  %v2069_v42 = vmul.f32 -1.442695, %v1872_v38 }
0x21ec   :  { %2657 = vpow2.f32 %v2069_v42 }
0x21f4   :  { %v2656_v21 = vpop.eup %2655 }
0x21f5   :  { %1882 = vrot.lane.b32.xlu0 %v2656_v21, %s2682_s3 }
0x21f6   :  { %v2658_v26 = vpop.eup %2657 }
0x21f7   :  { %v1876_v44 = vadd.f32 1.0, %v2658_v26 }
0x21f9   :  { %2659 = vrcp.f32 %v1876_v44 }
0x2203   :  { %v2660_v45 = vpop.eup %2659 }
0x2204   :  { %v1880_v48 = vmul.f32 %v2660_v45, %v1784_v33 }
0x2267   :  { %v1883_v46 = vpop.permute.xlu0 %1882 }
0x2268   :  { %v1885_v47 = vmul.f32 %v2660_v45, %v1883_v46 }
0x226a   :  { %1887 = vrot.lane.b32.xlu1 %v1885_v47, %s2682_s3 }
0x22dc   :  { %v1888_v49 = vpop.permute.xlu1 %1887 }
0x22dd   :  { %v1890_v50 = vadd.f32 %v1888_v49, %v1880_v48 }
0x22df   :  { %2661 = vtanh.f32 %v1890_v50 }
0x22e0   :  { %2663 = vtanh.f32 %v3081_v16 }
0x22e1   :  { %2665 = vpow2.f32 %v2049_v52 }
0x22e9   :  { %v2662_v11 = vpop.eup %2661 }
0x22ea   :  { %1893 = vrot.lane.b32.xlu0 %v2662_v11, %s2682_s3  ;;  %v2664_v51 = vpop.eup %2663 }
0x22eb   :  { %v2666_v39 = vpop.eup %2665 }
0x22ec   :  { %v1136_v53 = vadd.f32 1.0, %v2666_v39 }
0x22ee   :  { %1142 = vrot.lane.b32.xlu0 %v2664_v51, %s2682_s3  ;;  %2667 = vrcp.f32 %v1136_v53 }
0x22f8   :  { %v2668_v24 = vpop.eup %2667 }
0x22f9   :  { %v1140_v61 = vmul.f32 %v2668_v24, %v3052_v30 }
0x235c   :  { %v1894_v54 = vpop.permute.xlu0 %1893 }
0x235d   :  { %v1896_v55 = vmul.f32 %v2660_v45, %v1894_v54 }
0x235f   :  { %1903 = vrot.lane.b32.xlu1 %v1896_v55, %s2683_s4 }
0x2360   :  { %v1143_v56 = vpop.permute.xlu0 %1142 }
0x2361   :  { %v1145_v59 = vmul.f32 %v2668_v24, %v1143_v56 }
0x2363   :  { %1147 = vrot.lane.b32.xlu0 %v1145_v59, %s2682_s3 }
0x23d1   :  { %v1904_v60 = vpop.permute.xlu1 %1903 }
0x23d2   :  { %2415 = vmatmul.mubr.msk.f32.vlgmr.msra.gmra.mrb[22].mxu1 %vm324_vm2, %v1904_v60 }
0x23d5   :  { %v1148_v62 = vpop.permute.xlu0 %1147 }
0x23d6   :  { %v1150_v16 = vadd.f32 %v1148_v62, %v1140_v61 }
0x23d8   :  { %2669 = vtanh.f32 %v1150_v16 }
0x23e2   :  { %v2670_v63 = vpop.eup %2669 }
0x23e3   :  { %1153 = vrot.lane.b32.xlu0 %v2670_v63, %s2682_s3 }
0x2455   :  { %v1154_v0 = vpop.permute.xlu0 %1153 }
0x2456   :  { %v1156_v22 = vmul.f32 %v2668_v24, %v1154_v0 }
0x2458   :  { %1158 = vrot.lane.b32.xlu0 %v1156_v22, %s2683_s4 }
0x245c   :  { %1368 = vrot.lane.b32.xlu0 %v3087_v10, %s2684_s28 }
0x2460   :  { %1580 = vrot.lane.b32.xlu0 %v3117_v58, %s2684_s28 }
0x2464   :  { %1792 = vrot.lane.b32.xlu0 %v1790_v34, %s2684_s28 }
0x24a5   :  { %v1973_v30 = vpop.f32.mrb[22].mxu1 }
0x24a6   :  { %v1977_v1 = vadd.f32 %v1973_v30, %v2911_v13  ;;  %v2416_v35 = vpop.f32.mrb[23].mxu1 }
0x24a8   :  { %2671 = vtanh.f32 %v1977_v1  ;;  %v2072_v3 = vmul.f32 -1.442695, %v1977_v1 }
0x24aa   :  { %2673 = vpow2.f32 %v2072_v3 }
0x24b2   :  { %v2672_v37 = vpop.eup %2671 }
0x24b3   :  { %1987 = vrot.lane.b32.xlu1 %v2672_v37, %s2682_s3 }
0x24b4   :  { %v2674_v4 = vpop.eup %2673 }
0x24b5   :  { %v1981_v41 = vadd.f32 1.0, %v2674_v4 }
0x24b7   :  { %2675 = vrcp.f32 %v1981_v41 }
0x24c1   :  { %v2676_v15 = vpop.eup %2675 }
0x24c2   :  { %v1985_v8 = vmul.f32 %v2676_v15, %v1890_v50 }
0x24ca   :  { %v1159_v2 = vpop.permute.xlu0 %1158 }
0x24cb   :  { %2050 = vst.msk [vmem:[%s3219_s7 + $0x38] sm:$0xff] %vm324_vm2, %v1159_v2 }
0x24ce   :  { %v1369_v10 = vpop.permute.xlu0 %1368 }
0x24cf   :  { %2055 = vst.msk [vmem:[%s3219_s7 + $0x30] sm:$0xff] %vm1264_vm3, %v1369_v10 }
0x24d2   :  { %v1581_v58 = vpop.permute.xlu0 %1580 }
0x24d3   :  { %2061 = vst.msk [vmem:[%s3219_s7 + $0x20] sm:$0xff] %vm1264_vm3, %v1581_v58 }
0x24d6   :  { %v1793_v13 = vpop.permute.xlu0 %1792 }
0x24d7   :  { %2067 = vst.msk [vmem:[%s3219_s7 + $0x10] sm:$0xff] %vm1264_vm3, %v1793_v13 }
0x2525   :  { %v1988_v5 = vpop.permute.xlu1 %1987 }
0x2526   :  { %v1990_v29 = vmul.f32 %v2676_v15, %v1988_v5 }
0x2528   :  { %1992 = vrot.lane.b32.xlu1 %v1990_v29, %s2682_s3 }
0x259a   :  { %v1993_v14 = vpop.permute.xlu1 %1992 }
0x259b   :  { %v1995_v18 = vadd.f32 %v1993_v14, %v1985_v8 }
0x259d   :  { %2677 = vtanh.f32 %v1995_v18 }
0x25a7   :  { %v2678_v20 = vpop.eup %2677 }
0x25a8   :  { %1998 = vrot.lane.b32.xlu1 %v2678_v20, %s2682_s3 }
0x25ac   :  { %1261 = vrot.lane.b32.xlu1 %v3058_v57, %s2684_s28 }
0x25b0   :  { %1474 = vrot.lane.b32.xlu1 %v3102_v9, %s2684_s28 }
0x25b4   :  { %1686 = vrot.lane.b32.xlu1 %v3131_v7, %s2684_s28 }
0x25b8   :  { %1898 = vrot.lane.b32.xlu1 %v1896_v55, %s2684_s28 }
0x261a   :  { %v1999_v23 = vpop.permute.xlu1 %1998 }
0x261b   :  { %v2001_v25 = vmul.f32 %v2676_v15, %v1999_v23 }
0x261d   :  { %2003 = vrot.lane.b32.xlu0 %v2001_v25, %s2684_s28 }
0x261e   :  { %v1262_v28 = vpop.permute.xlu1 %1261 }
0x261f   :  { %2052 = vst.msk [vmem:[%s3219_s7 + $0x38] sm:$0xff] %vm1264_vm3, %v1262_v28 }
0x2622   :  { %v1475_v6 = vpop.permute.xlu1 %1474 }
0x2623   :  { %2058 = vst.msk [vmem:[%s3219_s7 + $0x28] sm:$0xff] %vm1264_vm3, %v1475_v6 }
0x2626   :  { %v1687_v57 = vpop.permute.xlu1 %1686 }
0x2627   :  { %2064 = vst.msk [vmem:[%s3219_s7 + $0x18] sm:$0xff] %vm1264_vm3, %v1687_v57 }
0x262a   :  { %v1899_v9 = vpop.permute.xlu1 %1898 }
0x262b   :  { %2070 = vst.msk [vmem:[%s3219_s7 + $0x8] sm:$0xff] %vm1264_vm3, %v1899_v9 }
0x268f   :  { %v2004_v7 = vpop.permute.xlu0 %2003 }
0x2690   :  { %2006 = vst.msk [vmem:[%s3219_s7] sm:$0xff] %vm1264_vm3, %v2004_v7 }

</bundles_post_ra>
